<compile_context>
chip_gen: v7x
topology: tpu7x:2x2x1
jax: 0.10.0
libtpu: 0.0.40
codegen_flags: <defaults>
</compile_context>

<pallas_src>
import functools

import numpy as np
import jax
import jax.numpy as jnp
from jax.experimental import pallas as pl
from jax.experimental.pallas import tpu as pltpu

# -----------------------------------------------------------------------------
# Small config consistent with the module's constructor (scaled down)
# -----------------------------------------------------------------------------
IMG_SIZE = 16
PATCH_SIZE = 4
IN_CHANS = 3
EMBED_DIM = 32
DEPTHS = (2, 2)
NUM_HEADS = (2, 4)
WINDOW_SIZE = 2
MLP_RATIO = 2.0
QKV_BIAS = True
LN_EPS = 1e-6                                                    # LayerNorm(eps=1e-6)
PATCH_GRID = (IMG_SIZE // PATCH_SIZE, IMG_SIZE // PATCH_SIZE)    # (4, 4)
NUM_FEATURES = int(EMBED_DIM * 2 ** (len(DEPTHS) - 1))           # 64

ACT_DTYPE = jnp.bfloat16   # activations between kernels (halves HBM traffic)
W_DTYPE = jnp.bfloat16     # MXU operand dtype; accumulation stays f32

_PARALLEL_1D = pltpu.CompilerParams(dimension_semantics=("parallel",))
_SEQ_1D = pltpu.CompilerParams(dimension_semantics=("arbitrary",))

NEG_BIAS = -1e9            # cross-window mask (exp underflows to exactly 0 in f32)


# -----------------------------------------------------------------------------
# BlockSpec helpers (all calls use a 1-D grid)
# -----------------------------------------------------------------------------
def _const_spec(shape):
    """Whole array, resident across grid steps (weights / tables)."""
    n = len(shape)
    return pl.BlockSpec(tuple(shape), lambda i, n=n: (0,) * n)


def _batched_spec(tail_shape):
    """One batch element per grid step; leading batch dim squeezed."""
    n = len(tail_shape)
    return pl.BlockSpec((None,) + tuple(tail_shape), lambda i, n=n: (i,) + (0,) * n)


# -----------------------------------------------------------------------------
# In-kernel math helpers (f32)
# -----------------------------------------------------------------------------
def _layernorm(x, g, b, eps):
    mu = jnp.mean(x, axis=-1, keepdims=True)
    xc = x - mu
    var = jnp.mean(xc * xc, axis=-1, keepdims=True)
    return xc * jax.lax.rsqrt(var + eps) * g + b


def _gelu_exact(x):
    # Exact (erf-based) GELU, matching nn.GELU.  erf via Abramowitz & Stegun
    # 7.1.26 (|error| < 1.5e-7, i.e. f32 round-off), built only from ops that
    # are guaranteed to lower in Mosaic (exp / mul / add / where / div).
    # TODO(synk): switch to jax.lax.erf once its Mosaic lowering is guaranteed.
    z = x * 0.7071067811865476
    az = jnp.abs(z)
    t = 1.0 / (1.0 + 0.3275911 * az)
    poly = ((((1.061405429 * t - 1.453152027) * t + 1.421413741) * t
             - 0.284496736) * t + 0.254829592) * t
    erf = 1.0 - poly * jnp.exp(-az * az)
    erf = jnp.where(z < 0.0, -erf, erf)
    return 0.5 * x * (1.0 + erf)


# -----------------------------------------------------------------------------
# Pallas kernels
# -----------------------------------------------------------------------------
def _patch_embed_kernel(p_ref, w_ref, b_ref, g_ref, beta_ref, o_ref, *, eps):
    # Non-overlapping conv (kernel == stride == patch) as a matmul + patch norm.
    x = jnp.dot(p_ref[...], w_ref[...], preferred_element_type=jnp.float32) + b_ref[...]
    o_ref[...] = _layernorm(x, g_ref[...], beta_ref[...], eps).astype(o_ref.dtype)


def _swin_block_kernel(x_ref, n1g_ref, n1b_ref, pfwd_ref, pbwd_ref,
                       wq_ref, wk_ref, wv_ref, bq_ref, bk_ref, bv_ref,
                       bias_ref, wo_ref, bo_ref,
                       n2g_ref, n2b_ref, w1_ref, b1_ref, w2_ref, b2_ref,
                       o_ref, *, num_heads, apply_perm, eps):
    x = x_ref[...].astype(jnp.float32)                       # (L, C)
    L, C = x.shape

    # ---- LayerNorm 1 ----
    xn = _layernorm(x, n1g_ref[...], n1b_ref[...], eps)

    # ---- cyclic shift + window partition (static one-hot permutation, MXU) ----
    if apply_perm:
        xw = jnp.dot(pfwd_ref[...], xn.astype(jnp.bfloat16),
                     preferred_element_type=jnp.float32).astype(jnp.bfloat16)
    else:
        xw = xn.astype(jnp.bfloat16)

    # ---- windowed multi-head self-attention ----
    # bias_ref[h] is the static (L, L) rel-pos bias (+ shift mask), with
    # cross-window pairs set to NEG_BIAS -> exact per-window softmax.
    # Attention scale is folded into wq / bq at build time.
    attn = jnp.zeros((L, C), jnp.float32)
    for h in range(num_heads):
        q = jnp.dot(xw, wq_ref[h], preferred_element_type=jnp.float32) + bq_ref[h]
        k = jnp.dot(xw, wk_ref[h], preferred_element_type=jnp.float32) + bk_ref[h]
        v = jnp.dot(xw, wv_ref[h], preferred_element_type=jnp.float32) + bv_ref[h]
        s = jax.lax.dot_general(q.astype(jnp.bfloat16), k.astype(jnp.bfloat16),
                                (((1,), (1,)), ((), ())),
                                preferred_element_type=jnp.float32)      # (L, L)
        s = s + bias_ref[h]
        s = s - jnp.max(s, axis=-1, keepdims=True)
        p = jnp.exp(s)
        p = p * pl.reciprocal(jnp.sum(p, axis=-1, keepdims=True), approx=True)
        o_h = jnp.dot(p.astype(jnp.bfloat16), v.astype(jnp.bfloat16),
                      preferred_element_type=jnp.float32)                # (L, hd)
        attn = attn + jnp.dot(o_h.astype(jnp.bfloat16), wo_ref[h],
                              preferred_element_type=jnp.float32)        # (L, C)
    attn = attn + bo_ref[...]

    # ---- window reverse + reverse cyclic shift ----
    if apply_perm:
        attn = jnp.dot(pbwd_ref[...], attn.astype(jnp.bfloat16),
                       preferred_element_type=jnp.float32)

    x1 = x + attn                                     # residual (drop_path = identity)

    # ---- LayerNorm 2 + MLP (fc1 -> exact GELU -> fc2) + residual ----
    x1n = _layernorm(x1, n2g_ref[...], n2b_ref[...], eps)
    hmid = jnp.dot(x1n.astype(jnp.bfloat16), w1_ref[...],
                   preferred_element_type=jnp.float32) + b1_ref[...]
    hmid = _gelu_exact(hmid)
    mlp = jnp.dot(hmid.astype(jnp.bfloat16), w2_ref[...],
                  preferred_element_type=jnp.float32) + b2_ref[...]
    o_ref[...] = (x1 + mlp).astype(o_ref.dtype)


def _patch_merge_kernel(x_ref, gat_ref, ng_ref, nb_ref, red_ref, o_ref, *, eps):
    # 2x2 neighbourhood gather (static one-hot matmuls) + LayerNorm(4C) +
    # bias-free reduction, without ever materializing the (Lout, 4C) concat.
    x = x_ref[...]                                            # (L, C) bf16
    C = x.shape[1]
    parts = [jnp.dot(gat_ref[k], x, preferred_element_type=jnp.float32)
             for k in range(4)]                               # 4 x (Lout, C) f32
    inv_n = 1.0 / (4 * C)
    mu = sum(jnp.sum(p, axis=-1, keepdims=True) for p in parts) * inv_n
    var = sum(jnp.sum((p - mu) * (p - mu), axis=-1, keepdims=True)
              for p in parts) * inv_n
    inv = jax.lax.rsqrt(var + eps)
    acc = jnp.zeros((parts[0].shape[0], red_ref.shape[2]), jnp.float32)
    for k in range(4):
        yk = (parts[k] - mu) * inv * ng_ref[k] + nb_ref[k]
        acc = acc + jnp.dot(yk.astype(jnp.bfloat16), red_ref[k],
                            preferred_element_type=jnp.float32)
    o_ref[...] = acc.astype(o_ref.dtype)


def _final_norm_pool_kernel(x_ref, g_ref, b_ref, o_ref, *, eps):
    # Final LayerNorm fused with the global average pool over tokens.
    x = x_ref[...].astype(jnp.float32)                        # (B, L, C)
    xn = _layernorm(x, g_ref[...], b_ref[...], eps)
    o_ref[...] = jnp.mean(xn, axis=1).astype(o_ref.dtype)


# -----------------------------------------------------------------------------
# Static helpers (numpy, computed at build time)
# -----------------------------------------------------------------------------
def _relative_position_index(ws):
    coords = np.stack(np.meshgrid(np.arange(ws), np.arange(ws), indexing="ij"))
    coords_flat = coords.reshape(2, -1)
    rel = coords_flat[:, :, None] - coords_flat[:, None, :]
    rel = rel.transpose(1, 2, 0).astype(np.int64)
    rel[:, :, 0] += ws - 1
    rel[:, :, 1] += ws - 1
    rel[:, :, 0] *= 2 * ws - 1
    return rel.sum(-1)  # (N, N)


def _shift_attn_mask(H, W, ws, shift):
    img_mask = np.zeros((1, H, W, 1), np.float32)
    cnt = 0
    for hs in (slice(0, -ws), slice(-ws, -shift), slice(-shift, None)):
        for wsl in (slice(0, -ws), slice(-ws, -shift), slice(-shift, None)):
            img_mask[:, hs, wsl, :] = cnt
            cnt += 1
    m = (img_mask.reshape(1, H // ws, ws, W // ws, ws, 1)
         .transpose(0, 1, 3, 2, 4, 5).reshape(-1, ws * ws))
    attn_mask = m[:, None, :] - m[:, :, None]
    return np.where(attn_mask != 0, -100.0, 0.0).astype(np.float32)  # (nW, N, N)


def _shift_window_perm(H, W, ws, shift):
    """Token permutation implementing roll(-shift,-shift) + window_partition."""
    perm = np.zeros((H * W,), np.int64)
    nww = W // ws
    for wi in range(H // ws):
        for wj in range(nww):
            for di in range(ws):
                for dj in range(ws):
                    o = ((wi * nww + wj) * ws + di) * ws + dj
                    r = (wi * ws + di + shift) % H
                    c = (wj * ws + dj + shift) % W
                    perm[o] = r * W + c
    return perm


# -----------------------------------------------------------------------------
# Parameters (deterministic, synthetic), pre-packed for the fused kernels
# -----------------------------------------------------------------------------
class _KeyGen:
    def __init__(self, seed):
        self._key = jax.random.PRNGKey(seed)

    def __call__(self):
        self._key, sub = jax.random.split(self._key)
        return sub


def _trunc_normal(kg, shape, std=0.02):
    return std * jax.random.truncated_normal(kg(), -2.0, 2.0, shape, jnp.float32)


def build_params(seed=42):
    kg = _KeyGen(seed)
    p = {}
    patch_in = IN_CHANS * PATCH_SIZE * PATCH_SIZE
    p["patch_w"] = _trunc_normal(kg, (patch_in, EMBED_DIM)).astype(W_DTYPE)
    p["patch_b"] = jnp.zeros((1, EMBED_DIM), jnp.float32)
    p["patch_norm_g"] = jnp.ones((1, EMBED_DIM), jnp.float32)
    p["patch_norm_b"] = jnp.zeros((1, EMBED_DIM), jnp.float32)

    dims = [int(EMBED_DIM * 2 ** i) for i in range(len(DEPTHS))]
    out_dims = dims[1:] + [None]
    res = PATCH_GRID
    stages = []
    for i in range(len(DEPTHS)):
        dim, heads = dims[i], NUM_HEADS[i]
        hidden = int(dim * MLP_RATIO)
        hd = dim // heads
        scale = hd ** -0.5
        H, W = res
        L = H * W
        blocks = []
        for j in range(DEPTHS[i]):
            ws = WINDOW_SIZE
            shift = 0 if (j % 2 == 0) else WINDOW_SIZE // 2
            if min(res) <= ws:                       # SwinTransformerBlock rule
                ws = min(res)
                shift = 0
            N = ws * ws
            nW = L // N

            # qkv weights, split per head; attention scale folded into Wq.
            qkv_w = _trunc_normal(kg, (dim, 3 * dim))
            wq = (qkv_w[:, :dim] * scale).reshape(dim, heads, hd).transpose(1, 0, 2)
            wk = qkv_w[:, dim:2 * dim].reshape(dim, heads, hd).transpose(1, 0, 2)
            wv = qkv_w[:, 2 * dim:].reshape(dim, heads, hd).transpose(1, 0, 2)
            bq = jnp.zeros((heads, 1, hd), jnp.float32)   # qkv_bias=True, zeros at init
            bk = jnp.zeros((heads, 1, hd), jnp.float32)
            bv = jnp.zeros((heads, 1, hd), jnp.float32)

            # Relative position bias (+ shift mask), compact, then expanded to a
            # static block-diagonal (heads, L, L) bias over the permuted tokens.
            rel_table = np.asarray(_trunc_normal(kg, ((2 * ws - 1) ** 2, heads)))
            rel_index = _relative_position_index(ws)                 # (N, N)
            rel = rel_table[rel_index.reshape(-1)].reshape(N, N, heads).transpose(2, 0, 1)
            win_bias = np.broadcast_to(rel[:, None], (heads, nW, N, N)).astype(np.float32)
            if shift > 0:
                win_bias = win_bias + _shift_attn_mask(H, W, ws, shift)[None]
            full_bias = np.full((heads, L, L), NEG_BIAS, np.float32)
            for w in range(nW):
                full_bias[:, w * N:(w + 1) * N, w * N:(w + 1) * N] = win_bias[:, w]

            # Static one-hot permutation implementing shift + window partition.
            perm = _shift_window_perm(H, W, ws, shift)
            p_fwd = np.zeros((L, L), np.float32)
            p_fwd[np.arange(L), perm] = 1.0
            apply_perm = bool(np.any(perm != np.arange(L)))

            proj_w = _trunc_normal(kg, (dim, dim)).reshape(heads, hd, dim)

            blk = dict(
                num_heads=heads,
                apply_perm=apply_perm,
                norm1_g=jnp.ones((1, dim), jnp.float32),
                norm1_b=jnp.zeros((1, dim), jnp.float32),
                p_fwd=jnp.asarray(p_fwd, W_DTYPE),
                p_bwd=jnp.asarray(p_fwd.T, W_DTYPE),
                wq=wq.astype(W_DTYPE), wk=wk.astype(W_DTYPE), wv=wv.astype(W_DTYPE),
                bq=bq, bk=bk, bv=bv,
                attn_bias=jnp.asarray(full_bias, jnp.float32),
                proj_w=proj_w.astype(W_DTYPE),
                proj_b=jnp.zeros((1, dim), jnp.float32),
                norm2_g=jnp.ones((1, dim), jnp.float32),
                norm2_b=jnp.zeros((1, dim), jnp.float32),
                fc1_w=_trunc_normal(kg, (dim, hidden)).astype(W_DTYPE),
                fc1_b=jnp.zeros((1, hidden), jnp.float32),
                fc2_w=_trunc_normal(kg, (hidden, dim)).astype(W_DTYPE),
                fc2_b=jnp.zeros((1, dim), jnp.float32),
            )
            blocks.append(blk)
        stage = dict(blocks=blocks)
        if i < len(DEPTHS) - 1:
            Hout, Wout = H // 2, W // 2
            Lout = Hout * Wout
            gather = np.zeros((4, Lout, L), np.float32)
            for oi in range(Hout):
                for oj in range(Wout):
                    o = oi * Wout + oj
                    gather[0, o, (2 * oi) * W + (2 * oj)] = 1.0
                    gather[1, o, (2 * oi + 1) * W + (2 * oj)] = 1.0
                    gather[2, o, (2 * oi) * W + (2 * oj + 1)] = 1.0
                    gather[3, o, (2 * oi + 1) * W + (2 * oj + 1)] = 1.0
            stage["downsample"] = dict(
                gather=jnp.asarray(gather, W_DTYPE),
                norm_g=jnp.ones((4, 1, dim), jnp.float32),
                norm_b=jnp.zeros((4, 1, dim), jnp.float32),
                red_w=_trunc_normal(kg, (4 * dim, out_dims[i]))
                      .reshape(4, dim, out_dims[i]).astype(W_DTYPE),   # bias=False
            )
            res = (Hout, Wout)
        else:
            stage["downsample"] = None
        stages.append(stage)
    p["stages"] = stages
    p["norm_g"] = jnp.ones((1, NUM_FEATURES), jnp.float32)
    p["norm_b"] = jnp.zeros((1, NUM_FEATURES), jnp.float32)
    return p


# -----------------------------------------------------------------------------
# pallas_call wrappers (one fused kernel each)
# -----------------------------------------------------------------------------
def run_patch_embed(patches, params):
    B, Lp, Cp = patches.shape
    consts = (params["patch_w"], params["patch_b"],
              params["patch_norm_g"], params["patch_norm_b"])
    return pl.pallas_call(
        functools.partial(_patch_embed_kernel, eps=LN_EPS),
        out_shape=jax.ShapeDtypeStruct((B, Lp, EMBED_DIM), ACT_DTYPE),
        grid=(B,),
        in_specs=[_batched_spec((Lp, Cp))] + [_const_spec(c.shape) for c in consts],
        out_specs=_batched_spec((Lp, EMBED_DIM)),
        compiler_params=_PARALLEL_1D,
    )(patches, *consts)


def run_swin_block(x, blk):
    B, L, C = x.shape
    consts = (blk["norm1_g"], blk["norm1_b"], blk["p_fwd"], blk["p_bwd"],
              blk["wq"], blk["wk"], blk["wv"], blk["bq"], blk["bk"], blk["bv"],
              blk["attn_bias"], blk["proj_w"], blk["proj_b"],
              blk["norm2_g"], blk["norm2_b"],
              blk["fc1_w"], blk["fc1_b"], blk["fc2_w"], blk["fc2_b"])
    kernel = functools.partial(_swin_block_kernel,
                               num_heads=blk["num_heads"],
                               apply_perm=blk["apply_perm"],
                               eps=LN_EPS)
    return pl.pallas_call(
        kernel,
        out_shape=jax.ShapeDtypeStruct((B, L, C), x.dtype),
        grid=(B,),
        in_specs=[_batched_spec((L, C))] + [_const_spec(c.shape) for c in consts],
        out_specs=_batched_spec((L, C)),
        compiler_params=_PARALLEL_1D,
    )(x, *consts)


def run_patch_merge(x, ds):
    B, L, C = x.shape
    Lout = L // 4
    Cout = ds["red_w"].shape[-1]
    consts = (ds["gather"], ds["norm_g"], ds["norm_b"], ds["red_w"])
    return pl.pallas_call(
        functools.partial(_patch_merge_kernel, eps=LN_EPS),
        out_shape=jax.ShapeDtypeStruct((B, Lout, Cout), x.dtype),
        grid=(B,),
        in_specs=[_batched_spec((L, C))] + [_const_spec(c.shape) for c in consts],
        out_specs=_batched_spec((Lout, Cout)),
        compiler_params=_PARALLEL_1D,
    )(x, *consts)


def run_final_norm_pool(x, params):
    B, L, C = x.shape
    return pl.pallas_call(
        functools.partial(_final_norm_pool_kernel, eps=LN_EPS),
        out_shape=jax.ShapeDtypeStruct((B, C), jnp.float32),
        grid=(1,),
        in_specs=[_const_spec((B, L, C)),
                  _const_spec(params["norm_g"].shape),
                  _const_spec(params["norm_b"].shape)],
        out_specs=_const_spec((B, C)),
        compiler_params=_SEQ_1D,
    )(x, params["norm_g"], params["norm_b"])


# -----------------------------------------------------------------------------
# Forward pass
# -----------------------------------------------------------------------------
def swin_forward(params, x):
    # x: NCHW, as in PyTorch.
    B, Cin, H, W = x.shape
    ph = pw = PATCH_SIZE
    Hp, Wp = H // ph, W // pw

    # Patch extraction is pure layout plumbing; projection + norm run in Pallas.
    patches = x.reshape(B, Cin, Hp, ph, Wp, pw).transpose(0, 2, 4, 1, 3, 5)
    patches = patches.reshape(B, Hp * Wp, Cin * ph * pw).astype(ACT_DTYPE)

    tok = run_patch_embed(patches, params)
    # absolute_pos_embed is None (ape=False); pos_drop is identity at eval.

    for stage in params["stages"]:
        for blk in stage["blocks"]:
            tok = run_swin_block(tok, blk)
        if stage["downsample"] is not None:
            tok = run_patch_merge(tok, stage["downsample"])

    # Final LayerNorm + global average pool ('avg') fused in one kernel.
    return run_final_norm_pool(tok, params)


if __name__ == "__main__":
    params = build_params(seed=42)
    x = jax.random.normal(jax.random.PRNGKey(0),
                          (2, IN_CHANS, IMG_SIZE, IMG_SIZE), jnp.float32)
    fwd = jax.jit(lambda inp: swin_forward(params, inp))
    out = jax.block_until_ready(fwd(x))
    assert out.shape == (2, NUM_FEATURES), out.shape
    assert bool(jnp.all(jnp.isfinite(out)))
    print("KERNEL_OK")
</pallas_src>

<mosaic_0001>
module attributes {stable_mosaic.version = 11 : i64} {
  func.func @_patch_merge_kernel(%arg0: i32, %arg1: memref<1x16x32xbf16, #tpu.memory_space<vmem>>, %arg2: memref<4x4x16xbf16, #tpu.memory_space<vmem>>, %arg3: memref<4x1x32xf32, #tpu.memory_space<vmem>>, %arg4: memref<4x1x32xf32, #tpu.memory_space<vmem>>, %arg5: memref<4x32x64xbf16, #tpu.memory_space<vmem>>, %arg6: memref<1x4x64xbf16, #tpu.memory_space<vmem>>) attributes {dimension_semantics = [#tpu.dimension_semantics<parallel>], iteration_bounds = array<i64: 2>, scalar_prefetch = 0 : i64, scratch_operands = 0 : i64, tpu.core_type = #tpu.core_type<tc>, window_params = [{transform_indices = @transform_0, window_bounds = array<i64: 1, 16, 32>}, {pipeline_mode = #tpu.pipeline_mode<synchronous>, transform_indices = @transform_1, window_bounds = array<i64: 4, 4, 16>}, {pipeline_mode = #tpu.pipeline_mode<synchronous>, transform_indices = @transform_2, window_bounds = array<i64: 4, 1, 32>}, {pipeline_mode = #tpu.pipeline_mode<synchronous>, transform_indices = @transform_3, window_bounds = array<i64: 4, 1, 32>}, {pipeline_mode = #tpu.pipeline_mode<synchronous>, transform_indices = @transform_4, window_bounds = array<i64: 4, 32, 64>}, {transform_indices = @transform_5, window_bounds = array<i64: 1, 4, 64>}]} {
    %c0 = arith.constant 0 : index
    %c0_0 = arith.constant 0 : index
    %c0_1 = arith.constant 0 : index
    %0 = vector.load %arg1[%c0, %c0_0, %c0_1] : memref<1x16x32xbf16, #tpu.memory_space<vmem>>, vector<1x16x32xbf16>
    %1 = vector.shape_cast %0 : vector<1x16x32xbf16> to vector<16x32xbf16>
    %c0_2 = arith.constant 0 : index
    %c0_3 = arith.constant 0 : index
    %c0_4 = arith.constant 0 : index
    %2 = vector.load %arg2[%c0_2, %c0_3, %c0_4] : memref<4x4x16xbf16, #tpu.memory_space<vmem>>, vector<1x4x16xbf16>
    %3 = vector.shape_cast %2 : vector<1x4x16xbf16> to vector<4x16xbf16>
    %cst = arith.constant dense<0.000000e+00> : vector<4x32xf32>
    %4 = tpu.matmul %3, %1, %cst {dimension_numbers = #tpu.dot_dimension_numbers<[1], [0], [0], [1], [0, 0, 1, 1], [], []>} : vector<4x16xbf16>, vector<16x32xbf16>, vector<4x32xf32> -> vector<4x32xf32>
    %c1 = arith.constant 1 : index
    %c0_5 = arith.constant 0 : index
    %c0_6 = arith.constant 0 : index
    %5 = vector.load %arg2[%c1, %c0_5, %c0_6] : memref<4x4x16xbf16, #tpu.memory_space<vmem>>, vector<1x4x16xbf16>
    %6 = vector.shape_cast %5 : vector<1x4x16xbf16> to vector<4x16xbf16>
    %cst_7 = arith.constant dense<0.000000e+00> : vector<4x32xf32>
    %7 = tpu.matmul %6, %1, %cst_7 {dimension_numbers = #tpu.dot_dimension_numbers<[1], [0], [0], [1], [0, 0, 1, 1], [], []>} : vector<4x16xbf16>, vector<16x32xbf16>, vector<4x32xf32> -> vector<4x32xf32>
    %c2 = arith.constant 2 : index
    %c0_8 = arith.constant 0 : index
    %c0_9 = arith.constant 0 : index
    %8 = vector.load %arg2[%c2, %c0_8, %c0_9] : memref<4x4x16xbf16, #tpu.memory_space<vmem>>, vector<1x4x16xbf16>
    %9 = vector.shape_cast %8 : vector<1x4x16xbf16> to vector<4x16xbf16>
    %cst_10 = arith.constant dense<0.000000e+00> : vector<4x32xf32>
    %10 = tpu.matmul %9, %1, %cst_10 {dimension_numbers = #tpu.dot_dimension_numbers<[1], [0], [0], [1], [0, 0, 1, 1], [], []>} : vector<4x16xbf16>, vector<16x32xbf16>, vector<4x32xf32> -> vector<4x32xf32>
    %c3 = arith.constant 3 : index
    %c0_11 = arith.constant 0 : index
    %c0_12 = arith.constant 0 : index
    %11 = vector.load %arg2[%c3, %c0_11, %c0_12] : memref<4x4x16xbf16, #tpu.memory_space<vmem>>, vector<1x4x16xbf16>
    %12 = vector.shape_cast %11 : vector<1x4x16xbf16> to vector<4x16xbf16>
    %cst_13 = arith.constant dense<0.000000e+00> : vector<4x32xf32>
    %13 = tpu.matmul %12, %1, %cst_13 {dimension_numbers = #tpu.dot_dimension_numbers<[1], [0], [0], [1], [0, 0, 1, 1], [], []>} : vector<4x16xbf16>, vector<16x32xbf16>, vector<4x32xf32> -> vector<4x32xf32>
    %cst_14 = arith.constant dense<0.000000e+00> : vector<4xf32>
    %14 = vector.multi_reduction <add>, %4, %cst_14 [1] : vector<4x32xf32> to vector<4xf32>
    %15 = vector.shape_cast %14 : vector<4xf32> to vector<4x1xf32>
    %cst_15 = arith.constant 0.000000e+00 : f32
    %16 = vector.broadcast %cst_15 : f32 to vector<4x1xf32>
    %17 = arith.addf %16, %15 : vector<4x1xf32>
    %cst_16 = arith.constant dense<0.000000e+00> : vector<4xf32>
    %18 = vector.multi_reduction <add>, %7, %cst_16 [1] : vector<4x32xf32> to vector<4xf32>
    %19 = vector.shape_cast %18 : vector<4xf32> to vector<4x1xf32>
    %20 = arith.addf %17, %19 : vector<4x1xf32>
    %cst_17 = arith.constant dense<0.000000e+00> : vector<4xf32>
    %21 = vector.multi_reduction <add>, %10, %cst_17 [1] : vector<4x32xf32> to vector<4xf32>
    %22 = vector.shape_cast %21 : vector<4xf32> to vector<4x1xf32>
    %23 = arith.addf %20, %22 : vector<4x1xf32>
    %cst_18 = arith.constant dense<0.000000e+00> : vector<4xf32>
    %24 = vector.multi_reduction <add>, %13, %cst_18 [1] : vector<4x32xf32> to vector<4xf32>
    %25 = vector.shape_cast %24 : vector<4xf32> to vector<4x1xf32>
    %26 = arith.addf %23, %25 : vector<4x1xf32>
    %cst_19 = arith.constant 7.812500e-03 : f32
    %27 = vector.broadcast %cst_19 : f32 to vector<4x1xf32>
    %28 = arith.mulf %26, %27 : vector<4x1xf32>
    %29 = vector.broadcast %28 : vector<4x1xf32> to vector<4x32xf32>
    %30 = arith.subf %4, %29 : vector<4x32xf32>
    %31 = vector.broadcast %28 : vector<4x1xf32> to vector<4x32xf32>
    %32 = arith.subf %4, %31 : vector<4x32xf32>
    %33 = arith.mulf %30, %32 : vector<4x32xf32>
    %cst_20 = arith.constant dense<0.000000e+00> : vector<4xf32>
    %34 = vector.multi_reduction <add>, %33, %cst_20 [1] : vector<4x32xf32> to vector<4xf32>
    %35 = vector.shape_cast %34 : vector<4xf32> to vector<4x1xf32>
    %cst_21 = arith.constant 0.000000e+00 : f32
    %36 = vector.broadcast %cst_21 : f32 to vector<4x1xf32>
    %37 = arith.addf %36, %35 : vector<4x1xf32>
    %38 = vector.broadcast %28 : vector<4x1xf32> to vector<4x32xf32>
    %39 = arith.subf %7, %38 : vector<4x32xf32>
    %40 = vector.broadcast %28 : vector<4x1xf32> to vector<4x32xf32>
    %41 = arith.subf %7, %40 : vector<4x32xf32>
    %42 = arith.mulf %39, %41 : vector<4x32xf32>
    %cst_22 = arith.constant dense<0.000000e+00> : vector<4xf32>
    %43 = vector.multi_reduction <add>, %42, %cst_22 [1] : vector<4x32xf32> to vector<4xf32>
    %44 = vector.shape_cast %43 : vector<4xf32> to vector<4x1xf32>
    %45 = arith.addf %37, %44 : vector<4x1xf32>
    %46 = vector.broadcast %28 : vector<4x1xf32> to vector<4x32xf32>
    %47 = arith.subf %10, %46 : vector<4x32xf32>
    %48 = vector.broadcast %28 : vector<4x1xf32> to vector<4x32xf32>
    %49 = arith.subf %10, %48 : vector<4x32xf32>
    %50 = arith.mulf %47, %49 : vector<4x32xf32>
    %cst_23 = arith.constant dense<0.000000e+00> : vector<4xf32>
    %51 = vector.multi_reduction <add>, %50, %cst_23 [1] : vector<4x32xf32> to vector<4xf32>
    %52 = vector.shape_cast %51 : vector<4xf32> to vector<4x1xf32>
    %53 = arith.addf %45, %52 : vector<4x1xf32>
    %54 = vector.broadcast %28 : vector<4x1xf32> to vector<4x32xf32>
    %55 = arith.subf %13, %54 : vector<4x32xf32>
    %56 = vector.broadcast %28 : vector<4x1xf32> to vector<4x32xf32>
    %57 = arith.subf %13, %56 : vector<4x32xf32>
    %58 = arith.mulf %55, %57 : vector<4x32xf32>
    %cst_24 = arith.constant dense<0.000000e+00> : vector<4xf32>
    %59 = vector.multi_reduction <add>, %58, %cst_24 [1] : vector<4x32xf32> to vector<4xf32>
    %60 = vector.shape_cast %59 : vector<4xf32> to vector<4x1xf32>
    %61 = arith.addf %53, %60 : vector<4x1xf32>
    %cst_25 = arith.constant 7.812500e-03 : f32
    %62 = vector.broadcast %cst_25 : f32 to vector<4x1xf32>
    %63 = arith.mulf %61, %62 : vector<4x1xf32>
    %cst_26 = arith.constant 9.99999997E-7 : f32
    %64 = vector.broadcast %cst_26 : f32 to vector<4x1xf32>
    %65 = arith.addf %63, %64 : vector<4x1xf32>
    %66 = math.rsqrt %65 : vector<4x1xf32>
    %cst_27 = arith.constant 0.000000e+00 : f32
    %67 = vector.broadcast %cst_27 : f32 to vector<4x64xf32>
    %68 = vector.broadcast %28 : vector<4x1xf32> to vector<4x32xf32>
    %69 = arith.subf %4, %68 : vector<4x32xf32>
    %70 = vector.broadcast %66 : vector<4x1xf32> to vector<4x32xf32>
    %71 = arith.mulf %69, %70 : vector<4x32xf32>
    %c0_28 = arith.constant 0 : index
    %c0_29 = arith.constant 0 : index
    %c0_30 = arith.constant 0 : index
    %72 = vector.load %arg3[%c0_28, %c0_29, %c0_30] : memref<4x1x32xf32, #tpu.memory_space<vmem>>, vector<1x1x32xf32>
    %73 = vector.shape_cast %72 : vector<1x1x32xf32> to vector<1x32xf32>
    %74 = vector.broadcast %73 : vector<1x32xf32> to vector<4x32xf32>
    %75 = arith.mulf %71, %74 : vector<4x32xf32>
    %c0_31 = arith.constant 0 : index
    %c0_32 = arith.constant 0 : index
    %c0_33 = arith.constant 0 : index
    %76 = vector.load %arg4[%c0_31, %c0_32, %c0_33] : memref<4x1x32xf32, #tpu.memory_space<vmem>>, vector<1x1x32xf32>
    %77 = vector.shape_cast %76 : vector<1x1x32xf32> to vector<1x32xf32>
    %78 = vector.broadcast %77 : vector<1x32xf32> to vector<4x32xf32>
    %79 = arith.addf %75, %78 : vector<4x32xf32>
    %80 = arith.truncf %79 : vector<4x32xf32> to vector<4x32xbf16>
    %c0_34 = arith.constant 0 : index
    %c0_35 = arith.constant 0 : index
    %c0_36 = arith.constant 0 : index
    %81 = vector.load %arg5[%c0_34, %c0_35, %c0_36] : memref<4x32x64xbf16, #tpu.memory_space<vmem>>, vector<1x32x64xbf16>
    %82 = vector.shape_cast %81 : vector<1x32x64xbf16> to vector<32x64xbf16>
    %cst_37 = arith.constant dense<0.000000e+00> : vector<4x64xf32>
    %83 = tpu.matmul %80, %82, %cst_37 {dimension_numbers = #tpu.dot_dimension_numbers<[1], [0], [0], [1], [0, 0, 1, 1], [], []>} : vector<4x32xbf16>, vector<32x64xbf16>, vector<4x64xf32> -> vector<4x64xf32>
    %84 = arith.addf %67, %83 : vector<4x64xf32>
    %85 = vector.broadcast %28 : vector<4x1xf32> to vector<4x32xf32>
    %86 = arith.subf %7, %85 : vector<4x32xf32>
    %87 = vector.broadcast %66 : vector<4x1xf32> to vector<4x32xf32>
    %88 = arith.mulf %86, %87 : vector<4x32xf32>
    %c1_38 = arith.constant 1 : index
    %c0_39 = arith.constant 0 : index
    %c0_40 = arith.constant 0 : index
    %89 = vector.load %arg3[%c1_38, %c0_39, %c0_40] : memref<4x1x32xf32, #tpu.memory_space<vmem>>, vector<1x1x32xf32>
    %90 = vector.shape_cast %89 : vector<1x1x32xf32> to vector<1x32xf32>
    %91 = vector.broadcast %90 : vector<1x32xf32> to vector<4x32xf32>
    %92 = arith.mulf %88, %91 : vector<4x32xf32>
    %c1_41 = arith.constant 1 : index
    %c0_42 = arith.constant 0 : index
    %c0_43 = arith.constant 0 : index
    %93 = vector.load %arg4[%c1_41, %c0_42, %c0_43] : memref<4x1x32xf32, #tpu.memory_space<vmem>>, vector<1x1x32xf32>
    %94 = vector.shape_cast %93 : vector<1x1x32xf32> to vector<1x32xf32>
    %95 = vector.broadcast %94 : vector<1x32xf32> to vector<4x32xf32>
    %96 = arith.addf %92, %95 : vector<4x32xf32>
    %97 = arith.truncf %96 : vector<4x32xf32> to vector<4x32xbf16>
    %c1_44 = arith.constant 1 : index
    %c0_45 = arith.constant 0 : index
    %c0_46 = arith.constant 0 : index
    %98 = vector.load %arg5[%c1_44, %c0_45, %c0_46] : memref<4x32x64xbf16, #tpu.memory_space<vmem>>, vector<1x32x64xbf16>
    %99 = vector.shape_cast %98 : vector<1x32x64xbf16> to vector<32x64xbf16>
    %cst_47 = arith.constant dense<0.000000e+00> : vector<4x64xf32>
    %100 = tpu.matmul %97, %99, %cst_47 {dimension_numbers = #tpu.dot_dimension_numbers<[1], [0], [0], [1], [0, 0, 1, 1], [], []>} : vector<4x32xbf16>, vector<32x64xbf16>, vector<4x64xf32> -> vector<4x64xf32>
    %101 = arith.addf %84, %100 : vector<4x64xf32>
    %102 = vector.broadcast %28 : vector<4x1xf32> to vector<4x32xf32>
    %103 = arith.subf %10, %102 : vector<4x32xf32>
    %104 = vector.broadcast %66 : vector<4x1xf32> to vector<4x32xf32>
    %105 = arith.mulf %103, %104 : vector<4x32xf32>
    %c2_48 = arith.constant 2 : index
    %c0_49 = arith.constant 0 : index
    %c0_50 = arith.constant 0 : index
    %106 = vector.load %arg3[%c2_48, %c0_49, %c0_50] : memref<4x1x32xf32, #tpu.memory_space<vmem>>, vector<1x1x32xf32>
    %107 = vector.shape_cast %106 : vector<1x1x32xf32> to vector<1x32xf32>
    %108 = vector.broadcast %107 : vector<1x32xf32> to vector<4x32xf32>
    %109 = arith.mulf %105, %108 : vector<4x32xf32>
    %c2_51 = arith.constant 2 : index
    %c0_52 = arith.constant 0 : index
    %c0_53 = arith.constant 0 : index
    %110 = vector.load %arg4[%c2_51, %c0_52, %c0_53] : memref<4x1x32xf32, #tpu.memory_space<vmem>>, vector<1x1x32xf32>
    %111 = vector.shape_cast %110 : vector<1x1x32xf32> to vector<1x32xf32>
    %112 = vector.broadcast %111 : vector<1x32xf32> to vector<4x32xf32>
    %113 = arith.addf %109, %112 : vector<4x32xf32>
    %114 = arith.truncf %113 : vector<4x32xf32> to vector<4x32xbf16>
    %c2_54 = arith.constant 2 : index
    %c0_55 = arith.constant 0 : index
    %c0_56 = arith.constant 0 : index
    %115 = vector.load %arg5[%c2_54, %c0_55, %c0_56] : memref<4x32x64xbf16, #tpu.memory_space<vmem>>, vector<1x32x64xbf16>
    %116 = vector.shape_cast %115 : vector<1x32x64xbf16> to vector<32x64xbf16>
    %cst_57 = arith.constant dense<0.000000e+00> : vector<4x64xf32>
    %117 = tpu.matmul %114, %116, %cst_57 {dimension_numbers = #tpu.dot_dimension_numbers<[1], [0], [0], [1], [0, 0, 1, 1], [], []>} : vector<4x32xbf16>, vector<32x64xbf16>, vector<4x64xf32> -> vector<4x64xf32>
    %118 = arith.addf %101, %117 : vector<4x64xf32>
    %119 = vector.broadcast %28 : vector<4x1xf32> to vector<4x32xf32>
    %120 = arith.subf %13, %119 : vector<4x32xf32>
    %121 = vector.broadcast %66 : vector<4x1xf32> to vector<4x32xf32>
    %122 = arith.mulf %120, %121 : vector<4x32xf32>
    %c3_58 = arith.constant 3 : index
    %c0_59 = arith.constant 0 : index
    %c0_60 = arith.constant 0 : index
    %123 = vector.load %arg3[%c3_58, %c0_59, %c0_60] : memref<4x1x32xf32, #tpu.memory_space<vmem>>, vector<1x1x32xf32>
    %124 = vector.shape_cast %123 : vector<1x1x32xf32> to vector<1x32xf32>
    %125 = vector.broadcast %124 : vector<1x32xf32> to vector<4x32xf32>
    %126 = arith.mulf %122, %125 : vector<4x32xf32>
    %c3_61 = arith.constant 3 : index
    %c0_62 = arith.constant 0 : index
    %c0_63 = arith.constant 0 : index
    %127 = vector.load %arg4[%c3_61, %c0_62, %c0_63] : memref<4x1x32xf32, #tpu.memory_space<vmem>>, vector<1x1x32xf32>
    %128 = vector.shape_cast %127 : vector<1x1x32xf32> to vector<1x32xf32>
    %129 = vector.broadcast %128 : vector<1x32xf32> to vector<4x32xf32>
    %130 = arith.addf %126, %129 : vector<4x32xf32>
    %131 = arith.truncf %130 : vector<4x32xf32> to vector<4x32xbf16>
    %c3_64 = arith.constant 3 : index
    %c0_65 = arith.constant 0 : index
    %c0_66 = arith.constant 0 : index
    %132 = vector.load %arg5[%c3_64, %c0_65, %c0_66] : memref<4x32x64xbf16, #tpu.memory_space<vmem>>, vector<1x32x64xbf16>
    %133 = vector.shape_cast %132 : vector<1x32x64xbf16> to vector<32x64xbf16>
    %cst_67 = arith.constant dense<0.000000e+00> : vector<4x64xf32>
    %134 = tpu.matmul %131, %133, %cst_67 {dimension_numbers = #tpu.dot_dimension_numbers<[1], [0], [0], [1], [0, 0, 1, 1], [], []>} : vector<4x32xbf16>, vector<32x64xbf16>, vector<4x64xf32> -> vector<4x64xf32>
    %135 = arith.addf %118, %134 : vector<4x64xf32>
    %136 = arith.truncf %135 : vector<4x64xf32> to vector<4x64xbf16>
    %c0_68 = arith.constant 0 : index
    %c0_69 = arith.constant 0 : index
    %c0_70 = arith.constant 0 : index
    %137 = vector.load %arg6[%c0_68, %c0_69, %c0_70] : memref<1x4x64xbf16, #tpu.memory_space<vmem>>, vector<1x4x64xbf16>
    %138 = vector.shape_cast %137 : vector<1x4x64xbf16> to vector<4x64xbf16>
    %139 = vector.shape_cast %136 : vector<4x64xbf16> to vector<1x4x64xbf16>
    tpu.vector_store %arg6[%c0_68, %c0_69, %c0_70], %139 {strides = array<i32>} : memref<1x4x64xbf16, #tpu.memory_space<vmem>>, vector<1x4x64xbf16>,
    return
  }
  func.func @transform_0(%arg0: i32) -> (i32, i32, i32) {
    %c0_i32 = arith.constant 0 : i32
    %c0_i32_0 = arith.constant 0 : i32
    %c0_i32_1 = arith.constant 0 : i32
    return %arg0, %c0_i32, %c0_i32_0 : i32, i32, i32
  }
  func.func @transform_1(%arg0: i32) -> (i32, i32, i32) {
    %c0_i32 = arith.constant 0 : i32
    %c0_i32_0 = arith.constant 0 : i32
    %c0_i32_1 = arith.constant 0 : i32
    %c0_i32_2 = arith.constant 0 : i32
    return %c0_i32, %c0_i32_0, %c0_i32_1 : i32, i32, i32
  }
  func.func @transform_2(%arg0: i32) -> (i32, i32, i32) {
    %c0_i32 = arith.constant 0 : i32
    %c0_i32_0 = arith.constant 0 : i32
    %c0_i32_1 = arith.constant 0 : i32
    %c0_i32_2 = arith.constant 0 : i32
    return %c0_i32, %c0_i32_0, %c0_i32_1 : i32, i32, i32
  }
  func.func @transform_3(%arg0: i32) -> (i32, i32, i32) {
    %c0_i32 = arith.constant 0 : i32
    %c0_i32_0 = arith.constant 0 : i32
    %c0_i32_1 = arith.constant 0 : i32
    %c0_i32_2 = arith.constant 0 : i32
    return %c0_i32, %c0_i32_0, %c0_i32_1 : i32, i32, i32
  }
  func.func @transform_4(%arg0: i32) -> (i32, i32, i32) {
    %c0_i32 = arith.constant 0 : i32
    %c0_i32_0 = arith.constant 0 : i32
    %c0_i32_1 = arith.constant 0 : i32
    %c0_i32_2 = arith.constant 0 : i32
    return %c0_i32, %c0_i32_0, %c0_i32_1 : i32, i32, i32
  }
  func.func @transform_5(%arg0: i32) -> (i32, i32, i32) {
    %c0_i32 = arith.constant 0 : i32
    %c0_i32_0 = arith.constant 0 : i32
    %c0_i32_1 = arith.constant 0 : i32
    return %arg0, %c0_i32, %c0_i32_0 : i32, i32, i32
  }
}

module attributes {stable_mosaic.version = 11 : i64} {
  func.func @_patch_embed_kernel(%arg0: i32, %arg1: memref<1x16x48xbf16, #tpu.memory_space<vmem>>, %arg2: memref<48x32xbf16, #tpu.memory_space<vmem>>, %arg3: memref<1x32xf32, #tpu.memory_space<vmem>>, %arg4: memref<1x32xf32, #tpu.memory_space<vmem>>, %arg5: memref<1x32xf32, #tpu.memory_space<vmem>>, %arg6: memref<1x16x32xbf16, #tpu.memory_space<vmem>>) attributes {dimension_semantics = [#tpu.dimension_semantics<parallel>], iteration_bounds = array<i64: 2>, scalar_prefetch = 0 : i64, scratch_operands = 0 : i64, tpu.core_type = #tpu.core_type<tc>, window_params = [{transform_indices = @transform_0, window_bounds = array<i64: 1, 16, 48>}, {pipeline_mode = #tpu.pipeline_mode<synchronous>, transform_indices = @transform_1, window_bounds = array<i64: 48, 32>}, {pipeline_mode = #tpu.pipeline_mode<synchronous>, transform_indices = @transform_2, window_bounds = array<i64: 1, 32>}, {pipeline_mode = #tpu.pipeline_mode<synchronous>, transform_indices = @transform_3, window_bounds = array<i64: 1, 32>}, {pipeline_mode = #tpu.pipeline_mode<synchronous>, transform_indices = @transform_4, window_bounds = array<i64: 1, 32>}, {transform_indices = @transform_5, window_bounds = array<i64: 1, 16, 32>}]} {
    %c0 = arith.constant 0 : index
    %c0_0 = arith.constant 0 : index
    %c0_1 = arith.constant 0 : index
    %0 = vector.load %arg1[%c0, %c0_0, %c0_1] : memref<1x16x48xbf16, #tpu.memory_space<vmem>>, vector<1x16x48xbf16>
    %1 = vector.shape_cast %0 : vector<1x16x48xbf16> to vector<16x48xbf16>
    %c0_2 = arith.constant 0 : index
    %c0_3 = arith.constant 0 : index
    %2 = vector.load %arg2[%c0_2, %c0_3] : memref<48x32xbf16, #tpu.memory_space<vmem>>, vector<48x32xbf16>
    %cst = arith.constant dense<0.000000e+00> : vector<16x32xf32>
    %3 = tpu.matmul %1, %2, %cst {dimension_numbers = #tpu.dot_dimension_numbers<[1], [0], [0], [1], [0, 0, 1, 1], [], []>} : vector<16x48xbf16>, vector<48x32xbf16>, vector<16x32xf32> -> vector<16x32xf32>
    %c0_4 = arith.constant 0 : index
    %c0_5 = arith.constant 0 : index
    %4 = vector.load %arg3[%c0_4, %c0_5] : memref<1x32xf32, #tpu.memory_space<vmem>>, vector<1x32xf32>
    %5 = vector.broadcast %4 : vector<1x32xf32> to vector<16x32xf32>
    %6 = arith.addf %3, %5 : vector<16x32xf32>
    %c0_6 = arith.constant 0 : index
    %c0_7 = arith.constant 0 : index
    %7 = vector.load %arg4[%c0_6, %c0_7] : memref<1x32xf32, #tpu.memory_space<vmem>>, vector<1x32xf32>
    %c0_8 = arith.constant 0 : index
    %c0_9 = arith.constant 0 : index
    %8 = vector.load %arg5[%c0_8, %c0_9] : memref<1x32xf32, #tpu.memory_space<vmem>>, vector<1x32xf32>
    %cst_10 = arith.constant dense<0.000000e+00> : vector<16xf32>
    %9 = vector.multi_reduction <add>, %6, %cst_10 [1] : vector<16x32xf32> to vector<16xf32>
    %10 = vector.shape_cast %9 : vector<16xf32> to vector<16x1xf32>
    %cst_11 = arith.constant 3.200000e+01 : f32
    %11 = vector.broadcast %cst_11 : f32 to vector<16x1xf32>
    %12 = arith.divf %10, %11 : vector<16x1xf32>
    %13 = vector.broadcast %12 : vector<16x1xf32> to vector<16x32xf32>
    %14 = arith.subf %6, %13 : vector<16x32xf32>
    %15 = arith.mulf %14, %14 : vector<16x32xf32>
    %cst_12 = arith.constant dense<0.000000e+00> : vector<16xf32>
    %16 = vector.multi_reduction <add>, %15, %cst_12 [1] : vector<16x32xf32> to vector<16xf32>
    %17 = vector.shape_cast %16 : vector<16xf32> to vector<16x1xf32>
    %cst_13 = arith.constant 3.200000e+01 : f32
    %18 = vector.broadcast %cst_13 : f32 to vector<16x1xf32>
    %19 = arith.divf %17, %18 : vector<16x1xf32>
    %cst_14 = arith.constant 9.99999997E-7 : f32
    %20 = vector.broadcast %cst_14 : f32 to vector<16x1xf32>
    %21 = arith.addf %19, %20 : vector<16x1xf32>
    %22 = math.rsqrt %21 : vector<16x1xf32>
    %23 = vector.broadcast %22 : vector<16x1xf32> to vector<16x32xf32>
    %24 = arith.mulf %14, %23 : vector<16x32xf32>
    %25 = vector.broadcast %7 : vector<1x32xf32> to vector<16x32xf32>
    %26 = arith.mulf %24, %25 : vector<16x32xf32>
    %27 = vector.broadcast %8 : vector<1x32xf32> to vector<16x32xf32>
    %28 = arith.addf %26, %27 : vector<16x32xf32>
    %29 = arith.truncf %28 : vector<16x32xf32> to vector<16x32xbf16>
    %c0_15 = arith.constant 0 : index
    %c0_16 = arith.constant 0 : index
    %c0_17 = arith.constant 0 : index
    %30 = vector.load %arg6[%c0_15, %c0_16, %c0_17] : memref<1x16x32xbf16, #tpu.memory_space<vmem>>, vector<1x16x32xbf16>
    %31 = vector.shape_cast %30 : vector<1x16x32xbf16> to vector<16x32xbf16>
    %32 = vector.shape_cast %29 : vector<16x32xbf16> to vector<1x16x32xbf16>
    tpu.vector_store %arg6[%c0_15, %c0_16, %c0_17], %32 {strides = array<i32>} : memref<1x16x32xbf16, #tpu.memory_space<vmem>>, vector<1x16x32xbf16>,
    return
  }
  func.func @transform_0(%arg0: i32) -> (i32, i32, i32) {
    %c0_i32 = arith.constant 0 : i32
    %c0_i32_0 = arith.constant 0 : i32
    %c0_i32_1 = arith.constant 0 : i32
    return %arg0, %c0_i32, %c0_i32_0 : i32, i32, i32
  }
  func.func @transform_1(%arg0: i32) -> (i32, i32) {
    %c0_i32 = arith.constant 0 : i32
    %c0_i32_0 = arith.constant 0 : i32
    %c0_i32_1 = arith.constant 0 : i32
    return %c0_i32, %c0_i32_0 : i32, i32
  }
  func.func @transform_2(%arg0: i32) -> (i32, i32) {
    %c0_i32 = arith.constant 0 : i32
    %c0_i32_0 = arith.constant 0 : i32
    %c0_i32_1 = arith.constant 0 : i32
    return %c0_i32, %c0_i32_0 : i32, i32
  }
  func.func @transform_3(%arg0: i32) -> (i32, i32) {
    %c0_i32 = arith.constant 0 : i32
    %c0_i32_0 = arith.constant 0 : i32
    %c0_i32_1 = arith.constant 0 : i32
    return %c0_i32, %c0_i32_0 : i32, i32
  }
  func.func @transform_4(%arg0: i32) -> (i32, i32) {
    %c0_i32 = arith.constant 0 : i32
    %c0_i32_0 = arith.constant 0 : i32
    %c0_i32_1 = arith.constant 0 : i32
    return %c0_i32, %c0_i32_0 : i32, i32
  }
  func.func @transform_5(%arg0: i32) -> (i32, i32, i32) {
    %c0_i32 = arith.constant 0 : i32
    %c0_i32_0 = arith.constant 0 : i32
    %c0_i32_1 = arith.constant 0 : i32
    return %arg0, %c0_i32, %c0_i32_0 : i32, i32, i32
  }
}

module attributes {stable_mosaic.version = 11 : i64} {
  func.func @_swin_block_kernel(%arg0: i32, %arg1: memref<1x16x32xbf16, #tpu.memory_space<vmem>>, %arg2: memref<1x32xf32, #tpu.memory_space<vmem>>, %arg3: memref<1x32xf32, #tpu.memory_space<vmem>>, %arg4: memref<16x16xbf16, #tpu.memory_space<vmem>>, %arg5: memref<16x16xbf16, #tpu.memory_space<vmem>>, %arg6: memref<2x32x16xbf16, #tpu.memory_space<vmem>>, %arg7: memref<2x32x16xbf16, #tpu.memory_space<vmem>>, %arg8: memref<2x32x16xbf16, #tpu.memory_space<vmem>>, %arg9: memref<2x1x16xf32, #tpu.memory_space<vmem>>, %arg10: memref<2x1x16xf32, #tpu.memory_space<vmem>>, %arg11: memref<2x1x16xf32, #tpu.memory_space<vmem>>, %arg12: memref<2x16x16xf32, #tpu.memory_space<vmem>>, %arg13: memref<2x16x32xbf16, #tpu.memory_space<vmem>>, %arg14: memref<1x32xf32, #tpu.memory_space<vmem>>, %arg15: memref<1x32xf32, #tpu.memory_space<vmem>>, %arg16: memref<1x32xf32, #tpu.memory_space<vmem>>, %arg17: memref<32x64xbf16, #tpu.memory_space<vmem>>, %arg18: memref<1x64xf32, #tpu.memory_space<vmem>>, %arg19: memref<64x32xbf16, #tpu.memory_space<vmem>>, %arg20: memref<1x32xf32, #tpu.memory_space<vmem>>, %arg21: memref<1x16x32xbf16, #tpu.memory_space<vmem>>) attributes {dimension_semantics = [#tpu.dimension_semantics<parallel>], iteration_bounds = array<i64: 2>, scalar_prefetch = 0 : i64, scratch_operands = 0 : i64, tpu.core_type = #tpu.core_type<tc>, window_params = [{transform_indices = @transform_0, window_bounds = array<i64: 1, 16, 32>}, {pipeline_mode = #tpu.pipeline_mode<synchronous>, transform_indices = @transform_1, window_bounds = array<i64: 1, 32>}, {pipeline_mode = #tpu.pipeline_mode<synchronous>, transform_indices = @transform_2, window_bounds = array<i64: 1, 32>}, {pipeline_mode = #tpu.pipeline_mode<synchronous>, transform_indices = @transform_3, window_bounds = array<i64: 16, 16>}, {pipeline_mode = #tpu.pipeline_mode<synchronous>, transform_indices = @transform_4, window_bounds = array<i64: 16, 16>}, {pipeline_mode = #tpu.pipeline_mode<synchronous>, transform_indices = @transform_5, window_bounds = array<i64: 2, 32, 16>}, {pipeline_mode = #tpu.pipeline_mode<synchronous>, transform_indices = @transform_6, window_bounds = array<i64: 2, 32, 16>}, {pipeline_mode = #tpu.pipeline_mode<synchronous>, transform_indices = @transform_7, window_bounds = array<i64: 2, 32, 16>}, {pipeline_mode = #tpu.pipeline_mode<synchronous>, transform_indices = @transform_8, window_bounds = array<i64: 2, 1, 16>}, {pipeline_mode = #tpu.pipeline_mode<synchronous>, transform_indices = @transform_9, window_bounds = array<i64: 2, 1, 16>}, {pipeline_mode = #tpu.pipeline_mode<synchronous>, transform_indices = @transform_10, window_bounds = array<i64: 2, 1, 16>}, {pipeline_mode = #tpu.pipeline_mode<synchronous>, transform_indices = @transform_11, window_bounds = array<i64: 2, 16, 16>}, {pipeline_mode = #tpu.pipeline_mode<synchronous>, transform_indices = @transform_12, window_bounds = array<i64: 2, 16, 32>}, {pipeline_mode = #tpu.pipeline_mode<synchronous>, transform_indices = @transform_13, window_bounds = array<i64: 1, 32>}, {pipeline_mode = #tpu.pipeline_mode<synchronous>, transform_indices = @transform_14, window_bounds = array<i64: 1, 32>}, {pipeline_mode = #tpu.pipeline_mode<synchronous>, transform_indices = @transform_15, window_bounds = array<i64: 1, 32>}, {pipeline_mode = #tpu.pipeline_mode<synchronous>, transform_indices = @transform_16, window_bounds = array<i64: 32, 64>}, {pipeline_mode = #tpu.pipeline_mode<synchronous>, transform_indices = @transform_17, window_bounds = array<i64: 1, 64>}, {pipeline_mode = #tpu.pipeline_mode<synchronous>, transform_indices = @transform_18, window_bounds = array<i64: 64, 32>}, {pipeline_mode = #tpu.pipeline_mode<synchronous>, transform_indices = @transform_19, window_bounds = array<i64: 1, 32>}, {transform_indices = @transform_20, window_bounds = array<i64: 1, 16, 32>}]} {
    %c0 = arith.constant 0 : index
    %c0_0 = arith.constant 0 : index
    %c0_1 = arith.constant 0 : index
    %0 = vector.load %arg1[%c0, %c0_0, %c0_1] : memref<1x16x32xbf16, #tpu.memory_space<vmem>>, vector<1x16x32xbf16>
    %1 = vector.shape_cast %0 : vector<1x16x32xbf16> to vector<16x32xbf16>
    %2 = arith.extf %1 : vector<16x32xbf16> to vector<16x32xf32>
    %c0_2 = arith.constant 0 : index
    %c0_3 = arith.constant 0 : index
    %3 = vector.load %arg2[%c0_2, %c0_3] : memref<1x32xf32, #tpu.memory_space<vmem>>, vector<1x32xf32>
    %c0_4 = arith.constant 0 : index
    %c0_5 = arith.constant 0 : index
    %4 = vector.load %arg3[%c0_4, %c0_5] : memref<1x32xf32, #tpu.memory_space<vmem>>, vector<1x32xf32>
    %cst = arith.constant dense<0.000000e+00> : vector<16xf32>
    %5 = vector.multi_reduction <add>, %2, %cst [1] : vector<16x32xf32> to vector<16xf32>
    %6 = vector.shape_cast %5 : vector<16xf32> to vector<16x1xf32>
    %cst_6 = arith.constant 3.200000e+01 : f32
    %7 = vector.broadcast %cst_6 : f32 to vector<16x1xf32>
    %8 = arith.divf %6, %7 : vector<16x1xf32>
    %9 = vector.broadcast %8 : vector<16x1xf32> to vector<16x32xf32>
    %10 = arith.subf %2, %9 : vector<16x32xf32>
    %11 = arith.mulf %10, %10 : vector<16x32xf32>
    %cst_7 = arith.constant dense<0.000000e+00> : vector<16xf32>
    %12 = vector.multi_reduction <add>, %11, %cst_7 [1] : vector<16x32xf32> to vector<16xf32>
    %13 = vector.shape_cast %12 : vector<16xf32> to vector<16x1xf32>
    %cst_8 = arith.constant 3.200000e+01 : f32
    %14 = vector.broadcast %cst_8 : f32 to vector<16x1xf32>
    %15 = arith.divf %13, %14 : vector<16x1xf32>
    %cst_9 = arith.constant 9.99999997E-7 : f32
    %16 = vector.broadcast %cst_9 : f32 to vector<16x1xf32>
    %17 = arith.addf %15, %16 : vector<16x1xf32>
    %18 = math.rsqrt %17 : vector<16x1xf32>
    %19 = vector.broadcast %18 : vector<16x1xf32> to vector<16x32xf32>
    %20 = arith.mulf %10, %19 : vector<16x32xf32>
    %21 = vector.broadcast %3 : vector<1x32xf32> to vector<16x32xf32>
    %22 = arith.mulf %20, %21 : vector<16x32xf32>
    %23 = vector.broadcast %4 : vector<1x32xf32> to vector<16x32xf32>
    %24 = arith.addf %22, %23 : vector<16x32xf32>
    %c0_10 = arith.constant 0 : index
    %c0_11 = arith.constant 0 : index
    %25 = vector.load %arg4[%c0_10, %c0_11] : memref<16x16xbf16, #tpu.memory_space<vmem>>, vector<16x16xbf16>
    %26 = arith.truncf %24 : vector<16x32xf32> to vector<16x32xbf16>
    %cst_12 = arith.constant dense<0.000000e+00> : vector<16x32xf32>
    %27 = tpu.matmul %25, %26, %cst_12 {dimension_numbers = #tpu.dot_dimension_numbers<[1], [0], [0], [1], [0, 0, 1, 1], [], []>} : vector<16x16xbf16>, vector<16x32xbf16>, vector<16x32xf32> -> vector<16x32xf32>
    %28 = arith.truncf %27 : vector<16x32xf32> to vector<16x32xbf16>
    %cst_13 = arith.constant 0.000000e+00 : f32
    %29 = vector.broadcast %cst_13 : f32 to vector<16x32xf32>
    %c0_14 = arith.constant 0 : index
    %c0_15 = arith.constant 0 : index
    %c0_16 = arith.constant 0 : index
    %30 = vector.load %arg6[%c0_14, %c0_15, %c0_16] : memref<2x32x16xbf16, #tpu.memory_space<vmem>>, vector<1x32x16xbf16>
    %31 = vector.shape_cast %30 : vector<1x32x16xbf16> to vector<32x16xbf16>
    %cst_17 = arith.constant dense<0.000000e+00> : vector<16x16xf32>
    %32 = tpu.matmul %28, %31, %cst_17 {dimension_numbers = #tpu.dot_dimension_numbers<[1], [0], [0], [1], [0, 0, 1, 1], [], []>} : vector<16x32xbf16>, vector<32x16xbf16>, vector<16x16xf32> -> vector<16x16xf32>
    %c0_18 = arith.constant 0 : index
    %c0_19 = arith.constant 0 : index
    %c0_20 = arith.constant 0 : index
    %33 = vector.load %arg9[%c0_18, %c0_19, %c0_20] : memref<2x1x16xf32, #tpu.memory_space<vmem>>, vector<1x1x16xf32>
    %34 = vector.shape_cast %33 : vector<1x1x16xf32> to vector<1x16xf32>
    %35 = vector.broadcast %34 : vector<1x16xf32> to vector<16x16xf32>
    %36 = arith.addf %32, %35 : vector<16x16xf32>
    %c0_21 = arith.constant 0 : index
    %c0_22 = arith.constant 0 : index
    %c0_23 = arith.constant 0 : index
    %37 = vector.load %arg7[%c0_21, %c0_22, %c0_23] : memref<2x32x16xbf16, #tpu.memory_space<vmem>>, vector<1x32x16xbf16>
    %38 = vector.shape_cast %37 : vector<1x32x16xbf16> to vector<32x16xbf16>
    %cst_24 = arith.constant dense<0.000000e+00> : vector<16x16xf32>
    %39 = tpu.matmul %28, %38, %cst_24 {dimension_numbers = #tpu.dot_dimension_numbers<[1], [0], [0], [1], [0, 0, 1, 1], [], []>} : vector<16x32xbf16>, vector<32x16xbf16>, vector<16x16xf32> -> vector<16x16xf32>
    %c0_25 = arith.constant 0 : index
    %c0_26 = arith.constant 0 : index
    %c0_27 = arith.constant 0 : index
    %40 = vector.load %arg10[%c0_25, %c0_26, %c0_27] : memref<2x1x16xf32, #tpu.memory_space<vmem>>, vector<1x1x16xf32>
    %41 = vector.shape_cast %40 : vector<1x1x16xf32> to vector<1x16xf32>
    %42 = vector.broadcast %41 : vector<1x16xf32> to vector<16x16xf32>
    %43 = arith.addf %39, %42 : vector<16x16xf32>
    %c0_28 = arith.constant 0 : index
    %c0_29 = arith.constant 0 : index
    %c0_30 = arith.constant 0 : index
    %44 = vector.load %arg8[%c0_28, %c0_29, %c0_30] : memref<2x32x16xbf16, #tpu.memory_space<vmem>>, vector<1x32x16xbf16>
    %45 = vector.shape_cast %44 : vector<1x32x16xbf16> to vector<32x16xbf16>
    %cst_31 = arith.constant dense<0.000000e+00> : vector<16x16xf32>
    %46 = tpu.matmul %28, %45, %cst_31 {dimension_numbers = #tpu.dot_dimension_numbers<[1], [0], [0], [1], [0, 0, 1, 1], [], []>} : vector<16x32xbf16>, vector<32x16xbf16>, vector<16x16xf32> -> vector<16x16xf32>
    %c0_32 = arith.constant 0 : index
    %c0_33 = arith.constant 0 : index
    %c0_34 = arith.constant 0 : index
    %47 = vector.load %arg11[%c0_32, %c0_33, %c0_34] : memref<2x1x16xf32, #tpu.memory_space<vmem>>, vector<1x1x16xf32>
    %48 = vector.shape_cast %47 : vector<1x1x16xf32> to vector<1x16xf32>
    %49 = vector.broadcast %48 : vector<1x16xf32> to vector<16x16xf32>
    %50 = arith.addf %46, %49 : vector<16x16xf32>
    %51 = arith.truncf %36 : vector<16x16xf32> to vector<16x16xbf16>
    %52 = arith.truncf %43 : vector<16x16xf32> to vector<16x16xbf16>
    %cst_35 = arith.constant dense<0.000000e+00> : vector<16x16xf32>
    %53 = tpu.matmul %51, %52, %cst_35 {dimension_numbers = #tpu.dot_dimension_numbers<[1], [1], [0], [0], [0, 0, 1, 0], [], []>} : vector<16x16xbf16>, vector<16x16xbf16>, vector<16x16xf32> -> vector<16x16xf32>
    %c0_36 = arith.constant 0 : index
    %c0_37 = arith.constant 0 : index
    %c0_38 = arith.constant 0 : index
    %54 = vector.load %arg12[%c0_36, %c0_37, %c0_38] : memref<2x16x16xf32, #tpu.memory_space<vmem>>, vector<1x16x16xf32>
    %55 = vector.shape_cast %54 : vector<1x16x16xf32> to vector<16x16xf32>
    %56 = arith.addf %53, %55 : vector<16x16xf32>
    %cst_39 = arith.constant dense<0xFF800000> : vector<16xf32>
    %57 = vector.multi_reduction <maximumf>, %56, %cst_39 [1] : vector<16x16xf32> to vector<16xf32>
    %58 = vector.shape_cast %57 : vector<16xf32> to vector<16x1xf32>
    %59 = vector.broadcast %58 : vector<16x1xf32> to vector<16x16xf32>
    %60 = arith.subf %56, %59 : vector<16x16xf32>
    %61 = math.exp %60 : vector<16x16xf32>
    %cst_40 = arith.constant dense<0.000000e+00> : vector<16xf32>
    %62 = vector.multi_reduction <add>, %61, %cst_40 [1] : vector<16x16xf32> to vector<16xf32>
    %63 = vector.shape_cast %62 : vector<16xf32> to vector<16x1xf32>
    %64 = tpu.reciprocal %63 {approx = true} : vector<16x1xf32> -> vector<16x1xf32>
    %65 = vector.broadcast %64 : vector<16x1xf32> to vector<16x16xf32>
    %66 = arith.mulf %61, %65 : vector<16x16xf32>
    %67 = arith.truncf %66 : vector<16x16xf32> to vector<16x16xbf16>
    %68 = arith.truncf %50 : vector<16x16xf32> to vector<16x16xbf16>
    %cst_41 = arith.constant dense<0.000000e+00> : vector<16x16xf32>
    %69 = tpu.matmul %67, %68, %cst_41 {dimension_numbers = #tpu.dot_dimension_numbers<[1], [0], [0], [1], [0, 0, 1, 1], [], []>} : vector<16x16xbf16>, vector<16x16xbf16>, vector<16x16xf32> -> vector<16x16xf32>
    %70 = arith.truncf %69 : vector<16x16xf32> to vector<16x16xbf16>
    %c0_42 = arith.constant 0 : index
    %c0_43 = arith.constant 0 : index
    %c0_44 = arith.constant 0 : index
    %71 = vector.load %arg13[%c0_42, %c0_43, %c0_44] : memref<2x16x32xbf16, #tpu.memory_space<vmem>>, vector<1x16x32xbf16>
    %72 = vector.shape_cast %71 : vector<1x16x32xbf16> to vector<16x32xbf16>
    %cst_45 = arith.constant dense<0.000000e+00> : vector<16x32xf32>
    %73 = tpu.matmul %70, %72, %cst_45 {dimension_numbers = #tpu.dot_dimension_numbers<[1], [0], [0], [1], [0, 0, 1, 1], [], []>} : vector<16x16xbf16>, vector<16x32xbf16>, vector<16x32xf32> -> vector<16x32xf32>
    %74 = arith.addf %29, %73 : vector<16x32xf32>
    %c1 = arith.constant 1 : index
    %c0_46 = arith.constant 0 : index
    %c0_47 = arith.constant 0 : index
    %75 = vector.load %arg6[%c1, %c0_46, %c0_47] : memref<2x32x16xbf16, #tpu.memory_space<vmem>>, vector<1x32x16xbf16>
    %76 = vector.shape_cast %75 : vector<1x32x16xbf16> to vector<32x16xbf16>
    %cst_48 = arith.constant dense<0.000000e+00> : vector<16x16xf32>
    %77 = tpu.matmul %28, %76, %cst_48 {dimension_numbers = #tpu.dot_dimension_numbers<[1], [0], [0], [1], [0, 0, 1, 1], [], []>} : vector<16x32xbf16>, vector<32x16xbf16>, vector<16x16xf32> -> vector<16x16xf32>
    %c1_49 = arith.constant 1 : index
    %c0_50 = arith.constant 0 : index
    %c0_51 = arith.constant 0 : index
    %78 = vector.load %arg9[%c1_49, %c0_50, %c0_51] : memref<2x1x16xf32, #tpu.memory_space<vmem>>, vector<1x1x16xf32>
    %79 = vector.shape_cast %78 : vector<1x1x16xf32> to vector<1x16xf32>
    %80 = vector.broadcast %79 : vector<1x16xf32> to vector<16x16xf32>
    %81 = arith.addf %77, %80 : vector<16x16xf32>
    %c1_52 = arith.constant 1 : index
    %c0_53 = arith.constant 0 : index
    %c0_54 = arith.constant 0 : index
    %82 = vector.load %arg7[%c1_52, %c0_53, %c0_54] : memref<2x32x16xbf16, #tpu.memory_space<vmem>>, vector<1x32x16xbf16>
    %83 = vector.shape_cast %82 : vector<1x32x16xbf16> to vector<32x16xbf16>
    %cst_55 = arith.constant dense<0.000000e+00> : vector<16x16xf32>
    %84 = tpu.matmul %28, %83, %cst_55 {dimension_numbers = #tpu.dot_dimension_numbers<[1], [0], [0], [1], [0, 0, 1, 1], [], []>} : vector<16x32xbf16>, vector<32x16xbf16>, vector<16x16xf32> -> vector<16x16xf32>
    %c1_56 = arith.constant 1 : index
    %c0_57 = arith.constant 0 : index
    %c0_58 = arith.constant 0 : index
    %85 = vector.load %arg10[%c1_56, %c0_57, %c0_58] : memref<2x1x16xf32, #tpu.memory_space<vmem>>, vector<1x1x16xf32>
    %86 = vector.shape_cast %85 : vector<1x1x16xf32> to vector<1x16xf32>
    %87 = vector.broadcast %86 : vector<1x16xf32> to vector<16x16xf32>
    %88 = arith.addf %84, %87 : vector<16x16xf32>
    %c1_59 = arith.constant 1 : index
    %c0_60 = arith.constant 0 : index
    %c0_61 = arith.constant 0 : index
    %89 = vector.load %arg8[%c1_59, %c0_60, %c0_61] : memref<2x32x16xbf16, #tpu.memory_space<vmem>>, vector<1x32x16xbf16>
    %90 = vector.shape_cast %89 : vector<1x32x16xbf16> to vector<32x16xbf16>
    %cst_62 = arith.constant dense<0.000000e+00> : vector<16x16xf32>
    %91 = tpu.matmul %28, %90, %cst_62 {dimension_numbers = #tpu.dot_dimension_numbers<[1], [0], [0], [1], [0, 0, 1, 1], [], []>} : vector<16x32xbf16>, vector<32x16xbf16>, vector<16x16xf32> -> vector<16x16xf32>
    %c1_63 = arith.constant 1 : index
    %c0_64 = arith.constant 0 : index
    %c0_65 = arith.constant 0 : index
    %92 = vector.load %arg11[%c1_63, %c0_64, %c0_65] : memref<2x1x16xf32, #tpu.memory_space<vmem>>, vector<1x1x16xf32>
    %93 = vector.shape_cast %92 : vector<1x1x16xf32> to vector<1x16xf32>
    %94 = vector.broadcast %93 : vector<1x16xf32> to vector<16x16xf32>
    %95 = arith.addf %91, %94 : vector<16x16xf32>
    %96 = arith.truncf %81 : vector<16x16xf32> to vector<16x16xbf16>
    %97 = arith.truncf %88 : vector<16x16xf32> to vector<16x16xbf16>
    %cst_66 = arith.constant dense<0.000000e+00> : vector<16x16xf32>
    %98 = tpu.matmul %96, %97, %cst_66 {dimension_numbers = #tpu.dot_dimension_numbers<[1], [1], [0], [0], [0, 0, 1, 0], [], []>} : vector<16x16xbf16>, vector<16x16xbf16>, vector<16x16xf32> -> vector<16x16xf32>
    %c1_67 = arith.constant 1 : index
    %c0_68 = arith.constant 0 : index
    %c0_69 = arith.constant 0 : index
    %99 = vector.load %arg12[%c1_67, %c0_68, %c0_69] : memref<2x16x16xf32, #tpu.memory_space<vmem>>, vector<1x16x16xf32>
    %100 = vector.shape_cast %99 : vector<1x16x16xf32> to vector<16x16xf32>
    %101 = arith.addf %98, %100 : vector<16x16xf32>
    %cst_70 = arith.constant dense<0xFF800000> : vector<16xf32>
    %102 = vector.multi_reduction <maximumf>, %101, %cst_70 [1] : vector<16x16xf32> to vector<16xf32>
    %103 = vector.shape_cast %102 : vector<16xf32> to vector<16x1xf32>
    %104 = vector.broadcast %103 : vector<16x1xf32> to vector<16x16xf32>
    %105 = arith.subf %101, %104 : vector<16x16xf32>
    %106 = math.exp %105 : vector<16x16xf32>
    %cst_71 = arith.constant dense<0.000000e+00> : vector<16xf32>
    %107 = vector.multi_reduction <add>, %106, %cst_71 [1] : vector<16x16xf32> to vector<16xf32>
    %108 = vector.shape_cast %107 : vector<16xf32> to vector<16x1xf32>
    %109 = tpu.reciprocal %108 {approx = true} : vector<16x1xf32> -> vector<16x1xf32>
    %110 = vector.broadcast %109 : vector<16x1xf32> to vector<16x16xf32>
    %111 = arith.mulf %106, %110 : vector<16x16xf32>
    %112 = arith.truncf %111 : vector<16x16xf32> to vector<16x16xbf16>
    %113 = arith.truncf %95 : vector<16x16xf32> to vector<16x16xbf16>
    %cst_72 = arith.constant dense<0.000000e+00> : vector<16x16xf32>
    %114 = tpu.matmul %112, %113, %cst_72 {dimension_numbers = #tpu.dot_dimension_numbers<[1], [0], [0], [1], [0, 0, 1, 1], [], []>} : vector<16x16xbf16>, vector<16x16xbf16>, vector<16x16xf32> -> vector<16x16xf32>
    %115 = arith.truncf %114 : vector<16x16xf32> to vector<16x16xbf16>
    %c1_73 = arith.constant 1 : index
    %c0_74 = arith.constant 0 : index
    %c0_75 = arith.constant 0 : index
    %116 = vector.load %arg13[%c1_73, %c0_74, %c0_75] : memref<2x16x32xbf16, #tpu.memory_space<vmem>>, vector<1x16x32xbf16>
    %117 = vector.shape_cast %116 : vector<1x16x32xbf16> to vector<16x32xbf16>
    %cst_76 = arith.constant dense<0.000000e+00> : vector<16x32xf32>
    %118 = tpu.matmul %115, %117, %cst_76 {dimension_numbers = #tpu.dot_dimension_numbers<[1], [0], [0], [1], [0, 0, 1, 1], [], []>} : vector<16x16xbf16>, vector<16x32xbf16>, vector<16x32xf32> -> vector<16x32xf32>
    %119 = arith.addf %74, %118 : vector<16x32xf32>
    %c0_77 = arith.constant 0 : index
    %c0_78 = arith.constant 0 : index
    %120 = vector.load %arg14[%c0_77, %c0_78] : memref<1x32xf32, #tpu.memory_space<vmem>>, vector<1x32xf32>
    %121 = vector.broadcast %120 : vector<1x32xf32> to vector<16x32xf32>
    %122 = arith.addf %119, %121 : vector<16x32xf32>
    %c0_79 = arith.constant 0 : index
    %c0_80 = arith.constant 0 : index
    %123 = vector.load %arg5[%c0_79, %c0_80] : memref<16x16xbf16, #tpu.memory_space<vmem>>, vector<16x16xbf16>
    %124 = arith.truncf %122 : vector<16x32xf32> to vector<16x32xbf16>
    %cst_81 = arith.constant dense<0.000000e+00> : vector<16x32xf32>
    %125 = tpu.matmul %123, %124, %cst_81 {dimension_numbers = #tpu.dot_dimension_numbers<[1], [0], [0], [1], [0, 0, 1, 1], [], []>} : vector<16x16xbf16>, vector<16x32xbf16>, vector<16x32xf32> -> vector<16x32xf32>
    %126 = arith.addf %2, %125 : vector<16x32xf32>
    %c0_82 = arith.constant 0 : index
    %c0_83 = arith.constant 0 : index
    %127 = vector.load %arg15[%c0_82, %c0_83] : memref<1x32xf32, #tpu.memory_space<vmem>>, vector<1x32xf32>
    %c0_84 = arith.constant 0 : index
    %c0_85 = arith.constant 0 : index
    %128 = vector.load %arg16[%c0_84, %c0_85] : memref<1x32xf32, #tpu.memory_space<vmem>>, vector<1x32xf32>
    %cst_86 = arith.constant dense<0.000000e+00> : vector<16xf32>
    %129 = vector.multi_reduction <add>, %126, %cst_86 [1] : vector<16x32xf32> to vector<16xf32>
    %130 = vector.shape_cast %129 : vector<16xf32> to vector<16x1xf32>
    %cst_87 = arith.constant 3.200000e+01 : f32
    %131 = vector.broadcast %cst_87 : f32 to vector<16x1xf32>
    %132 = arith.divf %130, %131 : vector<16x1xf32>
    %133 = vector.broadcast %132 : vector<16x1xf32> to vector<16x32xf32>
    %134 = arith.subf %126, %133 : vector<16x32xf32>
    %135 = arith.mulf %134, %134 : vector<16x32xf32>
    %cst_88 = arith.constant dense<0.000000e+00> : vector<16xf32>
    %136 = vector.multi_reduction <add>, %135, %cst_88 [1] : vector<16x32xf32> to vector<16xf32>
    %137 = vector.shape_cast %136 : vector<16xf32> to vector<16x1xf32>
    %cst_89 = arith.constant 3.200000e+01 : f32
    %138 = vector.broadcast %cst_89 : f32 to vector<16x1xf32>
    %139 = arith.divf %137, %138 : vector<16x1xf32>
    %cst_90 = arith.constant 9.99999997E-7 : f32
    %140 = vector.broadcast %cst_90 : f32 to vector<16x1xf32>
    %141 = arith.addf %139, %140 : vector<16x1xf32>
    %142 = math.rsqrt %141 : vector<16x1xf32>
    %143 = vector.broadcast %142 : vector<16x1xf32> to vector<16x32xf32>
    %144 = arith.mulf %134, %143 : vector<16x32xf32>
    %145 = vector.broadcast %127 : vector<1x32xf32> to vector<16x32xf32>
    %146 = arith.mulf %144, %145 : vector<16x32xf32>
    %147 = vector.broadcast %128 : vector<1x32xf32> to vector<16x32xf32>
    %148 = arith.addf %146, %147 : vector<16x32xf32>
    %149 = arith.truncf %148 : vector<16x32xf32> to vector<16x32xbf16>
    %c0_91 = arith.constant 0 : index
    %c0_92 = arith.constant 0 : index
    %150 = vector.load %arg17[%c0_91, %c0_92] : memref<32x64xbf16, #tpu.memory_space<vmem>>, vector<32x64xbf16>
    %cst_93 = arith.constant dense<0.000000e+00> : vector<16x64xf32>
    %151 = tpu.matmul %149, %150, %cst_93 {dimension_numbers = #tpu.dot_dimension_numbers<[1], [0], [0], [1], [0, 0, 1, 1], [], []>} : vector<16x32xbf16>, vector<32x64xbf16>, vector<16x64xf32> -> vector<16x64xf32>
    %c0_94 = arith.constant 0 : index
    %c0_95 = arith.constant 0 : index
    %152 = vector.load %arg18[%c0_94, %c0_95] : memref<1x64xf32, #tpu.memory_space<vmem>>, vector<1x64xf32>
    %153 = vector.broadcast %152 : vector<1x64xf32> to vector<16x64xf32>
    %154 = arith.addf %151, %153 : vector<16x64xf32>
    %cst_96 = arith.constant 0.707106769 : f32
    %155 = vector.broadcast %cst_96 : f32 to vector<16x64xf32>
    %156 = arith.mulf %154, %155 : vector<16x64xf32>
    %157 = math.absf %156 : vector<16x64xf32>
    %cst_97 = arith.constant 0.327591091 : f32
    %158 = vector.broadcast %cst_97 : f32 to vector<16x64xf32>
    %159 = arith.mulf %158, %157 : vector<16x64xf32>
    %cst_98 = arith.constant 1.000000e+00 : f32
    %160 = vector.broadcast %cst_98 : f32 to vector<16x64xf32>
    %161 = arith.addf %160, %159 : vector<16x64xf32>
    %cst_99 = arith.constant 1.000000e+00 : f32
    %162 = vector.broadcast %cst_99 : f32 to vector<16x64xf32>
    %163 = arith.divf %162, %161 : vector<16x64xf32>
    %cst_100 = arith.constant 1.06140542 : f32
    %164 = vector.broadcast %cst_100 : f32 to vector<16x64xf32>
    %165 = arith.mulf %164, %163 : vector<16x64xf32>
    %cst_101 = arith.constant 1.45315206 : f32
    %166 = vector.broadcast %cst_101 : f32 to vector<16x64xf32>
    %167 = arith.subf %165, %166 : vector<16x64xf32>
    %168 = arith.mulf %167, %163 : vector<16x64xf32>
    %cst_102 = arith.constant 1.42141378 : f32
    %169 = vector.broadcast %cst_102 : f32 to vector<16x64xf32>
    %170 = arith.addf %168, %169 : vector<16x64xf32>
    %171 = arith.mulf %170, %163 : vector<16x64xf32>
    %cst_103 = arith.constant 0.284496725 : f32
    %172 = vector.broadcast %cst_103 : f32 to vector<16x64xf32>
    %173 = arith.subf %171, %172 : vector<16x64xf32>
    %174 = arith.mulf %173, %163 : vector<16x64xf32>
    %cst_104 = arith.constant 0.254829586 : f32
    %175 = vector.broadcast %cst_104 : f32 to vector<16x64xf32>
    %176 = arith.addf %174, %175 : vector<16x64xf32>
    %177 = arith.mulf %176, %163 : vector<16x64xf32>
    %cst_105 = arith.constant 0.000000e+00 : f32
    %178 = vector.broadcast %cst_105 : f32 to vector<16x64xf32>
    %179 = arith.subf %178, %157 : vector<16x64xf32>
    %180 = arith.mulf %179, %157 : vector<16x64xf32>
    %181 = math.exp %180 : vector<16x64xf32>
    %182 = arith.mulf %177, %181 : vector<16x64xf32>
    %cst_106 = arith.constant 1.000000e+00 : f32
    %183 = vector.broadcast %cst_106 : f32 to vector<16x64xf32>
    %184 = arith.subf %183, %182 : vector<16x64xf32>
    %cst_107 = arith.constant 0.000000e+00 : f32
    %185 = vector.broadcast %cst_107 : f32 to vector<16x64xf32>
    %186 = arith.cmpf olt, %156, %185 : vector<16x64xf32>
    %cst_108 = arith.constant 0.000000e+00 : f32
    %187 = vector.broadcast %cst_108 : f32 to vector<16x64xf32>
    %188 = arith.subf %187, %184 : vector<16x64xf32>
    %189 = arith.select %186, %188, %184 : vector<16x64xi1>, vector<16x64xf32>
    %cst_109 = arith.constant 5.000000e-01 : f32
    %190 = vector.broadcast %cst_109 : f32 to vector<16x64xf32>
    %191 = arith.mulf %190, %154 : vector<16x64xf32>
    %cst_110 = arith.constant 1.000000e+00 : f32
    %192 = vector.broadcast %cst_110 : f32 to vector<16x64xf32>
    %193 = arith.addf %192, %189 : vector<16x64xf32>
    %194 = arith.mulf %191, %193 : vector<16x64xf32>
    %195 = arith.truncf %194 : vector<16x64xf32> to vector<16x64xbf16>
    %c0_111 = arith.constant 0 : index
    %c0_112 = arith.constant 0 : index
    %196 = vector.load %arg19[%c0_111, %c0_112] : memref<64x32xbf16, #tpu.memory_space<vmem>>, vector<64x32xbf16>
    %cst_113 = arith.constant dense<0.000000e+00> : vector<16x32xf32>
    %197 = tpu.matmul %195, %196, %cst_113 {dimension_numbers = #tpu.dot_dimension_numbers<[1], [0], [0], [1], [0, 0, 1, 1], [], []>} : vector<16x64xbf16>, vector<64x32xbf16>, vector<16x32xf32> -> vector<16x32xf32>
    %c0_114 = arith.constant 0 : index
    %c0_115 = arith.constant 0 : index
    %198 = vector.load %arg20[%c0_114, %c0_115] : memref<1x32xf32, #tpu.memory_space<vmem>>, vector<1x32xf32>
    %199 = vector.broadcast %198 : vector<1x32xf32> to vector<16x32xf32>
    %200 = arith.addf %197, %199 : vector<16x32xf32>
    %201 = arith.addf %126, %200 : vector<16x32xf32>
    %202 = arith.truncf %201 : vector<16x32xf32> to vector<16x32xbf16>
    %c0_116 = arith.constant 0 : index
    %c0_117 = arith.constant 0 : index
    %c0_118 = arith.constant 0 : index
    %203 = vector.load %arg21[%c0_116, %c0_117, %c0_118] : memref<1x16x32xbf16, #tpu.memory_space<vmem>>, vector<1x16x32xbf16>
    %204 = vector.shape_cast %203 : vector<1x16x32xbf16> to vector<16x32xbf16>
    %205 = vector.shape_cast %202 : vector<16x32xbf16> to vector<1x16x32xbf16>
    tpu.vector_store %arg21[%c0_116, %c0_117, %c0_118], %205 {strides = array<i32>} : memref<1x16x32xbf16, #tpu.memory_space<vmem>>, vector<1x16x32xbf16>,
    return
  }
  func.func @transform_0(%arg0: i32) -> (i32, i32, i32) {
    %c0_i32 = arith.constant 0 : i32
    %c0_i32_0 = arith.constant 0 : i32
    %c0_i32_1 = arith.constant 0 : i32
    return %arg0, %c0_i32, %c0_i32_0 : i32, i32, i32
  }
  func.func @transform_1(%arg0: i32) -> (i32, i32) {
    %c0_i32 = arith.constant 0 : i32
    %c0_i32_0 = arith.constant 0 : i32
    %c0_i32_1 = arith.constant 0 : i32
    return %c0_i32, %c0_i32_0 : i32, i32
  }
  func.func @transform_2(%arg0: i32) -> (i32, i32) {
    %c0_i32 = arith.constant 0 : i32
    %c0_i32_0 = arith.constant 0 : i32
    %c0_i32_1 = arith.constant 0 : i32
    return %c0_i32, %c0_i32_0 : i32, i32
  }
  func.func @transform_3(%arg0: i32) -> (i32, i32) {
    %c0_i32 = arith.constant 0 : i32
    %c0_i32_0 = arith.constant 0 : i32
    %c0_i32_1 = arith.constant 0 : i32
    return %c0_i32, %c0_i32_0 : i32, i32
  }
  func.func @transform_4(%arg0: i32) -> (i32, i32) {
    %c0_i32 = arith.constant 0 : i32
    %c0_i32_0 = arith.constant 0 : i32
    %c0_i32_1 = arith.constant 0 : i32
    return %c0_i32, %c0_i32_0 : i32, i32
  }
  func.func @transform_5(%arg0: i32) -> (i32, i32, i32) {
    %c0_i32 = arith.constant 0 : i32
    %c0_i32_0 = arith.constant 0 : i32
    %c0_i32_1 = arith.constant 0 : i32
    %c0_i32_2 = arith.constant 0 : i32
    return %c0_i32, %c0_i32_0, %c0_i32_1 : i32, i32, i32
  }
  func.func @transform_6(%arg0: i32) -> (i32, i32, i32) {
    %c0_i32 = arith.constant 0 : i32
    %c0_i32_0 = arith.constant 0 : i32
    %c0_i32_1 = arith.constant 0 : i32
    %c0_i32_2 = arith.constant 0 : i32
    return %c0_i32, %c0_i32_0, %c0_i32_1 : i32, i32, i32
  }
  func.func @transform_7(%arg0: i32) -> (i32, i32, i32) {
    %c0_i32 = arith.constant 0 : i32
    %c0_i32_0 = arith.constant 0 : i32
    %c0_i32_1 = arith.constant 0 : i32
    %c0_i32_2 = arith.constant 0 : i32
    return %c0_i32, %c0_i32_0, %c0_i32_1 : i32, i32, i32
  }
  func.func @transform_8(%arg0: i32) -> (i32, i32, i32) {
    %c0_i32 = arith.constant 0 : i32
    %c0_i32_0 = arith.constant 0 : i32
    %c0_i32_1 = arith.constant 0 : i32
    %c0_i32_2 = arith.constant 0 : i32
    return %c0_i32, %c0_i32_0, %c0_i32_1 : i32, i32, i32
  }
  func.func @transform_9(%arg0: i32) -> (i32, i32, i32) {
    %c0_i32 = arith.constant 0 : i32
    %c0_i32_0 = arith.constant 0 : i32
    %c0_i32_1 = arith.constant 0 : i32
    %c0_i32_2 = arith.constant 0 : i32
    return %c0_i32, %c0_i32_0, %c0_i32_1 : i32, i32, i32
  }
  func.func @transform_10(%arg0: i32) -> (i32, i32, i32) {
    %c0_i32 = arith.constant 0 : i32
    %c0_i32_0 = arith.constant 0 : i32
    %c0_i32_1 = arith.constant 0 : i32
    %c0_i32_2 = arith.constant 0 : i32
    return %c0_i32, %c0_i32_0, %c0_i32_1 : i32, i32, i32
  }
  func.func @transform_11(%arg0: i32) -> (i32, i32, i32) {
    %c0_i32 = arith.constant 0 : i32
    %c0_i32_0 = arith.constant 0 : i32
    %c0_i32_1 = arith.constant 0 : i32
    %c0_i32_2 = arith.constant 0 : i32
    return %c0_i32, %c0_i32_0, %c0_i32_1 : i32, i32, i32
  }
  func.func @transform_12(%arg0: i32) -> (i32, i32, i32) {
    %c0_i32 = arith.constant 0 : i32
    %c0_i32_0 = arith.constant 0 : i32
    %c0_i32_1 = arith.constant 0 : i32
    %c0_i32_2 = arith.constant 0 : i32
    return %c0_i32, %c0_i32_0, %c0_i32_1 : i32, i32, i32
  }
  func.func @transform_13(%arg0: i32) -> (i32, i32) {
    %c0_i32 = arith.constant 0 : i32
    %c0_i32_0 = arith.constant 0 : i32
    %c0_i32_1 = arith.constant 0 : i32
    return %c0_i32, %c0_i32_0 : i32, i32
  }
  func.func @transform_14(%arg0: i32) -> (i32, i32) {
    %c0_i32 = arith.constant 0 : i32
    %c0_i32_0 = arith.constant 0 : i32
    %c0_i32_1 = arith.constant 0 : i32
    return %c0_i32, %c0_i32_0 : i32, i32
  }
  func.func @transform_15(%arg0: i32) -> (i32, i32) {
    %c0_i32 = arith.constant 0 : i32
    %c0_i32_0 = arith.constant 0 : i32
    %c0_i32_1 = arith.constant 0 : i32
    return %c0_i32, %c0_i32_0 : i32, i32
  }
  func.func @transform_16(%arg0: i32) -> (i32, i32) {
    %c0_i32 = arith.constant 0 : i32
    %c0_i32_0 = arith.constant 0 : i32
    %c0_i32_1 = arith.constant 0 : i32
    return %c0_i32, %c0_i32_0 : i32, i32
  }
  func.func @transform_17(%arg0: i32) -> (i32, i32) {
    %c0_i32 = arith.constant 0 : i32
    %c0_i32_0 = arith.constant 0 : i32
    %c0_i32_1 = arith.constant 0 : i32
    return %c0_i32, %c0_i32_0 : i32, i32
  }
  func.func @transform_18(%arg0: i32) -> (i32, i32) {
    %c0_i32 = arith.constant 0 : i32
    %c0_i32_0 = arith.constant 0 : i32
    %c0_i32_1 = arith.constant 0 : i32
    return %c0_i32, %c0_i32_0 : i32, i32
  }
  func.func @transform_19(%arg0: i32) -> (i32, i32) {
    %c0_i32 = arith.constant 0 : i32
    %c0_i32_0 = arith.constant 0 : i32
    %c0_i32_1 = arith.constant 0 : i32
    return %c0_i32, %c0_i32_0 : i32, i32
  }
  func.func @transform_20(%arg0: i32) -> (i32, i32, i32) {
    %c0_i32 = arith.constant 0 : i32
    %c0_i32_0 = arith.constant 0 : i32
    %c0_i32_1 = arith.constant 0 : i32
    return %arg0, %c0_i32, %c0_i32_0 : i32, i32, i32
  }
}

module attributes {stable_mosaic.version = 11 : i64} {
  func.func @_swin_block_kernel(%arg0: i32, %arg1: memref<1x4x64xbf16, #tpu.memory_space<vmem>>, %arg2: memref<1x64xf32, #tpu.memory_space<vmem>>, %arg3: memref<1x64xf32, #tpu.memory_space<vmem>>, %arg4: memref<4x4xbf16, #tpu.memory_space<vmem>>, %arg5: memref<4x4xbf16, #tpu.memory_space<vmem>>, %arg6: memref<4x64x16xbf16, #tpu.memory_space<vmem>>, %arg7: memref<4x64x16xbf16, #tpu.memory_space<vmem>>, %arg8: memref<4x64x16xbf16, #tpu.memory_space<vmem>>, %arg9: memref<4x1x16xf32, #tpu.memory_space<vmem>>, %arg10: memref<4x1x16xf32, #tpu.memory_space<vmem>>, %arg11: memref<4x1x16xf32, #tpu.memory_space<vmem>>, %arg12: memref<4x4x4xf32, #tpu.memory_space<vmem>>, %arg13: memref<4x16x64xbf16, #tpu.memory_space<vmem>>, %arg14: memref<1x64xf32, #tpu.memory_space<vmem>>, %arg15: memref<1x64xf32, #tpu.memory_space<vmem>>, %arg16: memref<1x64xf32, #tpu.memory_space<vmem>>, %arg17: memref<64x128xbf16, #tpu.memory_space<vmem>>, %arg18: memref<1x128xf32, #tpu.memory_space<vmem>>, %arg19: memref<128x64xbf16, #tpu.memory_space<vmem>>, %arg20: memref<1x64xf32, #tpu.memory_space<vmem>>, %arg21: memref<1x4x64xbf16, #tpu.memory_space<vmem>>) attributes {dimension_semantics = [#tpu.dimension_semantics<parallel>], iteration_bounds = array<i64: 2>, scalar_prefetch = 0 : i64, scratch_operands = 0 : i64, tpu.core_type = #tpu.core_type<tc>, window_params = [{transform_indices = @transform_0, window_bounds = array<i64: 1, 4, 64>}, {pipeline_mode = #tpu.pipeline_mode<synchronous>, transform_indices = @transform_1, window_bounds = array<i64: 1, 64>}, {pipeline_mode = #tpu.pipeline_mode<synchronous>, transform_indices = @transform_2, window_bounds = array<i64: 1, 64>}, {pipeline_mode = #tpu.pipeline_mode<synchronous>, transform_indices = @transform_3, window_bounds = array<i64: 4, 4>}, {pipeline_mode = #tpu.pipeline_mode<synchronous>, transform_indices = @transform_4, window_bounds = array<i64: 4, 4>}, {pipeline_mode = #tpu.pipeline_mode<synchronous>, transform_indices = @transform_5, window_bounds = array<i64: 4, 64, 16>}, {pipeline_mode = #tpu.pipeline_mode<synchronous>, transform_indices = @transform_6, window_bounds = array<i64: 4, 64, 16>}, {pipeline_mode = #tpu.pipeline_mode<synchronous>, transform_indices = @transform_7, window_bounds = array<i64: 4, 64, 16>}, {pipeline_mode = #tpu.pipeline_mode<synchronous>, transform_indices = @transform_8, window_bounds = array<i64: 4, 1, 16>}, {pipeline_mode = #tpu.pipeline_mode<synchronous>, transform_indices = @transform_9, window_bounds = array<i64: 4, 1, 16>}, {pipeline_mode = #tpu.pipeline_mode<synchronous>, transform_indices = @transform_10, window_bounds = array<i64: 4, 1, 16>}, {pipeline_mode = #tpu.pipeline_mode<synchronous>, transform_indices = @transform_11, window_bounds = array<i64: 4, 4, 4>}, {pipeline_mode = #tpu.pipeline_mode<synchronous>, transform_indices = @transform_12, window_bounds = array<i64: 4, 16, 64>}, {pipeline_mode = #tpu.pipeline_mode<synchronous>, transform_indices = @transform_13, window_bounds = array<i64: 1, 64>}, {pipeline_mode = #tpu.pipeline_mode<synchronous>, transform_indices = @transform_14, window_bounds = array<i64: 1, 64>}, {pipeline_mode = #tpu.pipeline_mode<synchronous>, transform_indices = @transform_15, window_bounds = array<i64: 1, 64>}, {pipeline_mode = #tpu.pipeline_mode<synchronous>, transform_indices = @transform_16, window_bounds = array<i64: 64, 128>}, {pipeline_mode = #tpu.pipeline_mode<synchronous>, transform_indices = @transform_17, window_bounds = array<i64: 1, 128>}, {pipeline_mode = #tpu.pipeline_mode<synchronous>, transform_indices = @transform_18, window_bounds = array<i64: 128, 64>}, {pipeline_mode = #tpu.pipeline_mode<synchronous>, transform_indices = @transform_19, window_bounds = array<i64: 1, 64>}, {transform_indices = @transform_20, window_bounds = array<i64: 1, 4, 64>}]} {
    %c0 = arith.constant 0 : index
    %c0_0 = arith.constant 0 : index
    %c0_1 = arith.constant 0 : index
    %0 = vector.load %arg1[%c0, %c0_0, %c0_1] : memref<1x4x64xbf16, #tpu.memory_space<vmem>>, vector<1x4x64xbf16>
    %1 = vector.shape_cast %0 : vector<1x4x64xbf16> to vector<4x64xbf16>
    %2 = arith.extf %1 : vector<4x64xbf16> to vector<4x64xf32>
    %c0_2 = arith.constant 0 : index
    %c0_3 = arith.constant 0 : index
    %3 = vector.load %arg2[%c0_2, %c0_3] : memref<1x64xf32, #tpu.memory_space<vmem>>, vector<1x64xf32>
    %c0_4 = arith.constant 0 : index
    %c0_5 = arith.constant 0 : index
    %4 = vector.load %arg3[%c0_4, %c0_5] : memref<1x64xf32, #tpu.memory_space<vmem>>, vector<1x64xf32>
    %cst = arith.constant dense<0.000000e+00> : vector<4xf32>
    %5 = vector.multi_reduction <add>, %2, %cst [1] : vector<4x64xf32> to vector<4xf32>
    %6 = vector.shape_cast %5 : vector<4xf32> to vector<4x1xf32>
    %cst_6 = arith.constant 6.400000e+01 : f32
    %7 = vector.broadcast %cst_6 : f32 to vector<4x1xf32>
    %8 = arith.divf %6, %7 : vector<4x1xf32>
    %9 = vector.broadcast %8 : vector<4x1xf32> to vector<4x64xf32>
    %10 = arith.subf %2, %9 : vector<4x64xf32>
    %11 = arith.mulf %10, %10 : vector<4x64xf32>
    %cst_7 = arith.constant dense<0.000000e+00> : vector<4xf32>
    %12 = vector.multi_reduction <add>, %11, %cst_7 [1] : vector<4x64xf32> to vector<4xf32>
    %13 = vector.shape_cast %12 : vector<4xf32> to vector<4x1xf32>
    %cst_8 = arith.constant 6.400000e+01 : f32
    %14 = vector.broadcast %cst_8 : f32 to vector<4x1xf32>
    %15 = arith.divf %13, %14 : vector<4x1xf32>
    %cst_9 = arith.constant 9.99999997E-7 : f32
    %16 = vector.broadcast %cst_9 : f32 to vector<4x1xf32>
    %17 = arith.addf %15, %16 : vector<4x1xf32>
    %18 = math.rsqrt %17 : vector<4x1xf32>
    %19 = vector.broadcast %18 : vector<4x1xf32> to vector<4x64xf32>
    %20 = arith.mulf %10, %19 : vector<4x64xf32>
    %21 = vector.broadcast %3 : vector<1x64xf32> to vector<4x64xf32>
    %22 = arith.mulf %20, %21 : vector<4x64xf32>
    %23 = vector.broadcast %4 : vector<1x64xf32> to vector<4x64xf32>
    %24 = arith.addf %22, %23 : vector<4x64xf32>
    %25 = arith.truncf %24 : vector<4x64xf32> to vector<4x64xbf16>
    %cst_10 = arith.constant 0.000000e+00 : f32
    %26 = vector.broadcast %cst_10 : f32 to vector<4x64xf32>
    %c0_11 = arith.constant 0 : index
    %c0_12 = arith.constant 0 : index
    %c0_13 = arith.constant 0 : index
    %27 = vector.load %arg6[%c0_11, %c0_12, %c0_13] : memref<4x64x16xbf16, #tpu.memory_space<vmem>>, vector<1x64x16xbf16>
    %28 = vector.shape_cast %27 : vector<1x64x16xbf16> to vector<64x16xbf16>
    %cst_14 = arith.constant dense<0.000000e+00> : vector<4x16xf32>
    %29 = tpu.matmul %25, %28, %cst_14 {dimension_numbers = #tpu.dot_dimension_numbers<[1], [0], [0], [1], [0, 0, 1, 1], [], []>} : vector<4x64xbf16>, vector<64x16xbf16>, vector<4x16xf32> -> vector<4x16xf32>
    %c0_15 = arith.constant 0 : index
    %c0_16 = arith.constant 0 : index
    %c0_17 = arith.constant 0 : index
    %30 = vector.load %arg9[%c0_15, %c0_16, %c0_17] : memref<4x1x16xf32, #tpu.memory_space<vmem>>, vector<1x1x16xf32>
    %31 = vector.shape_cast %30 : vector<1x1x16xf32> to vector<1x16xf32>
    %32 = vector.broadcast %31 : vector<1x16xf32> to vector<4x16xf32>
    %33 = arith.addf %29, %32 : vector<4x16xf32>
    %c0_18 = arith.constant 0 : index
    %c0_19 = arith.constant 0 : index
    %c0_20 = arith.constant 0 : index
    %34 = vector.load %arg7[%c0_18, %c0_19, %c0_20] : memref<4x64x16xbf16, #tpu.memory_space<vmem>>, vector<1x64x16xbf16>
    %35 = vector.shape_cast %34 : vector<1x64x16xbf16> to vector<64x16xbf16>
    %cst_21 = arith.constant dense<0.000000e+00> : vector<4x16xf32>
    %36 = tpu.matmul %25, %35, %cst_21 {dimension_numbers = #tpu.dot_dimension_numbers<[1], [0], [0], [1], [0, 0, 1, 1], [], []>} : vector<4x64xbf16>, vector<64x16xbf16>, vector<4x16xf32> -> vector<4x16xf32>
    %c0_22 = arith.constant 0 : index
    %c0_23 = arith.constant 0 : index
    %c0_24 = arith.constant 0 : index
    %37 = vector.load %arg10[%c0_22, %c0_23, %c0_24] : memref<4x1x16xf32, #tpu.memory_space<vmem>>, vector<1x1x16xf32>
    %38 = vector.shape_cast %37 : vector<1x1x16xf32> to vector<1x16xf32>
    %39 = vector.broadcast %38 : vector<1x16xf32> to vector<4x16xf32>
    %40 = arith.addf %36, %39 : vector<4x16xf32>
    %c0_25 = arith.constant 0 : index
    %c0_26 = arith.constant 0 : index
    %c0_27 = arith.constant 0 : index
    %41 = vector.load %arg8[%c0_25, %c0_26, %c0_27] : memref<4x64x16xbf16, #tpu.memory_space<vmem>>, vector<1x64x16xbf16>
    %42 = vector.shape_cast %41 : vector<1x64x16xbf16> to vector<64x16xbf16>
    %cst_28 = arith.constant dense<0.000000e+00> : vector<4x16xf32>
    %43 = tpu.matmul %25, %42, %cst_28 {dimension_numbers = #tpu.dot_dimension_numbers<[1], [0], [0], [1], [0, 0, 1, 1], [], []>} : vector<4x64xbf16>, vector<64x16xbf16>, vector<4x16xf32> -> vector<4x16xf32>
    %c0_29 = arith.constant 0 : index
    %c0_30 = arith.constant 0 : index
    %c0_31 = arith.constant 0 : index
    %44 = vector.load %arg11[%c0_29, %c0_30, %c0_31] : memref<4x1x16xf32, #tpu.memory_space<vmem>>, vector<1x1x16xf32>
    %45 = vector.shape_cast %44 : vector<1x1x16xf32> to vector<1x16xf32>
    %46 = vector.broadcast %45 : vector<1x16xf32> to vector<4x16xf32>
    %47 = arith.addf %43, %46 : vector<4x16xf32>
    %48 = arith.truncf %33 : vector<4x16xf32> to vector<4x16xbf16>
    %49 = arith.truncf %40 : vector<4x16xf32> to vector<4x16xbf16>
    %cst_32 = arith.constant dense<0.000000e+00> : vector<4x4xf32>
    %50 = tpu.matmul %48, %49, %cst_32 {dimension_numbers = #tpu.dot_dimension_numbers<[1], [1], [0], [0], [0, 0, 1, 0], [], []>} : vector<4x16xbf16>, vector<4x16xbf16>, vector<4x4xf32> -> vector<4x4xf32>
    %c0_33 = arith.constant 0 : index
    %c0_34 = arith.constant 0 : index
    %c0_35 = arith.constant 0 : index
    %51 = vector.load %arg12[%c0_33, %c0_34, %c0_35] : memref<4x4x4xf32, #tpu.memory_space<vmem>>, vector<1x4x4xf32>
    %52 = vector.shape_cast %51 : vector<1x4x4xf32> to vector<4x4xf32>
    %53 = arith.addf %50, %52 : vector<4x4xf32>
    %cst_36 = arith.constant dense<0xFF800000> : vector<4xf32>
    %54 = vector.multi_reduction <maximumf>, %53, %cst_36 [1] : vector<4x4xf32> to vector<4xf32>
    %55 = vector.shape_cast %54 : vector<4xf32> to vector<4x1xf32>
    %56 = vector.broadcast %55 : vector<4x1xf32> to vector<4x4xf32>
    %57 = arith.subf %53, %56 : vector<4x4xf32>
    %58 = math.exp %57 : vector<4x4xf32>
    %cst_37 = arith.constant dense<0.000000e+00> : vector<4xf32>
    %59 = vector.multi_reduction <add>, %58, %cst_37 [1] : vector<4x4xf32> to vector<4xf32>
    %60 = vector.shape_cast %59 : vector<4xf32> to vector<4x1xf32>
    %61 = tpu.reciprocal %60 {approx = true} : vector<4x1xf32> -> vector<4x1xf32>
    %62 = vector.broadcast %61 : vector<4x1xf32> to vector<4x4xf32>
    %63 = arith.mulf %58, %62 : vector<4x4xf32>
    %64 = arith.truncf %63 : vector<4x4xf32> to vector<4x4xbf16>
    %65 = arith.truncf %47 : vector<4x16xf32> to vector<4x16xbf16>
    %cst_38 = arith.constant dense<0.000000e+00> : vector<4x16xf32>
    %66 = tpu.matmul %64, %65, %cst_38 {dimension_numbers = #tpu.dot_dimension_numbers<[1], [0], [0], [1], [0, 0, 1, 1], [], []>} : vector<4x4xbf16>, vector<4x16xbf16>, vector<4x16xf32> -> vector<4x16xf32>
    %67 = arith.truncf %66 : vector<4x16xf32> to vector<4x16xbf16>
    %c0_39 = arith.constant 0 : index
    %c0_40 = arith.constant 0 : index
    %c0_41 = arith.constant 0 : index
    %68 = vector.load %arg13[%c0_39, %c0_40, %c0_41] : memref<4x16x64xbf16, #tpu.memory_space<vmem>>, vector<1x16x64xbf16>
    %69 = vector.shape_cast %68 : vector<1x16x64xbf16> to vector<16x64xbf16>
    %cst_42 = arith.constant dense<0.000000e+00> : vector<4x64xf32>
    %70 = tpu.matmul %67, %69, %cst_42 {dimension_numbers = #tpu.dot_dimension_numbers<[1], [0], [0], [1], [0, 0, 1, 1], [], []>} : vector<4x16xbf16>, vector<16x64xbf16>, vector<4x64xf32> -> vector<4x64xf32>
    %71 = arith.addf %26, %70 : vector<4x64xf32>
    %c1 = arith.constant 1 : index
    %c0_43 = arith.constant 0 : index
    %c0_44 = arith.constant 0 : index
    %72 = vector.load %arg6[%c1, %c0_43, %c0_44] : memref<4x64x16xbf16, #tpu.memory_space<vmem>>, vector<1x64x16xbf16>
    %73 = vector.shape_cast %72 : vector<1x64x16xbf16> to vector<64x16xbf16>
    %cst_45 = arith.constant dense<0.000000e+00> : vector<4x16xf32>
    %74 = tpu.matmul %25, %73, %cst_45 {dimension_numbers = #tpu.dot_dimension_numbers<[1], [0], [0], [1], [0, 0, 1, 1], [], []>} : vector<4x64xbf16>, vector<64x16xbf16>, vector<4x16xf32> -> vector<4x16xf32>
    %c1_46 = arith.constant 1 : index
    %c0_47 = arith.constant 0 : index
    %c0_48 = arith.constant 0 : index
    %75 = vector.load %arg9[%c1_46, %c0_47, %c0_48] : memref<4x1x16xf32, #tpu.memory_space<vmem>>, vector<1x1x16xf32>
    %76 = vector.shape_cast %75 : vector<1x1x16xf32> to vector<1x16xf32>
    %77 = vector.broadcast %76 : vector<1x16xf32> to vector<4x16xf32>
    %78 = arith.addf %74, %77 : vector<4x16xf32>
    %c1_49 = arith.constant 1 : index
    %c0_50 = arith.constant 0 : index
    %c0_51 = arith.constant 0 : index
    %79 = vector.load %arg7[%c1_49, %c0_50, %c0_51] : memref<4x64x16xbf16, #tpu.memory_space<vmem>>, vector<1x64x16xbf16>
    %80 = vector.shape_cast %79 : vector<1x64x16xbf16> to vector<64x16xbf16>
    %cst_52 = arith.constant dense<0.000000e+00> : vector<4x16xf32>
    %81 = tpu.matmul %25, %80, %cst_52 {dimension_numbers = #tpu.dot_dimension_numbers<[1], [0], [0], [1], [0, 0, 1, 1], [], []>} : vector<4x64xbf16>, vector<64x16xbf16>, vector<4x16xf32> -> vector<4x16xf32>
    %c1_53 = arith.constant 1 : index
    %c0_54 = arith.constant 0 : index
    %c0_55 = arith.constant 0 : index
    %82 = vector.load %arg10[%c1_53, %c0_54, %c0_55] : memref<4x1x16xf32, #tpu.memory_space<vmem>>, vector<1x1x16xf32>
    %83 = vector.shape_cast %82 : vector<1x1x16xf32> to vector<1x16xf32>
    %84 = vector.broadcast %83 : vector<1x16xf32> to vector<4x16xf32>
    %85 = arith.addf %81, %84 : vector<4x16xf32>
    %c1_56 = arith.constant 1 : index
    %c0_57 = arith.constant 0 : index
    %c0_58 = arith.constant 0 : index
    %86 = vector.load %arg8[%c1_56, %c0_57, %c0_58] : memref<4x64x16xbf16, #tpu.memory_space<vmem>>, vector<1x64x16xbf16>
    %87 = vector.shape_cast %86 : vector<1x64x16xbf16> to vector<64x16xbf16>
    %cst_59 = arith.constant dense<0.000000e+00> : vector<4x16xf32>
    %88 = tpu.matmul %25, %87, %cst_59 {dimension_numbers = #tpu.dot_dimension_numbers<[1], [0], [0], [1], [0, 0, 1, 1], [], []>} : vector<4x64xbf16>, vector<64x16xbf16>, vector<4x16xf32> -> vector<4x16xf32>
    %c1_60 = arith.constant 1 : index
    %c0_61 = arith.constant 0 : index
    %c0_62 = arith.constant 0 : index
    %89 = vector.load %arg11[%c1_60, %c0_61, %c0_62] : memref<4x1x16xf32, #tpu.memory_space<vmem>>, vector<1x1x16xf32>
    %90 = vector.shape_cast %89 : vector<1x1x16xf32> to vector<1x16xf32>
    %91 = vector.broadcast %90 : vector<1x16xf32> to vector<4x16xf32>
    %92 = arith.addf %88, %91 : vector<4x16xf32>
    %93 = arith.truncf %78 : vector<4x16xf32> to vector<4x16xbf16>
    %94 = arith.truncf %85 : vector<4x16xf32> to vector<4x16xbf16>
    %cst_63 = arith.constant dense<0.000000e+00> : vector<4x4xf32>
    %95 = tpu.matmul %93, %94, %cst_63 {dimension_numbers = #tpu.dot_dimension_numbers<[1], [1], [0], [0], [0, 0, 1, 0], [], []>} : vector<4x16xbf16>, vector<4x16xbf16>, vector<4x4xf32> -> vector<4x4xf32>
    %c1_64 = arith.constant 1 : index
    %c0_65 = arith.constant 0 : index
    %c0_66 = arith.constant 0 : index
    %96 = vector.load %arg12[%c1_64, %c0_65, %c0_66] : memref<4x4x4xf32, #tpu.memory_space<vmem>>, vector<1x4x4xf32>
    %97 = vector.shape_cast %96 : vector<1x4x4xf32> to vector<4x4xf32>
    %98 = arith.addf %95, %97 : vector<4x4xf32>
    %cst_67 = arith.constant dense<0xFF800000> : vector<4xf32>
    %99 = vector.multi_reduction <maximumf>, %98, %cst_67 [1] : vector<4x4xf32> to vector<4xf32>
    %100 = vector.shape_cast %99 : vector<4xf32> to vector<4x1xf32>
    %101 = vector.broadcast %100 : vector<4x1xf32> to vector<4x4xf32>
    %102 = arith.subf %98, %101 : vector<4x4xf32>
    %103 = math.exp %102 : vector<4x4xf32>
    %cst_68 = arith.constant dense<0.000000e+00> : vector<4xf32>
    %104 = vector.multi_reduction <add>, %103, %cst_68 [1] : vector<4x4xf32> to vector<4xf32>
    %105 = vector.shape_cast %104 : vector<4xf32> to vector<4x1xf32>
    %106 = tpu.reciprocal %105 {approx = true} : vector<4x1xf32> -> vector<4x1xf32>
    %107 = vector.broadcast %106 : vector<4x1xf32> to vector<4x4xf32>
    %108 = arith.mulf %103, %107 : vector<4x4xf32>
    %109 = arith.truncf %108 : vector<4x4xf32> to vector<4x4xbf16>
    %110 = arith.truncf %92 : vector<4x16xf32> to vector<4x16xbf16>
    %cst_69 = arith.constant dense<0.000000e+00> : vector<4x16xf32>
    %111 = tpu.matmul %109, %110, %cst_69 {dimension_numbers = #tpu.dot_dimension_numbers<[1], [0], [0], [1], [0, 0, 1, 1], [], []>} : vector<4x4xbf16>, vector<4x16xbf16>, vector<4x16xf32> -> vector<4x16xf32>
    %112 = arith.truncf %111 : vector<4x16xf32> to vector<4x16xbf16>
    %c1_70 = arith.constant 1 : index
    %c0_71 = arith.constant 0 : index
    %c0_72 = arith.constant 0 : index
    %113 = vector.load %arg13[%c1_70, %c0_71, %c0_72] : memref<4x16x64xbf16, #tpu.memory_space<vmem>>, vector<1x16x64xbf16>
    %114 = vector.shape_cast %113 : vector<1x16x64xbf16> to vector<16x64xbf16>
    %cst_73 = arith.constant dense<0.000000e+00> : vector<4x64xf32>
    %115 = tpu.matmul %112, %114, %cst_73 {dimension_numbers = #tpu.dot_dimension_numbers<[1], [0], [0], [1], [0, 0, 1, 1], [], []>} : vector<4x16xbf16>, vector<16x64xbf16>, vector<4x64xf32> -> vector<4x64xf32>
    %116 = arith.addf %71, %115 : vector<4x64xf32>
    %c2 = arith.constant 2 : index
    %c0_74 = arith.constant 0 : index
    %c0_75 = arith.constant 0 : index
    %117 = vector.load %arg6[%c2, %c0_74, %c0_75] : memref<4x64x16xbf16, #tpu.memory_space<vmem>>, vector<1x64x16xbf16>
    %118 = vector.shape_cast %117 : vector<1x64x16xbf16> to vector<64x16xbf16>
    %cst_76 = arith.constant dense<0.000000e+00> : vector<4x16xf32>
    %119 = tpu.matmul %25, %118, %cst_76 {dimension_numbers = #tpu.dot_dimension_numbers<[1], [0], [0], [1], [0, 0, 1, 1], [], []>} : vector<4x64xbf16>, vector<64x16xbf16>, vector<4x16xf32> -> vector<4x16xf32>
    %c2_77 = arith.constant 2 : index
    %c0_78 = arith.constant 0 : index
    %c0_79 = arith.constant 0 : index
    %120 = vector.load %arg9[%c2_77, %c0_78, %c0_79] : memref<4x1x16xf32, #tpu.memory_space<vmem>>, vector<1x1x16xf32>
    %121 = vector.shape_cast %120 : vector<1x1x16xf32> to vector<1x16xf32>
    %122 = vector.broadcast %121 : vector<1x16xf32> to vector<4x16xf32>
    %123 = arith.addf %119, %122 : vector<4x16xf32>
    %c2_80 = arith.constant 2 : index
    %c0_81 = arith.constant 0 : index
    %c0_82 = arith.constant 0 : index
    %124 = vector.load %arg7[%c2_80, %c0_81, %c0_82] : memref<4x64x16xbf16, #tpu.memory_space<vmem>>, vector<1x64x16xbf16>
    %125 = vector.shape_cast %124 : vector<1x64x16xbf16> to vector<64x16xbf16>
    %cst_83 = arith.constant dense<0.000000e+00> : vector<4x16xf32>
    %126 = tpu.matmul %25, %125, %cst_83 {dimension_numbers = #tpu.dot_dimension_numbers<[1], [0], [0], [1], [0, 0, 1, 1], [], []>} : vector<4x64xbf16>, vector<64x16xbf16>, vector<4x16xf32> -> vector<4x16xf32>
    %c2_84 = arith.constant 2 : index
    %c0_85 = arith.constant 0 : index
    %c0_86 = arith.constant 0 : index
    %127 = vector.load %arg10[%c2_84, %c0_85, %c0_86] : memref<4x1x16xf32, #tpu.memory_space<vmem>>, vector<1x1x16xf32>
    %128 = vector.shape_cast %127 : vector<1x1x16xf32> to vector<1x16xf32>
    %129 = vector.broadcast %128 : vector<1x16xf32> to vector<4x16xf32>
    %130 = arith.addf %126, %129 : vector<4x16xf32>
    %c2_87 = arith.constant 2 : index
    %c0_88 = arith.constant 0 : index
    %c0_89 = arith.constant 0 : index
    %131 = vector.load %arg8[%c2_87, %c0_88, %c0_89] : memref<4x64x16xbf16, #tpu.memory_space<vmem>>, vector<1x64x16xbf16>
    %132 = vector.shape_cast %131 : vector<1x64x16xbf16> to vector<64x16xbf16>
    %cst_90 = arith.constant dense<0.000000e+00> : vector<4x16xf32>
    %133 = tpu.matmul %25, %132, %cst_90 {dimension_numbers = #tpu.dot_dimension_numbers<[1], [0], [0], [1], [0, 0, 1, 1], [], []>} : vector<4x64xbf16>, vector<64x16xbf16>, vector<4x16xf32> -> vector<4x16xf32>
    %c2_91 = arith.constant 2 : index
    %c0_92 = arith.constant 0 : index
    %c0_93 = arith.constant 0 : index
    %134 = vector.load %arg11[%c2_91, %c0_92, %c0_93] : memref<4x1x16xf32, #tpu.memory_space<vmem>>, vector<1x1x16xf32>
    %135 = vector.shape_cast %134 : vector<1x1x16xf32> to vector<1x16xf32>
    %136 = vector.broadcast %135 : vector<1x16xf32> to vector<4x16xf32>
    %137 = arith.addf %133, %136 : vector<4x16xf32>
    %138 = arith.truncf %123 : vector<4x16xf32> to vector<4x16xbf16>
    %139 = arith.truncf %130 : vector<4x16xf32> to vector<4x16xbf16>
    %cst_94 = arith.constant dense<0.000000e+00> : vector<4x4xf32>
    %140 = tpu.matmul %138, %139, %cst_94 {dimension_numbers = #tpu.dot_dimension_numbers<[1], [1], [0], [0], [0, 0, 1, 0], [], []>} : vector<4x16xbf16>, vector<4x16xbf16>, vector<4x4xf32> -> vector<4x4xf32>
    %c2_95 = arith.constant 2 : index
    %c0_96 = arith.constant 0 : index
    %c0_97 = arith.constant 0 : index
    %141 = vector.load %arg12[%c2_95, %c0_96, %c0_97] : memref<4x4x4xf32, #tpu.memory_space<vmem>>, vector<1x4x4xf32>
    %142 = vector.shape_cast %141 : vector<1x4x4xf32> to vector<4x4xf32>
    %143 = arith.addf %140, %142 : vector<4x4xf32>
    %cst_98 = arith.constant dense<0xFF800000> : vector<4xf32>
    %144 = vector.multi_reduction <maximumf>, %143, %cst_98 [1] : vector<4x4xf32> to vector<4xf32>
    %145 = vector.shape_cast %144 : vector<4xf32> to vector<4x1xf32>
    %146 = vector.broadcast %145 : vector<4x1xf32> to vector<4x4xf32>
    %147 = arith.subf %143, %146 : vector<4x4xf32>
    %148 = math.exp %147 : vector<4x4xf32>
    %cst_99 = arith.constant dense<0.000000e+00> : vector<4xf32>
    %149 = vector.multi_reduction <add>, %148, %cst_99 [1] : vector<4x4xf32> to vector<4xf32>
    %150 = vector.shape_cast %149 : vector<4xf32> to vector<4x1xf32>
    %151 = tpu.reciprocal %150 {approx = true} : vector<4x1xf32> -> vector<4x1xf32>
    %152 = vector.broadcast %151 : vector<4x1xf32> to vector<4x4xf32>
    %153 = arith.mulf %148, %152 : vector<4x4xf32>
    %154 = arith.truncf %153 : vector<4x4xf32> to vector<4x4xbf16>
    %155 = arith.truncf %137 : vector<4x16xf32> to vector<4x16xbf16>
    %cst_100 = arith.constant dense<0.000000e+00> : vector<4x16xf32>
    %156 = tpu.matmul %154, %155, %cst_100 {dimension_numbers = #tpu.dot_dimension_numbers<[1], [0], [0], [1], [0, 0, 1, 1], [], []>} : vector<4x4xbf16>, vector<4x16xbf16>, vector<4x16xf32> -> vector<4x16xf32>
    %157 = arith.truncf %156 : vector<4x16xf32> to vector<4x16xbf16>
    %c2_101 = arith.constant 2 : index
    %c0_102 = arith.constant 0 : index
    %c0_103 = arith.constant 0 : index
    %158 = vector.load %arg13[%c2_101, %c0_102, %c0_103] : memref<4x16x64xbf16, #tpu.memory_space<vmem>>, vector<1x16x64xbf16>
    %159 = vector.shape_cast %158 : vector<1x16x64xbf16> to vector<16x64xbf16>
    %cst_104 = arith.constant dense<0.000000e+00> : vector<4x64xf32>
    %160 = tpu.matmul %157, %159, %cst_104 {dimension_numbers = #tpu.dot_dimension_numbers<[1], [0], [0], [1], [0, 0, 1, 1], [], []>} : vector<4x16xbf16>, vector<16x64xbf16>, vector<4x64xf32> -> vector<4x64xf32>
    %161 = arith.addf %116, %160 : vector<4x64xf32>
    %c3 = arith.constant 3 : index
    %c0_105 = arith.constant 0 : index
    %c0_106 = arith.constant 0 : index
    %162 = vector.load %arg6[%c3, %c0_105, %c0_106] : memref<4x64x16xbf16, #tpu.memory_space<vmem>>, vector<1x64x16xbf16>
    %163 = vector.shape_cast %162 : vector<1x64x16xbf16> to vector<64x16xbf16>
    %cst_107 = arith.constant dense<0.000000e+00> : vector<4x16xf32>
    %164 = tpu.matmul %25, %163, %cst_107 {dimension_numbers = #tpu.dot_dimension_numbers<[1], [0], [0], [1], [0, 0, 1, 1], [], []>} : vector<4x64xbf16>, vector<64x16xbf16>, vector<4x16xf32> -> vector<4x16xf32>
    %c3_108 = arith.constant 3 : index
    %c0_109 = arith.constant 0 : index
    %c0_110 = arith.constant 0 : index
    %165 = vector.load %arg9[%c3_108, %c0_109, %c0_110] : memref<4x1x16xf32, #tpu.memory_space<vmem>>, vector<1x1x16xf32>
    %166 = vector.shape_cast %165 : vector<1x1x16xf32> to vector<1x16xf32>
    %167 = vector.broadcast %166 : vector<1x16xf32> to vector<4x16xf32>
    %168 = arith.addf %164, %167 : vector<4x16xf32>
    %c3_111 = arith.constant 3 : index
    %c0_112 = arith.constant 0 : index
    %c0_113 = arith.constant 0 : index
    %169 = vector.load %arg7[%c3_111, %c0_112, %c0_113] : memref<4x64x16xbf16, #tpu.memory_space<vmem>>, vector<1x64x16xbf16>
    %170 = vector.shape_cast %169 : vector<1x64x16xbf16> to vector<64x16xbf16>
    %cst_114 = arith.constant dense<0.000000e+00> : vector<4x16xf32>
    %171 = tpu.matmul %25, %170, %cst_114 {dimension_numbers = #tpu.dot_dimension_numbers<[1], [0], [0], [1], [0, 0, 1, 1], [], []>} : vector<4x64xbf16>, vector<64x16xbf16>, vector<4x16xf32> -> vector<4x16xf32>
    %c3_115 = arith.constant 3 : index
    %c0_116 = arith.constant 0 : index
    %c0_117 = arith.constant 0 : index
    %172 = vector.load %arg10[%c3_115, %c0_116, %c0_117] : memref<4x1x16xf32, #tpu.memory_space<vmem>>, vector<1x1x16xf32>
    %173 = vector.shape_cast %172 : vector<1x1x16xf32> to vector<1x16xf32>
    %174 = vector.broadcast %173 : vector<1x16xf32> to vector<4x16xf32>
    %175 = arith.addf %171, %174 : vector<4x16xf32>
    %c3_118 = arith.constant 3 : index
    %c0_119 = arith.constant 0 : index
    %c0_120 = arith.constant 0 : index
    %176 = vector.load %arg8[%c3_118, %c0_119, %c0_120] : memref<4x64x16xbf16, #tpu.memory_space<vmem>>, vector<1x64x16xbf16>
    %177 = vector.shape_cast %176 : vector<1x64x16xbf16> to vector<64x16xbf16>
    %cst_121 = arith.constant dense<0.000000e+00> : vector<4x16xf32>
    %178 = tpu.matmul %25, %177, %cst_121 {dimension_numbers = #tpu.dot_dimension_numbers<[1], [0], [0], [1], [0, 0, 1, 1], [], []>} : vector<4x64xbf16>, vector<64x16xbf16>, vector<4x16xf32> -> vector<4x16xf32>
    %c3_122 = arith.constant 3 : index
    %c0_123 = arith.constant 0 : index
    %c0_124 = arith.constant 0 : index
    %179 = vector.load %arg11[%c3_122, %c0_123, %c0_124] : memref<4x1x16xf32, #tpu.memory_space<vmem>>, vector<1x1x16xf32>
    %180 = vector.shape_cast %179 : vector<1x1x16xf32> to vector<1x16xf32>
    %181 = vector.broadcast %180 : vector<1x16xf32> to vector<4x16xf32>
    %182 = arith.addf %178, %181 : vector<4x16xf32>
    %183 = arith.truncf %168 : vector<4x16xf32> to vector<4x16xbf16>
    %184 = arith.truncf %175 : vector<4x16xf32> to vector<4x16xbf16>
    %cst_125 = arith.constant dense<0.000000e+00> : vector<4x4xf32>
    %185 = tpu.matmul %183, %184, %cst_125 {dimension_numbers = #tpu.dot_dimension_numbers<[1], [1], [0], [0], [0, 0, 1, 0], [], []>} : vector<4x16xbf16>, vector<4x16xbf16>, vector<4x4xf32> -> vector<4x4xf32>
    %c3_126 = arith.constant 3 : index
    %c0_127 = arith.constant 0 : index
    %c0_128 = arith.constant 0 : index
    %186 = vector.load %arg12[%c3_126, %c0_127, %c0_128] : memref<4x4x4xf32, #tpu.memory_space<vmem>>, vector<1x4x4xf32>
    %187 = vector.shape_cast %186 : vector<1x4x4xf32> to vector<4x4xf32>
    %188 = arith.addf %185, %187 : vector<4x4xf32>
    %cst_129 = arith.constant dense<0xFF800000> : vector<4xf32>
    %189 = vector.multi_reduction <maximumf>, %188, %cst_129 [1] : vector<4x4xf32> to vector<4xf32>
    %190 = vector.shape_cast %189 : vector<4xf32> to vector<4x1xf32>
    %191 = vector.broadcast %190 : vector<4x1xf32> to vector<4x4xf32>
    %192 = arith.subf %188, %191 : vector<4x4xf32>
    %193 = math.exp %192 : vector<4x4xf32>
    %cst_130 = arith.constant dense<0.000000e+00> : vector<4xf32>
    %194 = vector.multi_reduction <add>, %193, %cst_130 [1] : vector<4x4xf32> to vector<4xf32>
    %195 = vector.shape_cast %194 : vector<4xf32> to vector<4x1xf32>
    %196 = tpu.reciprocal %195 {approx = true} : vector<4x1xf32> -> vector<4x1xf32>
    %197 = vector.broadcast %196 : vector<4x1xf32> to vector<4x4xf32>
    %198 = arith.mulf %193, %197 : vector<4x4xf32>
    %199 = arith.truncf %198 : vector<4x4xf32> to vector<4x4xbf16>
    %200 = arith.truncf %182 : vector<4x16xf32> to vector<4x16xbf16>
    %cst_131 = arith.constant dense<0.000000e+00> : vector<4x16xf32>
    %201 = tpu.matmul %199, %200, %cst_131 {dimension_numbers = #tpu.dot_dimension_numbers<[1], [0], [0], [1], [0, 0, 1, 1], [], []>} : vector<4x4xbf16>, vector<4x16xbf16>, vector<4x16xf32> -> vector<4x16xf32>
    %202 = arith.truncf %201 : vector<4x16xf32> to vector<4x16xbf16>
    %c3_132 = arith.constant 3 : index
    %c0_133 = arith.constant 0 : index
    %c0_134 = arith.constant 0 : index
    %203 = vector.load %arg13[%c3_132, %c0_133, %c0_134] : memref<4x16x64xbf16, #tpu.memory_space<vmem>>, vector<1x16x64xbf16>
    %204 = vector.shape_cast %203 : vector<1x16x64xbf16> to vector<16x64xbf16>
    %cst_135 = arith.constant dense<0.000000e+00> : vector<4x64xf32>
    %205 = tpu.matmul %202, %204, %cst_135 {dimension_numbers = #tpu.dot_dimension_numbers<[1], [0], [0], [1], [0, 0, 1, 1], [], []>} : vector<4x16xbf16>, vector<16x64xbf16>, vector<4x64xf32> -> vector<4x64xf32>
    %206 = arith.addf %161, %205 : vector<4x64xf32>
    %c0_136 = arith.constant 0 : index
    %c0_137 = arith.constant 0 : index
    %207 = vector.load %arg14[%c0_136, %c0_137] : memref<1x64xf32, #tpu.memory_space<vmem>>, vector<1x64xf32>
    %208 = vector.broadcast %207 : vector<1x64xf32> to vector<4x64xf32>
    %209 = arith.addf %206, %208 : vector<4x64xf32>
    %210 = arith.addf %2, %209 : vector<4x64xf32>
    %c0_138 = arith.constant 0 : index
    %c0_139 = arith.constant 0 : index
    %211 = vector.load %arg15[%c0_138, %c0_139] : memref<1x64xf32, #tpu.memory_space<vmem>>, vector<1x64xf32>
    %c0_140 = arith.constant 0 : index
    %c0_141 = arith.constant 0 : index
    %212 = vector.load %arg16[%c0_140, %c0_141] : memref<1x64xf32, #tpu.memory_space<vmem>>, vector<1x64xf32>
    %cst_142 = arith.constant dense<0.000000e+00> : vector<4xf32>
    %213 = vector.multi_reduction <add>, %210, %cst_142 [1] : vector<4x64xf32> to vector<4xf32>
    %214 = vector.shape_cast %213 : vector<4xf32> to vector<4x1xf32>
    %cst_143 = arith.constant 6.400000e+01 : f32
    %215 = vector.broadcast %cst_143 : f32 to vector<4x1xf32>
    %216 = arith.divf %214, %215 : vector<4x1xf32>
    %217 = vector.broadcast %216 : vector<4x1xf32> to vector<4x64xf32>
    %218 = arith.subf %210, %217 : vector<4x64xf32>
    %219 = arith.mulf %218, %218 : vector<4x64xf32>
    %cst_144 = arith.constant dense<0.000000e+00> : vector<4xf32>
    %220 = vector.multi_reduction <add>, %219, %cst_144 [1] : vector<4x64xf32> to vector<4xf32>
    %221 = vector.shape_cast %220 : vector<4xf32> to vector<4x1xf32>
    %cst_145 = arith.constant 6.400000e+01 : f32
    %222 = vector.broadcast %cst_145 : f32 to vector<4x1xf32>
    %223 = arith.divf %221, %222 : vector<4x1xf32>
    %cst_146 = arith.constant 9.99999997E-7 : f32
    %224 = vector.broadcast %cst_146 : f32 to vector<4x1xf32>
    %225 = arith.addf %223, %224 : vector<4x1xf32>
    %226 = math.rsqrt %225 : vector<4x1xf32>
    %227 = vector.broadcast %226 : vector<4x1xf32> to vector<4x64xf32>
    %228 = arith.mulf %218, %227 : vector<4x64xf32>
    %229 = vector.broadcast %211 : vector<1x64xf32> to vector<4x64xf32>
    %230 = arith.mulf %228, %229 : vector<4x64xf32>
    %231 = vector.broadcast %212 : vector<1x64xf32> to vector<4x64xf32>
    %232 = arith.addf %230, %231 : vector<4x64xf32>
    %233 = arith.truncf %232 : vector<4x64xf32> to vector<4x64xbf16>
    %c0_147 = arith.constant 0 : index
    %c0_148 = arith.constant 0 : index
    %234 = vector.load %arg17[%c0_147, %c0_148] : memref<64x128xbf16, #tpu.memory_space<vmem>>, vector<64x128xbf16>
    %cst_149 = arith.constant dense<0.000000e+00> : vector<4x128xf32>
    %235 = tpu.matmul %233, %234, %cst_149 {dimension_numbers = #tpu.dot_dimension_numbers<[1], [0], [0], [1], [0, 0, 1, 1], [], []>} : vector<4x64xbf16>, vector<64x128xbf16>, vector<4x128xf32> -> vector<4x128xf32>
    %c0_150 = arith.constant 0 : index
    %c0_151 = arith.constant 0 : index
    %236 = vector.load %arg18[%c0_150, %c0_151] : memref<1x128xf32, #tpu.memory_space<vmem>>, vector<1x128xf32>
    %237 = vector.broadcast %236 : vector<1x128xf32> to vector<4x128xf32>
    %238 = arith.addf %235, %237 : vector<4x128xf32>
    %cst_152 = arith.constant 0.707106769 : f32
    %239 = vector.broadcast %cst_152 : f32 to vector<4x128xf32>
    %240 = arith.mulf %238, %239 : vector<4x128xf32>
    %241 = math.absf %240 : vector<4x128xf32>
    %cst_153 = arith.constant 0.327591091 : f32
    %242 = vector.broadcast %cst_153 : f32 to vector<4x128xf32>
    %243 = arith.mulf %242, %241 : vector<4x128xf32>
    %cst_154 = arith.constant 1.000000e+00 : f32
    %244 = vector.broadcast %cst_154 : f32 to vector<4x128xf32>
    %245 = arith.addf %244, %243 : vector<4x128xf32>
    %cst_155 = arith.constant 1.000000e+00 : f32
    %246 = vector.broadcast %cst_155 : f32 to vector<4x128xf32>
    %247 = arith.divf %246, %245 : vector<4x128xf32>
    %cst_156 = arith.constant 1.06140542 : f32
    %248 = vector.broadcast %cst_156 : f32 to vector<4x128xf32>
    %249 = arith.mulf %248, %247 : vector<4x128xf32>
    %cst_157 = arith.constant 1.45315206 : f32
    %250 = vector.broadcast %cst_157 : f32 to vector<4x128xf32>
    %251 = arith.subf %249, %250 : vector<4x128xf32>
    %252 = arith.mulf %251, %247 : vector<4x128xf32>
    %cst_158 = arith.constant 1.42141378 : f32
    %253 = vector.broadcast %cst_158 : f32 to vector<4x128xf32>
    %254 = arith.addf %252, %253 : vector<4x128xf32>
    %255 = arith.mulf %254, %247 : vector<4x128xf32>
    %cst_159 = arith.constant 0.284496725 : f32
    %256 = vector.broadcast %cst_159 : f32 to vector<4x128xf32>
    %257 = arith.subf %255, %256 : vector<4x128xf32>
    %258 = arith.mulf %257, %247 : vector<4x128xf32>
    %cst_160 = arith.constant 0.254829586 : f32
    %259 = vector.broadcast %cst_160 : f32 to vector<4x128xf32>
    %260 = arith.addf %258, %259 : vector<4x128xf32>
    %261 = arith.mulf %260, %247 : vector<4x128xf32>
    %cst_161 = arith.constant 0.000000e+00 : f32
    %262 = vector.broadcast %cst_161 : f32 to vector<4x128xf32>
    %263 = arith.subf %262, %241 : vector<4x128xf32>
    %264 = arith.mulf %263, %241 : vector<4x128xf32>
    %265 = math.exp %264 : vector<4x128xf32>
    %266 = arith.mulf %261, %265 : vector<4x128xf32>
    %cst_162 = arith.constant 1.000000e+00 : f32
    %267 = vector.broadcast %cst_162 : f32 to vector<4x128xf32>
    %268 = arith.subf %267, %266 : vector<4x128xf32>
    %cst_163 = arith.constant 0.000000e+00 : f32
    %269 = vector.broadcast %cst_163 : f32 to vector<4x128xf32>
    %270 = arith.cmpf olt, %240, %269 : vector<4x128xf32>
    %cst_164 = arith.constant 0.000000e+00 : f32
    %271 = vector.broadcast %cst_164 : f32 to vector<4x128xf32>
    %272 = arith.subf %271, %268 : vector<4x128xf32>
    %273 = arith.select %270, %272, %268 : vector<4x128xi1>, vector<4x128xf32>
    %cst_165 = arith.constant 5.000000e-01 : f32
    %274 = vector.broadcast %cst_165 : f32 to vector<4x128xf32>
    %275 = arith.mulf %274, %238 : vector<4x128xf32>
    %cst_166 = arith.constant 1.000000e+00 : f32
    %276 = vector.broadcast %cst_166 : f32 to vector<4x128xf32>
    %277 = arith.addf %276, %273 : vector<4x128xf32>
    %278 = arith.mulf %275, %277 : vector<4x128xf32>
    %279 = arith.truncf %278 : vector<4x128xf32> to vector<4x128xbf16>
    %c0_167 = arith.constant 0 : index
    %c0_168 = arith.constant 0 : index
    %280 = vector.load %arg19[%c0_167, %c0_168] : memref<128x64xbf16, #tpu.memory_space<vmem>>, vector<128x64xbf16>
    %cst_169 = arith.constant dense<0.000000e+00> : vector<4x64xf32>
    %281 = tpu.matmul %279, %280, %cst_169 {dimension_numbers = #tpu.dot_dimension_numbers<[1], [0], [0], [1], [0, 0, 1, 1], [], []>} : vector<4x128xbf16>, vector<128x64xbf16>, vector<4x64xf32> -> vector<4x64xf32>
    %c0_170 = arith.constant 0 : index
    %c0_171 = arith.constant 0 : index
    %282 = vector.load %arg20[%c0_170, %c0_171] : memref<1x64xf32, #tpu.memory_space<vmem>>, vector<1x64xf32>
    %283 = vector.broadcast %282 : vector<1x64xf32> to vector<4x64xf32>
    %284 = arith.addf %281, %283 : vector<4x64xf32>
    %285 = arith.addf %210, %284 : vector<4x64xf32>
    %286 = arith.truncf %285 : vector<4x64xf32> to vector<4x64xbf16>
    %c0_172 = arith.constant 0 : index
    %c0_173 = arith.constant 0 : index
    %c0_174 = arith.constant 0 : index
    %287 = vector.load %arg21[%c0_172, %c0_173, %c0_174] : memref<1x4x64xbf16, #tpu.memory_space<vmem>>, vector<1x4x64xbf16>
    %288 = vector.shape_cast %287 : vector<1x4x64xbf16> to vector<4x64xbf16>
    %289 = vector.shape_cast %286 : vector<4x64xbf16> to vector<1x4x64xbf16>
    tpu.vector_store %arg21[%c0_172, %c0_173, %c0_174], %289 {strides = array<i32>} : memref<1x4x64xbf16, #tpu.memory_space<vmem>>, vector<1x4x64xbf16>,
    return
  }
  func.func @transform_0(%arg0: i32) -> (i32, i32, i32) {
    %c0_i32 = arith.constant 0 : i32
    %c0_i32_0 = arith.constant 0 : i32
    %c0_i32_1 = arith.constant 0 : i32
    return %arg0, %c0_i32, %c0_i32_0 : i32, i32, i32
  }
  func.func @transform_1(%arg0: i32) -> (i32, i32) {
    %c0_i32 = arith.constant 0 : i32
    %c0_i32_0 = arith.constant 0 : i32
    %c0_i32_1 = arith.constant 0 : i32
    return %c0_i32, %c0_i32_0 : i32, i32
  }
  func.func @transform_2(%arg0: i32) -> (i32, i32) {
    %c0_i32 = arith.constant 0 : i32
    %c0_i32_0 = arith.constant 0 : i32
    %c0_i32_1 = arith.constant 0 : i32
    return %c0_i32, %c0_i32_0 : i32, i32
  }
  func.func @transform_3(%arg0: i32) -> (i32, i32) {
    %c0_i32 = arith.constant 0 : i32
    %c0_i32_0 = arith.constant 0 : i32
    %c0_i32_1 = arith.constant 0 : i32
    return %c0_i32, %c0_i32_0 : i32, i32
  }
  func.func @transform_4(%arg0: i32) -> (i32, i32) {
    %c0_i32 = arith.constant 0 : i32
    %c0_i32_0 = arith.constant 0 : i32
    %c0_i32_1 = arith.constant 0 : i32
    return %c0_i32, %c0_i32_0 : i32, i32
  }
  func.func @transform_5(%arg0: i32) -> (i32, i32, i32) {
    %c0_i32 = arith.constant 0 : i32
    %c0_i32_0 = arith.constant 0 : i32
    %c0_i32_1 = arith.constant 0 : i32
    %c0_i32_2 = arith.constant 0 : i32
    return %c0_i32, %c0_i32_0, %c0_i32_1 : i32, i32, i32
  }
  func.func @transform_6(%arg0: i32) -> (i32, i32, i32) {
    %c0_i32 = arith.constant 0 : i32
    %c0_i32_0 = arith.constant 0 : i32
    %c0_i32_1 = arith.constant 0 : i32
    %c0_i32_2 = arith.constant 0 : i32
    return %c0_i32, %c0_i32_0, %c0_i32_1 : i32, i32, i32
  }
  func.func @transform_7(%arg0: i32) -> (i32, i32, i32) {
    %c0_i32 = arith.constant 0 : i32
    %c0_i32_0 = arith.constant 0 : i32
    %c0_i32_1 = arith.constant 0 : i32
    %c0_i32_2 = arith.constant 0 : i32
    return %c0_i32, %c0_i32_0, %c0_i32_1 : i32, i32, i32
  }
  func.func @transform_8(%arg0: i32) -> (i32, i32, i32) {
    %c0_i32 = arith.constant 0 : i32
    %c0_i32_0 = arith.constant 0 : i32
    %c0_i32_1 = arith.constant 0 : i32
    %c0_i32_2 = arith.constant 0 : i32
    return %c0_i32, %c0_i32_0, %c0_i32_1 : i32, i32, i32
  }
  func.func @transform_9(%arg0: i32) -> (i32, i32, i32) {
    %c0_i32 = arith.constant 0 : i32
    %c0_i32_0 = arith.constant 0 : i32
    %c0_i32_1 = arith.constant 0 : i32
    %c0_i32_2 = arith.constant 0 : i32
    return %c0_i32, %c0_i32_0, %c0_i32_1 : i32, i32, i32
  }
  func.func @transform_10(%arg0: i32) -> (i32, i32, i32) {
    %c0_i32 = arith.constant 0 : i32
    %c0_i32_0 = arith.constant 0 : i32
    %c0_i32_1 = arith.constant 0 : i32
    %c0_i32_2 = arith.constant 0 : i32
    return %c0_i32, %c0_i32_0, %c0_i32_1 : i32, i32, i32
  }
  func.func @transform_11(%arg0: i32) -> (i32, i32, i32) {
    %c0_i32 = arith.constant 0 : i32
    %c0_i32_0 = arith.constant 0 : i32
    %c0_i32_1 = arith.constant 0 : i32
    %c0_i32_2 = arith.constant 0 : i32
    return %c0_i32, %c0_i32_0, %c0_i32_1 : i32, i32, i32
  }
  func.func @transform_12(%arg0: i32) -> (i32, i32, i32) {
    %c0_i32 = arith.constant 0 : i32
    %c0_i32_0 = arith.constant 0 : i32
    %c0_i32_1 = arith.constant 0 : i32
    %c0_i32_2 = arith.constant 0 : i32
    return %c0_i32, %c0_i32_0, %c0_i32_1 : i32, i32, i32
  }
  func.func @transform_13(%arg0: i32) -> (i32, i32) {
    %c0_i32 = arith.constant 0 : i32
    %c0_i32_0 = arith.constant 0 : i32
    %c0_i32_1 = arith.constant 0 : i32
    return %c0_i32, %c0_i32_0 : i32, i32
  }
  func.func @transform_14(%arg0: i32) -> (i32, i32) {
    %c0_i32 = arith.constant 0 : i32
    %c0_i32_0 = arith.constant 0 : i32
    %c0_i32_1 = arith.constant 0 : i32
    return %c0_i32, %c0_i32_0 : i32, i32
  }
  func.func @transform_15(%arg0: i32) -> (i32, i32) {
    %c0_i32 = arith.constant 0 : i32
    %c0_i32_0 = arith.constant 0 : i32
    %c0_i32_1 = arith.constant 0 : i32
    return %c0_i32, %c0_i32_0 : i32, i32
  }
  func.func @transform_16(%arg0: i32) -> (i32, i32) {
    %c0_i32 = arith.constant 0 : i32
    %c0_i32_0 = arith.constant 0 : i32
    %c0_i32_1 = arith.constant 0 : i32
    return %c0_i32, %c0_i32_0 : i32, i32
  }
  func.func @transform_17(%arg0: i32) -> (i32, i32) {
    %c0_i32 = arith.constant 0 : i32
    %c0_i32_0 = arith.constant 0 : i32
    %c0_i32_1 = arith.constant 0 : i32
    return %c0_i32, %c0_i32_0 : i32, i32
  }
  func.func @transform_18(%arg0: i32) -> (i32, i32) {
    %c0_i32 = arith.constant 0 : i32
    %c0_i32_0 = arith.constant 0 : i32
    %c0_i32_1 = arith.constant 0 : i32
    return %c0_i32, %c0_i32_0 : i32, i32
  }
  func.func @transform_19(%arg0: i32) -> (i32, i32) {
    %c0_i32 = arith.constant 0 : i32
    %c0_i32_0 = arith.constant 0 : i32
    %c0_i32_1 = arith.constant 0 : i32
    return %c0_i32, %c0_i32_0 : i32, i32
  }
  func.func @transform_20(%arg0: i32) -> (i32, i32, i32) {
    %c0_i32 = arith.constant 0 : i32
    %c0_i32_0 = arith.constant 0 : i32
    %c0_i32_1 = arith.constant 0 : i32
    return %arg0, %c0_i32, %c0_i32_0 : i32, i32, i32
  }
}

module attributes {stable_mosaic.version = 11 : i64} {
  func.func @_final_norm_pool_kernel(%arg0: i32, %arg1: memref<2x4x64xbf16, #tpu.memory_space<vmem>>, %arg2: memref<1x64xf32, #tpu.memory_space<vmem>>, %arg3: memref<1x64xf32, #tpu.memory_space<vmem>>, %arg4: memref<2x64xf32, #tpu.memory_space<vmem>>) attributes {dimension_semantics = [#tpu.dimension_semantics<arbitrary>], iteration_bounds = array<i64: 1>, scalar_prefetch = 0 : i64, scratch_operands = 0 : i64, tpu.core_type = #tpu.core_type<tc>, window_params = [{pipeline_mode = #tpu.pipeline_mode<synchronous>, transform_indices = @transform_0, window_bounds = array<i64: 2, 4, 64>}, {pipeline_mode = #tpu.pipeline_mode<synchronous>, transform_indices = @transform_1, window_bounds = array<i64: 1, 64>}, {pipeline_mode = #tpu.pipeline_mode<synchronous>, transform_indices = @transform_2, window_bounds = array<i64: 1, 64>}, {pipeline_mode = #tpu.pipeline_mode<synchronous>, transform_indices = @transform_3, window_bounds = array<i64: 2, 64>}]} {
    %c0 = arith.constant 0 : index
    %c0_0 = arith.constant 0 : index
    %c0_1 = arith.constant 0 : index
    %0 = vector.load %arg1[%c0, %c0_0, %c0_1] : memref<2x4x64xbf16, #tpu.memory_space<vmem>>, vector<2x4x64xbf16>
    %1 = arith.extf %0 : vector<2x4x64xbf16> to vector<2x4x64xf32>
    %c0_2 = arith.constant 0 : index
    %c0_3 = arith.constant 0 : index
    %2 = vector.load %arg2[%c0_2, %c0_3] : memref<1x64xf32, #tpu.memory_space<vmem>>, vector<1x64xf32>
    %c0_4 = arith.constant 0 : index
    %c0_5 = arith.constant 0 : index
    %3 = vector.load %arg3[%c0_4, %c0_5] : memref<1x64xf32, #tpu.memory_space<vmem>>, vector<1x64xf32>
    %cst = arith.constant dense<0.000000e+00> : vector<2x4xf32>
    %4 = vector.multi_reduction <add>, %1, %cst [2] : vector<2x4x64xf32> to vector<2x4xf32>
    %5 = vector.shape_cast %4 : vector<2x4xf32> to vector<2x4x1xf32>
    %cst_6 = arith.constant 6.400000e+01 : f32
    %6 = vector.broadcast %cst_6 : f32 to vector<2x4x1xf32>
    %7 = arith.divf %5, %6 : vector<2x4x1xf32>
    %8 = vector.broadcast %7 : vector<2x4x1xf32> to vector<2x4x64xf32>
    %9 = arith.subf %1, %8 : vector<2x4x64xf32>
    %10 = arith.mulf %9, %9 : vector<2x4x64xf32>
    %cst_7 = arith.constant dense<0.000000e+00> : vector<2x4xf32>
    %11 = vector.multi_reduction <add>, %10, %cst_7 [2] : vector<2x4x64xf32> to vector<2x4xf32>
    %12 = vector.shape_cast %11 : vector<2x4xf32> to vector<2x4x1xf32>
    %cst_8 = arith.constant 6.400000e+01 : f32
    %13 = vector.broadcast %cst_8 : f32 to vector<2x4x1xf32>
    %14 = arith.divf %12, %13 : vector<2x4x1xf32>
    %cst_9 = arith.constant 9.99999997E-7 : f32
    %15 = vector.broadcast %cst_9 : f32 to vector<2x4x1xf32>
    %16 = arith.addf %14, %15 : vector<2x4x1xf32>
    %17 = math.rsqrt %16 : vector<2x4x1xf32>
    %18 = vector.broadcast %17 : vector<2x4x1xf32> to vector<2x4x64xf32>
    %19 = arith.mulf %9, %18 : vector<2x4x64xf32>
    %20 = vector.shape_cast %2 : vector<1x64xf32> to vector<1x1x64xf32>
    %21 = vector.broadcast %20 : vector<1x1x64xf32> to vector<2x4x64xf32>
    %22 = arith.mulf %19, %21 : vector<2x4x64xf32>
    %23 = vector.shape_cast %3 : vector<1x64xf32> to vector<1x1x64xf32>
    %24 = vector.broadcast %23 : vector<1x1x64xf32> to vector<2x4x64xf32>
    %25 = arith.addf %22, %24 : vector<2x4x64xf32>
    %cst_10 = arith.constant dense<0.000000e+00> : vector<2x64xf32>
    %26 = vector.multi_reduction <add>, %25, %cst_10 [1] : vector<2x4x64xf32> to vector<2x64xf32>
    %cst_11 = arith.constant 4.000000e+00 : f32
    %27 = vector.broadcast %cst_11 : f32 to vector<2x64xf32>
    %28 = arith.divf %26, %27 : vector<2x64xf32>
    %c0_12 = arith.constant 0 : index
    %c0_13 = arith.constant 0 : index
    %29 = vector.load %arg4[%c0_12, %c0_13] : memref<2x64xf32, #tpu.memory_space<vmem>>, vector<2x64xf32>
    tpu.vector_store %arg4[%c0_12, %c0_13], %28 {strides = array<i32>} : memref<2x64xf32, #tpu.memory_space<vmem>>, vector<2x64xf32>,
    return
  }
  func.func @transform_0(%arg0: i32) -> (i32, i32, i32) {
    %c0_i32 = arith.constant 0 : i32
    %c0_i32_0 = arith.constant 0 : i32
    %c0_i32_1 = arith.constant 0 : i32
    %c0_i32_2 = arith.constant 0 : i32
    return %c0_i32, %c0_i32_0, %c0_i32_1 : i32, i32, i32
  }
  func.func @transform_1(%arg0: i32) -> (i32, i32) {
    %c0_i32 = arith.constant 0 : i32
    %c0_i32_0 = arith.constant 0 : i32
    %c0_i32_1 = arith.constant 0 : i32
    return %c0_i32, %c0_i32_0 : i32, i32
  }
  func.func @transform_2(%arg0: i32) -> (i32, i32) {
    %c0_i32 = arith.constant 0 : i32
    %c0_i32_0 = arith.constant 0 : i32
    %c0_i32_1 = arith.constant 0 : i32
    return %c0_i32, %c0_i32_0 : i32, i32
  }
  func.func @transform_3(%arg0: i32) -> (i32, i32) {
    %c0_i32 = arith.constant 0 : i32
    %c0_i32_0 = arith.constant 0 : i32
    %c0_i32_1 = arith.constant 0 : i32
    return %c0_i32, %c0_i32_0 : i32, i32
  }
}

</mosaic_0001>

<bundles_post_ra>
// kernel: _lambda_.7
= control target key start
LH: loop header
LB: loop body
LE: loop exit
PB: predicated region body
PF: predicated region fallthrough
CT: control target
= control target key end

     0   :  { %s518_s18 = smov 0   ;;  %s564_s0 = inlined_call_operand.vmem [shape: bf16[2,16,48], index: 0, kind: input, shape index: {}]   ;;  %s565_s1 = inlined_call_operand.vmem [shape: bf16[48,32], index: 1, kind: input, shape index: {}]   ;;  %s566_s2 = inlined_call_operand.vmem [shape: f32[1,32], index: 2, kind: input, shape index: {}, may-alias: {2,4}]   ;;  %s567_s3 = inlined_call_operand.vmem [shape: f32[1,32], index: 3, kind: input, shape index: {}]   ;;  %s568_s4 = inlined_call_operand.vmem [shape: f32[1,32], index: 4, kind: input, shape index: {}, may-alias: {2,4}]   ;;  %s569_s5 = inlined_call_operand.vmem [shape: bf16[2,16,32], index: 5, kind: output, shape index: {}]  }
   0x1 LB: > { %s421_s19 = sadd.s32 4294967295, %s484_s18   ;;  %p425_p0 = scmp.ge.s32.totalorder %s484_s18, 1  ;;  %s484_s18 = sphi %s518_s18, %s15_s18  }
   0x2   : > { %p187_p1 = scmp.lt.s32.totalorder %s484_s18, 3 }
   0x4   : > { %p188_p2 = pnand %p425_p0, %p187_p1 }
   0x5   : > { %v470_v0 = vld [vmem:[%s565_s1] sm:$0xff] (!%p188_p2)   ;;  %v486_v1 = vmov (!%p188_p2), 0.0   ;;  %v471_v2 = vld [vmem:[%s565_s1 + $0x8] sm:$0xff] (!%p188_p2)   ;;  %vm487_vm0 = vmmov (!%p188_p2), 0   ;;  %p215_p3 = scmp.lt.s32.totalorder (!%p188_p2), %s421_s19, 1  ;;  %v472_v3 = vld [vmem:[%s565_s1 + $0x10] sm:$0xff] (!%p188_p2)  }
   0x6   : > { %191 = sbr.rel (%p188_p2) target bundleno = 552 (0x228), region = 40  ;;  %450 = vmatprep.subr.bf16.mxu0 (!%p188_p2), %v486_v1  ;;  %456 = vmatprep.mubr.msk.bf16.mxu0 (!%p188_p2), %vm487_vm0, %v486_v1  ;;  %vm264_vm1 = vcmask (!%p188_p2), 392192   ;;  %v430_v5 = vld [vmem:[%s566_s2] ss:$0 sm:$0xff] (!%p188_p2)  ;;  %vm311_vm2 = vcmask (!%p188_p2), 261120   ;;  %vm363_vm3 = vcmask (!%p188_p2), 257024  }
   0x7   : > { %451 = vmatpush3.bf16.msra.mxu0 (!%p188_p2), %v470_v0  ;;  %v436_v31 = vld [vmem:[%s567_s3] ss:$0 sm:$0xff] (!%p188_p2) }
   0x8   : > { %452 = vmatprep.subr.bf16.mxu0 (!%p188_p2), %v486_v1  ;;  %v437_v33 = vld [vmem:[%s568_s4] ss:$0 sm:$0xff] (!%p188_p2) }
   0xb   : > { %453 = vmatpush3.bf16.msra.mxu0 (!%p188_p2), %v471_v2 }
   0xc   : > { %454 = vmatprep.subr.bf16.mxu0 (!%p188_p2), %v486_v1 }
   0xd   : > { %s571_s19 = smov (!%p215_p3, %s421_s19), 1 }
   0xe   : > { %s442_s26 = sshll.u32 %s571_s19, 3 }
   0xf   : > { %s219_s29 = scalar_lea.vmem %s564_s0, %s442_s26  ;;  %455 = vmatpush3.bf16.msra.mxu0 %v472_v3  ;;  %s224_s13 = scalar_lea.vmem %s569_s5, %s442_s26 }
  0x10   : > { %v473_v4 = vld [vmem:[%s219_s29] sm:$0xff]  }
  0x12   : > { %457 = vmatmul.mubr.msk.bf16.vlgmr.msra.gmra.mrb[0].mxu0 %vm264_vm1, %v473_v4 }
  0xe5   : > { %v302_v6 = vpop.f32.mrb[0].mxu0 }
  0xe6   : > { %v303_v7 = vadd.f32 %v430_v5, %v302_v6  ;;  %v458_v8 = vpop.f32.mrb[1].mxu0 }
  0xe7   : > { %v305_v9 = vpop.f32.mrb[2].mxu0 }
  0xe8   : > { %v306_v10 = vadd.f32 %v430_v5, %v305_v9  ;;  %v459_v11 = vpop.f32.mrb[3].mxu0  ;;  %v312_v12 = vsel %vm311_vm2, %v303_v7, 0.0 }
  0xe9   : > { %313 = vadd.xlane.f32.xlu0 %v312_v12 }
  0xea   : > { %v315_v13 = vsel %vm311_vm2, %v306_v10, 0.0 }
  0xed   : > { %316 = vadd.xlane.f32.xlu0 %v315_v13 }
 0x176   : > { %v314_v14 = vpop.xlane.xlu0 %313 }
 0x177   : > { %v319_v15 = vmul.f32 0.03125, %v314_v14 }
 0x179   : > { %v321_v16 = vsub.f32 %v303_v7, %v319_v15 }
 0x17a   : > { %v317_v17 = vpop.xlane.xlu0 %316 }
 0x17b   : > { %v320_v18 = vmul.f32 0.03125, %v317_v17  ;;  %v323_v19 = vmul.f32 %v321_v16, %v321_v16 }
 0x17d   : > { %v322_v20 = vsub.f32 %v306_v10, %v320_v18  ;;  %v325_v21 = vsel %vm311_vm2, %v323_v19, 0.0 }
 0x17e   : > { %326 = vadd.xlane.f32.xlu1 %v325_v21 }
 0x17f   : > { %v324_v22 = vmul.f32 %v322_v20, %v322_v20 }
 0x181   : > { %v328_v23 = vsel %vm311_vm2, %v324_v22, 0.0 }
 0x182   : > { %329 = vadd.xlane.f32.xlu1 %v328_v23 }
 0x20b   : > { %v327_v24 = vpop.xlane.xlu1 %326 }
 0x20c   : > { %v331_v25 = vmul.f32 0.03125, %v327_v24 }
 0x20e   : > { %v333_v26 = vadd.f32 1e-06, %v331_v25 }
 0x20f   : > { %v330_v27 = vpop.xlane.xlu1 %329 }
 0x210   : > { %474 = vrsqrt.f32 %v333_v26  ;;  %v332_v28 = vmul.f32 0.03125, %v330_v27 }
 0x212   : > { %v334_v29 = vadd.f32 1e-06, %v332_v28 }
 0x214   : > { %476 = vrsqrt.f32 %v334_v29 }
 0x21a   : > { %v475_v30 = vpop.eup %474 }
 0x21b   : > { %v337_v32 = vmul.f32 %v475_v30, %v321_v16 }
 0x21d   : > { %v345_v34 = vmul.f32 %v436_v31, %v337_v32 }
 0x21e   : > { %v477_v35 = vpop.eup %476 }
 0x21f   : > { %v353_v36 = vadd.f32 %v437_v33, %v345_v34  ;;  %v338_v37 = vmul.f32 %v477_v35, %v322_v20 }
 0x221   : > { %v444_v38 = vpack.c.bf16 %v353_v36, %v353_v36  ;;  %v346_v39 = vmul.f32 %v436_v31, %v338_v37 }
 0x223   : > { %364 = vst.msk [vmem:[%s224_s13] sm:$0xf] %vm363_vm3, %v444_v38  ;;  %v354_v40 = vadd.f32 %v437_v33, %v346_v39 }
 0x225   : > { %v445_v41 = vpack.c.bf16 %v354_v40, %v354_v40 }
 0x227   : > { %365 = vst.msk [vmem:[%s224_s13 + $0x4] sm:$0xf] %vm363_vm3, %v445_v41 }
 0x228 PF: > { %s15_s18 = sadd.s32 1, %s484_s18  }
 0x229   : > { %p12_p4 = scmp.ge.s32.totalorder %s15_s18, 4  }
 0x22b   :  { %14 = sbr.rel (!%p12_p4) target bundleno = 1 (0x1), region = 70 }

// kernel: _lambda_.10
= control target key start
LH: loop header
LB: loop body
LE: loop exit
PB: predicated region body
PF: predicated region fallthrough
CT: control target
= control target key end

     0   :  { %s1036_s18 = smov 0   ;;  %s1166_s0 = inlined_call_operand.vmem [shape: bf16[2,16,32], index: 0, kind: input, shape index: {}]   ;;  %s1167_s1 = inlined_call_operand.vmem [shape: bf16[4,4,16], index: 1, kind: input, shape index: {}]   ;;  %s1168_s2 = inlined_call_operand.vmem [shape: f32[4,1,32], index: 2, kind: input, shape index: {}]   ;;  %s1169_s3 = inlined_call_operand.vmem [shape: f32[4,1,32], index: 3, kind: input, shape index: {}]   ;;  %s1170_s4 = inlined_call_operand.vmem [shape: bf16[4,32,64], index: 4, kind: input, shape index: {}]   ;;  %s1171_s5 = inlined_call_operand.vmem [shape: bf16[2,4,64], index: 5, kind: output, shape index: {}]  }
   0x1 LB: > { %s833_s19 = sadd.s32 4294967295, %s1002_s18   ;;  %p837_p0 = scmp.ge.s32.totalorder %s1002_s18, 1  ;;  %s1002_s18 = sphi %s1036_s18, %s15_s18  }
   0x2   : > { %p187_p1 = scmp.lt.s32.totalorder %s1002_s18, 3 }
   0x4   : > { %p188_p2 = pnand %p837_p0, %p187_p1 }
   0x5   : > { %p214_p3 = scmp.lt.s32.totalorder (!%p188_p2), %s833_s19, 1  ;;  %v1004_v0 = vmov (!%p188_p2), 0.0   ;;  %vm1005_vm0 = vmmov (!%p188_p2), 0   ;;  %v226_v2 = vld [vmem:[%s1167_s1] sm:$0x3] (!%p188_p2)  ;;  %vm233_vm1 = vcmask (!%p188_p2), 130048  }
   0x6   : > { %191 = sbr.rel (%p188_p2) target bundleno = 814 (0x32e), region = 40  ;;  %910 = vmatprep.subr.bf16.mxu1 (!%p188_p2), %v1004_v0  ;;  %912 = vmatprep.mubr.msk.bf16.mxu1 (!%p188_p2), %vm1005_vm0, %v1004_v0  ;;  %v845_v3 = vld [vmem:[%s1167_s1 + $0x4] sm:$0x3] (!%p188_p2)  ;;  %v843_v4 = vld [vmem:[%s1167_s1 + $0x2] sm:$0x3] (!%p188_p2)  ;;  %vm412_vm2 = vcmask (!%p188_p2), 257024  }
   0x7   : > { %922 = vmatprep.subr.bf16.mxu0 (!%p188_p2), %v1004_v0  ;;  %924 = vmatprep.mubr.msk.bf16.mxu0 (!%p188_p2), %vm1005_vm0, %v1004_v0  ;;  %v847_v5 = vld [vmem:[%s1167_s1 + $0x6] sm:$0x3] (!%p188_p2)  ;;  %v986_v46 = vld [vmem:[%s1170_s4 + $0x10] sm:$0xff] (!%p188_p2)   ;;  %v988_v48 = vld [vmem:[%s1170_s4 + $0x18] sm:$0xff] (!%p188_p2)   ;;  %vm516_vm3 = vcmask (!%p188_p2), 261120   ;;  %vm778_vm4 = vcmask (!%p188_p2), 517120  }
   0x8   : > { %v987_v47 = vld [vmem:[%s1170_s4] sm:$0xff] (!%p188_p2)   ;;  %v989_v49 = vld [vmem:[%s1170_s4 + $0x8] sm:$0xff] (!%p188_p2)  }
   0x9   : > { %v852_v60 = vld [vmem:[%s1168_s2 + $0x1] ss:$0 sm:$0xff] (!%p188_p2)  ;;  %v849_v61 = vld [vmem:[%s1168_s2] ss:$0 sm:$0xff] (!%p188_p2) }
   0xd   : > { %s1173_s19 = smov (!%p214_p3, %s833_s19), 1 }
   0xe   : > { %s889_s20 = sshll.u32 %s1173_s19, 3  ;;  %s840_s16 = sshll.u32 %s1173_s19, 1 }
   0xf   : > { %s218_s23 = scalar_lea.vmem %s1166_s0, %s889_s20  ;;  %s222_s21 = scalar_lea.vmem %s1171_s5, %s840_s16 }
  0x10   : > { %v985_v1 = vld [vmem:[%s218_s23] sm:$0xff]  }
  0x11   : > { %911 = vmatpush3.bf16.msra.mxu1 %v985_v1  ;;  %923 = vmatpush3.bf16.msra.mxu0 %v985_v1 }
  0x12   : > { %916 = vmatprep.subr.bf16.mxu1 %v1004_v0  ;;  %942 = vmatprep.subr.bf16.mxu0 %v1004_v0 }
  0x14   : > { %913 = vmatmul.mubr.msk.bf16.vlgmr.msra.gmra.mrb[0].mxu1 %vm233_vm1, %v226_v2  ;;  %925 = vmatmul.mubr.msk.bf16.vlgmr.msra.gmra.mrb[0].mxu0 %vm233_vm1, %v845_v3  ;;  %v850_v2 = vld [vmem:[%s1169_s3] ss:$0 sm:$0xff] }
  0x15   : > { %917 = vmatpush3.bf16.msra.mxu1 %v985_v1  ;;  %918 = vmatprep.mubr.msk.bf16.mxu1 %vm1005_vm0, %v1004_v0 }
  0x16   : > { %928 = vmatprep.subr.bf16.mxu1 %v1004_v0  ;;  %946 = vmatprep.mubr.msk.bf16.mxu0 %vm1005_vm0, %v1004_v0 }
  0x17   : > { %943 = vmatpush3.bf16.msra.mxu0 %v987_v47 }
  0x18   : > { %944 = vmatprep.subr.bf16.mxu0 %v1004_v0 }
  0x1b   : > { %945 = vmatpush3.bf16.msra.mxu0 %v989_v49 }
  0x1c   : > { %919 = vmatmul.mubr.msk.bf16.vlgmr.msra.gmra.mrb[4].mxu1 %vm233_vm1, %v843_v4  ;;  %950 = vmatprep.subr.bf16.mxu0 %v1004_v0 }
  0x1d   : > { %929 = vmatpush3.bf16.msra.mxu1 %v985_v1  ;;  %930 = vmatprep.mubr.msk.bf16.mxu1 %vm1005_vm0, %v1004_v0  ;;  %v854_v1 = vld [vmem:[%s1169_s3 + $0x1] ss:$0 sm:$0xff] }
  0x1e   : > { %934 = vmatprep.subr.bf16.mxu1 %v1004_v0 }
  0x24   : > { %931 = vmatmul.mubr.msk.bf16.vlgmr.msra.gmra.mrb[8].mxu1 %vm233_vm1, %v847_v5 }
  0x25   : > { %938 = vmatprep.mubr.msk.bf16.mxu1 %vm1005_vm0, %v1004_v0  ;;  %935 = vmatpush3.bf16.msra.mxu1 %v986_v46 }
  0x26   : > { %936 = vmatprep.subr.bf16.mxu1 %v1004_v0 }
  0x29   : > { %937 = vmatpush3.bf16.msra.mxu1 %v988_v48 }
  0xe7   : > { %v271_v6 = vpop.f32.mrb[0].mxu1  ;;  %v361_v7 = vpop.f32.mrb[0].mxu0 }
  0xe8   : > { %v914_v8 = vpop.f32.mrb[1].mxu1  ;;  %v413_v9 = vsel %vm412_vm2, %v271_v6, 0.0  ;;  %v926_v10 = vpop.f32.mrb[1].mxu0  ;;  %v421_v11 = vsel %vm412_vm2, %v361_v7, 0.0 }
  0xe9   : > { %v274_v12 = vpop.f32.mrb[2].mxu1  ;;  %414 = vadd.xlane.f32.xlu0 %v413_v9  ;;  %422 = vadd.xlane.f32.xlu1 %v421_v11  ;;  %v364_v13 = vpop.f32.mrb[2].mxu0  ;;  %v866_v11 = vld [vmem:[%s1168_s2 + $0x2] ss:$0 sm:$0xff] }
  0xea   : > { %v915_v14 = vpop.f32.mrb[3].mxu1  ;;  %v927_v15 = vpop.f32.mrb[3].mxu0  ;;  %v991_v12 = vld [vmem:[%s1170_s4 + $0x28] sm:$0xff]  }
  0xeb   : > { %v868_v14 = vld [vmem:[%s1169_s3 + $0x2] ss:$0 sm:$0xff] }
  0xef   : > { %v316_v16 = vpop.f32.mrb[4].mxu1 }
  0xf0   : > { %v920_v17 = vpop.f32.mrb[5].mxu1  ;;  %v417_v18 = vsel %vm412_vm2, %v316_v16, 0.0 }
  0xf1   : > { %418 = vadd.xlane.f32.xlu0 %v417_v18  ;;  %v319_v19 = vpop.f32.mrb[6].mxu1 }
  0xf2   : > { %v921_v20 = vpop.f32.mrb[7].mxu1  ;;  %v877_v19 = vld [vmem:[%s1168_s2 + $0x3] ss:$0 sm:$0xff] }
  0xf3   : > { %v993_v20 = vld [vmem:[%s1170_s4 + $0x38] sm:$0xff]  }
  0xf7   : > { %v406_v21 = vpop.f32.mrb[8].mxu1 }
  0xf8   : > { %v932_v22 = vpop.f32.mrb[9].mxu1  ;;  %v425_v23 = vsel %vm412_vm2, %v406_v21, 0.0 }
  0xf9   : > { %426 = vadd.xlane.f32.xlu1 %v425_v23  ;;  %v409_v24 = vpop.f32.mrb[10].mxu1  ;;  %v879_v22 = vld [vmem:[%s1169_s3 + $0x3] ss:$0 sm:$0xff] }
  0xfa   : > { %v933_v25 = vpop.f32.mrb[11].mxu1 }
 0x176   : > { %v415_v26 = vpop.xlane.xlu0 %414  ;;  %v423_v29 = vpop.xlane.xlu1 %422 }
 0x17e   : > { %v419_v27 = vpop.xlane.xlu0 %418 }
 0x17f   : > { %v420_v28 = vadd.f32 %v419_v27, %v415_v26 }
 0x181   : > { %v424_v30 = vadd.f32 %v423_v29, %v420_v28 }
 0x186   : > { %v427_v31 = vpop.xlane.xlu1 %426 }
 0x187   : > { %v428_v32 = vadd.f32 %v427_v31, %v424_v30 }
 0x189   : > { %v429_v33 = vmul.f32 0.0078125, %v428_v32 }
 0x18b   : > { %v436_v34 = vsub.f32 %v316_v16, %v429_v33  ;;  %v430_v35 = vsub.f32 %v271_v6, %v429_v33  ;;  %v1088_v36 = vsub.f32 %v406_v21, %v429_v33  ;;  %v442_v37 = vsub.f32 %v361_v7, %v429_v33  ;;  %v990_v7 = vld [vmem:[%s1170_s4 + $0x20] sm:$0xff]   ;;  %v992_v16 = vld [vmem:[%s1170_s4 + $0x30] sm:$0xff]  }
 0x18d   : > { %v437_v38 = vmul.f32 %v436_v34, %v436_v34  ;;  %v431_v39 = vmul.f32 %v430_v35, %v430_v35  ;;  %v449_v42 = vmul.f32 %v1088_v36, %v1088_v36  ;;  %v443_v43 = vmul.f32 %v442_v37, %v442_v37 }
 0x18f   : > { %v438_v40 = vsel %vm412_vm2, %v437_v38, 0.0  ;;  %v432_v41 = vsel %vm412_vm2, %v431_v39, 0.0  ;;  %v450_v44 = vsel %vm412_vm2, %v449_v42, 0.0  ;;  %v444_v45 = vsel %vm412_vm2, %v443_v43, 0.0 }
 0x190   : > { %439 = vadd.xlane.f32.xlu1 %v438_v40  ;;  %433 = vadd.xlane.f32.xlu0 %v432_v41 }
 0x194   : > { %451 = vadd.xlane.f32.xlu1 %v450_v44  ;;  %445 = vadd.xlane.f32.xlu0 %v444_v45 }
 0x21d   : > { %v440_v50 = vpop.xlane.xlu1 %439  ;;  %v434_v51 = vpop.xlane.xlu0 %433 }
 0x21e   : > { %v441_v52 = vadd.f32 %v440_v50, %v434_v51 }
 0x221   : > { %v446_v53 = vpop.xlane.xlu0 %445  ;;  %v452_v55 = vpop.xlane.xlu1 %451 }
 0x222   : > { %v447_v54 = vadd.f32 %v446_v53, %v441_v52 }
 0x224   : > { %v453_v56 = vadd.f32 %v452_v55, %v447_v54 }
 0x226   : > { %v454_v57 = vmul.f32 0.0078125, %v453_v56 }
 0x228   : > { %v455_v58 = vadd.f32 1e-06, %v454_v57 }
 0x22a   : > { %994 = vrsqrt.f32 %v455_v58 }
 0x234   : > { %v995_v59 = vpop.eup %994 }
 0x235   : > { %v479_v62 = vmul.f32 %v995_v59, %v436_v34  ;;  %v457_v63 = vmul.f32 %v995_v59, %v430_v35  ;;  %v615_v10 = vmul.f32 %v995_v59, %v442_v37  ;;  %v696_v18 = vmul.f32 %v995_v59, %v1088_v36 }
 0x237   : > { %v488_v3 = vmul.f32 %v852_v60, %v479_v62  ;;  %v465_v4 = vmul.f32 %v849_v61, %v457_v63  ;;  %v624_v13 = vmul.f32 %v866_v11, %v615_v10  ;;  %v705_v21 = vmul.f32 %v877_v19, %v696_v18 }
 0x239   : > { %v497_v5 = vadd.f32 %v854_v1, %v488_v3  ;;  %v473_v6 = vadd.f32 %v850_v2, %v465_v4  ;;  %v633_v15 = vadd.f32 %v868_v14, %v624_v13  ;;  %v714_v23 = vadd.f32 %v879_v22, %v705_v21 }
 0x23b   : > { %v498_v8 = vpack.c.bf16 %v497_v5, %v497_v5  ;;  %v474_v9 = vpack.c.bf16 %v473_v6, %v473_v6  ;;  %v634_v17 = vpack.c.bf16 %v633_v15, %v633_v15  ;;  %v715_v24 = vpack.c.bf16 %v714_v23, %v714_v23 }
 0x23d   : > { %939 = vmatmul.mubr.msk.bf16.vlgmr.msra.gmra.mrb[12].mxu1 %vm516_vm3, %v498_v8  ;;  %947 = vmatmul.mubr.msk.bf16.vlgmr.msra.gmra.mrb[4].mxu0 %vm516_vm3, %v474_v9 }
 0x23e   : > { %951 = vmatpush3.bf16.msra.mxu0 %v990_v7  ;;  %954 = vmatprep.mubr.msk.bf16.mxu0 %vm1005_vm0, %v1004_v0 }
 0x23f   : > { %952 = vmatprep.subr.bf16.mxu0 %v1004_v0 }
 0x242   : > { %953 = vmatpush3.bf16.msra.mxu0 %v991_v12 }
 0x243   : > { %958 = vmatprep.subr.bf16.mxu0 %v1004_v0 }
 0x249   : > { %955 = vmatmul.mubr.msk.bf16.vlgmr.msra.gmra.mrb[4].mxu0 %vm516_vm3, %v634_v17 }
 0x24a   : > { %959 = vmatpush3.bf16.msra.mxu0 %v992_v16  ;;  %962 = vmatprep.mubr.msk.bf16.mxu0 %vm1005_vm0, %v1004_v0 }
 0x24b   : > { %960 = vmatprep.subr.bf16.mxu0 %v1004_v0 }
 0x24e   : > { %961 = vmatpush3.bf16.msra.mxu0 %v993_v20 }
 0x255   : > { %963 = vmatmul.mubr.msk.bf16.vlgmr.msra.gmra.mrb[4].mxu0 %vm516_vm3, %v715_v24 }
 0x310   : > { %v554_v25 = vpop.f32.mrb[12].mxu1 }
 0x311   : > { %v940_v26 = vpop.f32.mrb[13].mxu1 }
 0x312   : > { %v557_v27 = vpop.f32.mrb[14].mxu1 }
 0x313   : > { %v941_v28 = vpop.f32.mrb[15].mxu1 }
 0x328   : > { %v770_v29 = vpop.f32.mrb[4].mxu0 }
 0x329   : > { %v966_v30 = vadd.f32 %v770_v29, %v554_v25  ;;  %v964_v31 = vpop.f32.mrb[5].mxu0 }
 0x32a   : > { %v773_v0 = vpop.f32.mrb[6].mxu0 }
 0x32b   : > { %v777_v32 = vpack.c.bf16 %v966_v30, %v966_v30  ;;  %v965_v33 = vpop.f32.mrb[7].mxu0 }
 0x32d   : > { %779 = vst.msk [vmem:[%s222_s21] sm:$0x3] %vm778_vm4, %v777_v32 }
 0x32e PF: > { %s15_s18 = sadd.s32 1, %s1002_s18  }
 0x32f   : > { %p12_p4 = scmp.ge.s32.totalorder %s15_s18, 4  }
 0x331   :  { %14 = sbr.rel (!%p12_p4) target bundleno = 1 (0x1), region = 82 }

// kernel: _lambda_.8
= control target key start
LH: loop header
LB: loop body
LE: loop exit
PB: predicated region body
PF: predicated region fallthrough
CT: control target
= control target key end

     0   :  { %s2554_s0 = inlined_call_operand.vmem [shape: bf16[2,16,32], index: 0, kind: input, shape index: {}]   ;;  %s2555_s1 = inlined_call_operand.vmem [shape: f32[1,32], index: 1, kind: input, shape index: {}, may-alias: {1,14}]   ;;  %s2556_s2 = inlined_call_operand.vmem [shape: f32[1,32], index: 2, kind: input, shape index: {}, may-alias: {2,13,15,19}]   ;;  %s2557_s3 = inlined_call_operand.vmem [shape: bf16[16,16], index: 3, kind: input, shape index: {}, may-alias: {3,4}]   ;;  %s2558_s4 = inlined_call_operand.vmem [shape: bf16[16,16], index: 4, kind: input, shape index: {}, may-alias: {3,4}]   ;;  %s2559_s5 = inlined_call_operand.vmem [shape: bf16[2,32,16], index: 5, kind: input, shape index: {}]   ;;  %s2560_s6 = inlined_call_operand.vmem [shape: bf16[2,32,16], index: 6, kind: input, shape index: {}]   ;;  %s2561_s7 = inlined_call_operand.vmem [shape: bf16[2,32,16], index: 7, kind: input, shape index: {}]   ;;  %s2562_s8 = inlined_call_operand.vmem [shape: f32[2,1,16], index: 8, kind: input, shape index: {}, may-alias: {8,9,10}]   ;;  %s2563_s9 = inlined_call_operand.vmem [shape: f32[2,1,16], index: 9, kind: input, shape index: {}, may-alias: {8,9,10}]   ;;  %s2564_s10 = inlined_call_operand.vmem [shape: f32[2,1,16], index: 10, kind: input, shape index: {}, may-alias: {8,9,10}]   ;;  %s2565_s11 = inlined_call_operand.vmem [shape: f32[2,16,16], index: 11, kind: input, shape index: {}]   ;;  %s2566_s12 = inlined_call_operand.vmem [shape: bf16[2,16,32], index: 12, kind: input, shape index: {}]   ;;  %s2567_s13 = inlined_call_operand.vmem [shape: f32[1,32], index: 13, kind: input, shape index: {}, may-alias: {2,13,15,19}]   ;;  %s2568_s14 = inlined_call_operand.vmem [shape: f32[1,32], index: 14, kind: input, shape index: {}, may-alias: {1,14}]   ;;  %s2569_s15 = inlined_call_operand.vmem [shape: f32[1,32], index: 15, kind: input, shape index: {}, may-alias: {2,13,15,19}]   ;;  %s2570_s16 = inlined_call_operand.vmem [shape: bf16[32,64], index: 16, kind: input, shape index: {}]   ;;  %s2571_s17 = inlined_call_operand.vmem [shape: f32[1,64], index: 17, kind: input, shape index: {}]   ;;  %s2572_s18 = inlined_call_operand.vmem [shape: bf16[64,32], index: 18, kind: input, shape index: {}]   ;;  %s2573_s19 = inlined_call_operand.vmem [shape: f32[1,32], index: 19, kind: input, shape index: {}, may-alias: {2,13,15,19}]   ;;  %s2574_s20 = inlined_call_operand.vmem [shape: bf16[2,16,32], index: 20, kind: output, shape index: {}]  }
   0x1   :  { %2575 = sst [smem:[#allocation2_spill]] %s2554_s0 }
   0x2   :  { %2576 = sst [smem:[#allocation3_spill]] %s2555_s1  ;;  %s2288_s1 = smov 0  }
   0x3   :  { %2577 = sst [smem:[#allocation4_spill]] %s2556_s2 }
   0x4   :  { %2578 = sst [smem:[#allocation5_spill]] %s2557_s3 }
   0x5   :  { %2579 = sst [smem:[#allocation6_spill]] %s2558_s4 }
   0x6 LB: > { %s1856_s22 = sadd.s32 4294967295, %s2179_s1   ;;  %p1860_p0 = scmp.ge.s32.totalorder %s2179_s1, 1  ;;  %s2179_s1 = sphi %s2288_s1, %s30_s1  }
   0x7   : > { %p562_p1 = scmp.lt.s32.totalorder %s2179_s1, 3 }
   0x9   : > { %p563_p2 = pnand %p1860_p0, %p562_p1 }
   0xa   : > { %p620_p3 = scmp.lt.s32.totalorder (!%p563_p2), %s1856_s22, 1  ;;  %s2580_s25 = sld [smem:[#allocation2_spill]] (!%p563_p2)  ;;  %vm637_vm0 = vcmask (!%p563_p2), 261120   ;;  %v2181_v15 = vmov (!%p563_p2), 0.0   ;;  %vm2182_vm1 = vmmov (!%p563_p2), 0   ;;  %v2121_v16 = vld [vmem:[%s2561_s7] sm:$0xff] (!%p563_p2)  }
   0xb   : > { %566 = sbr.rel (%p563_p2) target bundleno = 3551 (0xddf), region = 100  ;;  %1993 = vmatprep.subr.bf16.mxu0 (!%p563_p2), %v2181_v15  ;;  %2015 = vmatprep.subr.bf16.mxu1 (!%p563_p2), %v2181_v15  ;;  %s2581_s29 = sld [smem:[#allocation3_spill]] (!%p563_p2)  ;;  %vm689_vm2 = vcmask (!%p563_p2), 130048   ;;  %v2120_v35 = vld [vmem:[%s2559_s5] sm:$0xff] (!%p563_p2)   ;;  %v2122_v36 = vld [vmem:[%s2559_s5 + $0x8] sm:$0xff] (!%p563_p2)   ;;  %vm1743_vm5 = vcmask (!%p563_p2), 523264  }
   0xc   : > { %1995 = vmatprep.mubr.msk.bf16.mxu0 (!%p563_p2), %vm2182_vm1, %v2181_v15  ;;  %2019 = vmatprep.mubr.msk.bf16.mxu1 (!%p563_p2), %vm2182_vm1, %v2181_v15  ;;  %s2582_s21 = sld [smem:[#allocation4_spill]] (!%p563_p2)  ;;  %v2123_v37 = vld [vmem:[%s2561_s7 + $0x8] sm:$0xff] (!%p563_p2)   ;;  %v2124_v41 = vld [vmem:[%s2560_s6] sm:$0xff] (!%p563_p2)   ;;  %s2584_s27 = sld [smem:[#allocation6_spill]] (!%p563_p2)  ;;  %vm1798_vm6 = vcmask (!%p563_p2), 257024  }
   0xd   : > { %2016 = vmatpush3.bf16.msra.mxu1 (!%p563_p2), %v2121_v16  ;;  %v2125_v44 = vld [vmem:[%s2560_s6 + $0x8] sm:$0xff] (!%p563_p2)   ;;  %v1869_v45 = vld [vmem:[%s2562_s8] ss:$0 sm:$0xff] (!%p563_p2) }
   0xe   : > { %2017 = vmatprep.subr.bf16.mxu1 (!%p563_p2), %v2181_v15  ;;  %v1877_v47 = vld [vmem:[%s2564_s10] ss:$0 sm:$0xff] (!%p563_p2) }
   0xf   : > { %v1873_v61 = vld [vmem:[%s2563_s9] ss:$0 sm:$0xff] (!%p563_p2) }
  0x11   : > { %v1865_v25 = vld [vmem:[%s2581_s29] ss:$0 sm:$0xff] (!%p563_p2)  ;;  %2018 = vmatpush3.bf16.msra.mxu1 (!%p563_p2), %v2123_v37 }
  0x12   : > { %s2586_s22 = smov (!%p620_p3, %s1856_s22), 1  ;;  %v1866_v29 = vld [vmem:[%s2582_s21] ss:$0 sm:$0xff]  ;;  %2029 = vmatprep.subr.bf16.mxu1 %v2181_v15 }
  0x13   : > { %s1943_s23 = sshll.u32 %s2586_s22, 3 }
  0x14   : > { %s624_s3 = scalar_lea.vmem %s2580_s25, %s1943_s23  ;;  %s2583_s25 = sld [smem:[#allocation5_spill]] }
  0x15   : > { %v1948_v0 = vld [vmem:[%s624_s3] sm:$0xff]   ;;  %s629_s26 = scalar_lea.vmem %s2574_s20, %s1943_s23 }
  0x16   : > { %v2304_v1 = vunpack.c.l.bf16 %v1948_v0  ;;  %v2306_v2 = vunpack.c.h.bf16 %v1948_v0 }
  0x18   : > { %v638_v3 = vsel %vm637_vm0, %v2304_v1, 0.0  ;;  %v641_v4 = vsel %vm637_vm0, %v2306_v2, 0.0 }
  0x19   : > { %639 = vadd.xlane.f32.xlu0 %v638_v3 }
  0x1a   : > { %v2119_v34 = vld [vmem:[%s2583_s25] sm:$0xff]  }
  0x1d   : > { %642 = vadd.xlane.f32.xlu0 %v641_v4 }
  0xa6   : > { %v640_v5 = vpop.xlane.xlu0 %639 }
  0xa7   : > { %v645_v6 = vmul.f32 0.03125, %v640_v5 }
  0xa9   : > { %v647_v7 = vsub.f32 %v2304_v1, %v645_v6 }
  0xaa   : > { %v643_v8 = vpop.xlane.xlu0 %642 }
  0xab   : > { %v646_v9 = vmul.f32 0.03125, %v643_v8  ;;  %v649_v10 = vmul.f32 %v647_v7, %v647_v7  ;;  %v2126_v8 = vld [vmem:[%s2559_s5 + $0x10] sm:$0xff]  }
  0xad   : > { %v648_v11 = vsub.f32 %v2306_v2, %v646_v9  ;;  %v651_v12 = vsel %vm637_vm0, %v649_v10, 0.0  ;;  %v2127_v9 = vld [vmem:[%s2559_s5 + $0x18] sm:$0xff]   ;;  %v2128_v10 = vld [vmem:[%s2561_s7 + $0x10] sm:$0xff]  }
  0xae   : > { %652 = vadd.xlane.f32.xlu1 %v651_v12  ;;  %v932_v12 = vld [vmem:[%s2565_s11] sm:$0xff] }
  0xaf   : > { %v650_v13 = vmul.f32 %v648_v11, %v648_v11 }
  0xb1   : > { %v654_v14 = vsel %vm637_vm0, %v650_v13, 0.0 }
  0xb2   : > { %655 = vadd.xlane.f32.xlu1 %v654_v14  ;;  %v933_v14 = vld [vmem:[%s2565_s11 + $0x8] sm:$0xff] }
 0x13b   : > { %v653_v17 = vpop.xlane.xlu1 %652 }
 0x13c   : > { %v657_v18 = vmul.f32 0.03125, %v653_v17 }
 0x13e   : > { %v659_v19 = vadd.f32 1e-06, %v657_v18 }
 0x13f   : > { %v656_v20 = vpop.xlane.xlu1 %655 }
 0x140   : > { %2141 = vrsqrt.f32 %v659_v19  ;;  %v658_v21 = vmul.f32 0.03125, %v656_v20 }
 0x142   : > { %v660_v22 = vadd.f32 1e-06, %v658_v21 }
 0x144   : > { %2143 = vrsqrt.f32 %v660_v22 }
 0x14a   : > { %v2142_v23 = vpop.eup %2141 }
 0x14b   : > { %v663_v24 = vmul.f32 %v2142_v23, %v647_v7  ;;  %v1888_v23 = vld [vmem:[%s2562_s8 + $0x1] ss:$0 sm:$0xff] }
 0x14d   : > { %v671_v28 = vmul.f32 %v1865_v25, %v663_v24 }
 0x14e   : > { %v2144_v26 = vpop.eup %2143 }
 0x14f   : > { %v664_v27 = vmul.f32 %v2144_v26, %v648_v11  ;;  %v679_v31 = vadd.f32 %v1866_v29, %v671_v28  ;;  %v2129_v11 = vld [vmem:[%s2561_s7 + $0x18] sm:$0xff]  }
 0x151   : > { %v672_v30 = vmul.f32 %v1865_v25, %v664_v27 }
 0x153   : > { %v680_v32 = vadd.f32 %v1866_v29, %v672_v30 }
 0x155   : > { %v683_v33 = vpack.c.bf16 %v680_v32, %v679_v31  ;;  %v1906_v31 = vld [vmem:[%s2564_s10 + $0x1] ss:$0 sm:$0xff] }
 0x157   : > { %1994 = vmatpush3.bf16.msra.mxu0 %v683_v33 }
 0x158   : > { %1999 = vmatprep.subr.bf16.mxu0 %v2181_v15 }
 0x15a   : > { %1996 = vmatmul.mubr.msk.bf16.vlgmr.msra.gmra.mrb[0].mxu0 %vm689_vm2, %v2119_v34 }
 0x15b   : > { %2000 = vmatpush3.bf16.msra.mxu0 %v2120_v35  ;;  %2003 = vmatprep.mubr.msk.bf16.mxu0 %vm2182_vm1, %v2181_v15 }
 0x15c   : > { %2001 = vmatprep.subr.bf16.mxu0 %v2181_v15 }
 0x15f   : > { %2002 = vmatpush3.bf16.msra.mxu0 %v2122_v36 }
 0x160   : > { %2007 = vmatprep.subr.bf16.mxu0 %v2181_v15 }
 0x22d   : > { %v727_v38 = vpop.f32.mrb[0].mxu0 }
 0x22e   : > { %v1997_v39 = vpop.f32.mrb[1].mxu0 }
 0x22f   : > { %v730_v40 = vpop.f32.mrb[2].mxu0 }
 0x230   : > { %v2354_v42 = vpack.c.bf16 %v730_v40, %v727_v38  ;;  %v1998_v43 = vpop.f32.mrb[3].mxu0 }
 0x232   : > { %2004 = vmatmul.mubr.msk.bf16.vlgmr.msra.gmra.mrb[4].mxu0 %vm637_vm0, %v2354_v42  ;;  %2020 = vmatmul.mubr.msk.bf16.vlgmr.msra.gmra.mrb[0].mxu1 %vm637_vm0, %v2354_v42 }
 0x233   : > { %2008 = vmatpush3.bf16.msra.mxu0 %v2124_v41  ;;  %2011 = vmatprep.mubr.msk.bf16.mxu0 %vm2182_vm1, %v2181_v15 }
 0x234   : > { %2009 = vmatprep.subr.bf16.mxu0 %v2181_v15  ;;  %2031 = vmatprep.mubr.msk.bf16.mxu1 %vm2182_vm1, %v2181_v15 }
 0x237   : > { %2010 = vmatpush3.bf16.msra.mxu0 %v2125_v44 }
 0x238   : > { %2023 = vmatprep.subr.bf16.mxu0 %v2181_v15 }
 0x23a   : > { %2012 = vmatmul.mubr.msk.bf16.vlgmr.msra.gmra.mrb[8].mxu0 %vm637_vm0, %v2354_v42 }
 0x23b   : > { %2025 = vmatprep.mubr.msk.bf16.mxu0 %vm2182_vm1, %v2181_v15 }
 0x305   : > { %v795_v46 = vpop.f32.mrb[4].mxu0  ;;  %v923_v48 = vpop.f32.mrb[0].mxu1 }
 0x306   : > { %v2005_v49 = vpop.f32.mrb[5].mxu0  ;;  %v2021_v50 = vpop.f32.mrb[1].mxu1  ;;  %v796_v53 = vadd.f32 %v1869_v45, %v795_v46  ;;  %v924_v54 = vadd.f32 %v1877_v47, %v923_v48 }
 0x307   : > { %v798_v51 = vpop.f32.mrb[6].mxu0  ;;  %v926_v52 = vpop.f32.mrb[2].mxu1 }
 0x308   : > { %v799_v55 = vadd.f32 %v1869_v45, %v798_v51  ;;  %v927_v56 = vadd.f32 %v1877_v47, %v926_v52  ;;  %v2006_v57 = vpop.f32.mrb[7].mxu0  ;;  %v2022_v58 = vpop.f32.mrb[3].mxu1 }
 0x309   : > { %v2131_v58 = vld [vmem:[%s2560_s6 + $0x18] sm:$0xff]  }
 0x30a   : > { %v930_v59 = vpack.c.bf16 %v799_v55, %v796_v53  ;;  %v1004_v60 = vpack.c.bf16 %v927_v56, %v924_v54  ;;  %v2130_v56 = vld [vmem:[%s2560_s6 + $0x10] sm:$0xff]  }
 0x30c   : > { %2030 = vmatpush3.bf16.msra.mxu1 %v1004_v60 }
 0x30d   : > { %v859_v62 = vpop.f32.mrb[8].mxu0  ;;  %2043 = vmatprep.subr.bf16.mxu1 %v2181_v15 }
 0x30e   : > { %v2013_v63 = vpop.f32.mrb[9].mxu0  ;;  %v860_v3 = vadd.f32 %v1873_v61, %v859_v62 }
 0x30f   : > { %v862_v0 = vpop.f32.mrb[10].mxu0 }
 0x310   : > { %v863_v4 = vadd.f32 %v1873_v61, %v862_v0  ;;  %v2014_v5 = vpop.f32.mrb[11].mxu0  ;;  %v1897_v0 = vld [vmem:[%s2563_s9 + $0x1] ss:$0 sm:$0xff] }
 0x312   : > { %v931_v6 = vpack.c.bf16 %v863_v4, %v860_v3 }
 0x314   : > { %v938_v7 = vsel %vm689_vm2, %v931_v6, 0 }
 0x315   : > { %2024 = vmatpush3.bf16.xpose.msra.mxu0 %v938_v7 }
 0x316   : > { %2035 = vmatprep.subr.bf16.mxu0 %v2181_v15 }
 0x31c   : > { %2026 = vmatmul.mubr.msk.bf16.vlgmr.msra.gmra.mrb[12].mxu0 %vm689_vm2, %v930_v59 }
 0x31d   : > { %2036 = vmatpush3.bf16.msra.mxu0 %v2126_v8  ;;  %2039 = vmatprep.mubr.msk.bf16.mxu0 %vm2182_vm1, %v2181_v15 }
 0x31e   : > { %2037 = vmatprep.subr.bf16.mxu0 %v2181_v15 }
 0x321   : > { %2038 = vmatpush3.bf16.msra.mxu0 %v2127_v9 }
 0x322   : > { %2051 = vmatprep.subr.bf16.mxu0 %v2181_v15 }
 0x324   : > { %2040 = vmatmul.mubr.msk.bf16.vlgmr.msra.gmra.mrb[16].mxu0 %vm637_vm0, %v2354_v42 }
 0x325   : > { %2052 = vmatpush3.bf16.msra.mxu0 %v2128_v10  ;;  %2055 = vmatprep.mubr.msk.bf16.mxu0 %vm2182_vm1, %v2181_v15  ;;  %v1910_v10 = vld [vmem:[%s2565_s11 + $0x10] sm:$0xff] }
 0x326   : > { %2053 = vmatprep.subr.bf16.mxu0 %v2181_v15 }
 0x329   : > { %2054 = vmatpush3.bf16.msra.mxu0 %v2129_v11 }
 0x32a   : > { %2065 = vmatprep.subr.bf16.mxu0 %v2181_v15 }
 0x32c   : > { %2056 = vmatmul.mubr.msk.bf16.vlgmr.msra.gmra.mrb[20].mxu0 %vm637_vm0, %v2354_v42 }
 0x32d   : > { %2067 = vmatprep.mubr.msk.bf16.mxu0 %vm2182_vm1, %v2181_v15 }
 0x3ef   : > { %v974_v13 = vpop.f32.mrb[12].mxu0 }
 0x3f0   : > { %v975_v16 = vadd.f32 %v974_v13, %v932_v12  ;;  %v2027_v17 = vpop.f32.mrb[13].mxu0  ;;  %v1911_v12 = vld [vmem:[%s2565_s11 + $0x18] sm:$0xff] }
 0x3f1   : > { %v977_v18 = vpop.f32.mrb[14].mxu0 }
 0x3f2   : > { %v978_v19 = vadd.f32 %v977_v18, %v933_v14  ;;  %v2028_v20 = vpop.f32.mrb[15].mxu0  ;;  %v981_v21 = vsel %vm689_vm2, %v975_v16, -inf }
 0x3f3   : > { %982 = vmax.xlane.f32.xlu0 %v981_v21 }
 0x3f4   : > { %v984_v22 = vsel %vm689_vm2, %v978_v19, -inf }
 0x3f5   : > { %985 = vmax.xlane.f32.xlu1 %v984_v22 }
 0x3f7   : > { %v1111_v24 = vpop.f32.mrb[16].mxu0 }
 0x3f8   : > { %v2041_v25 = vpop.f32.mrb[17].mxu0  ;;  %v2423_v27 = vadd.f32 %v1888_v23, %v1111_v24 }
 0x3f9   : > { %v1114_v26 = vpop.f32.mrb[18].mxu0 }
 0x3fa   : > { %v2425_v28 = vadd.f32 %v1888_v23, %v1114_v26  ;;  %v2042_v29 = vpop.f32.mrb[19].mxu0 }
 0x3fc   : > { %v1250_v30 = vpack.c.bf16 %v2425_v28, %v2423_v27 }
 0x3ff   : > { %v1243_v32 = vpop.f32.mrb[20].mxu0 }
 0x400   : > { %v2057_v33 = vpop.f32.mrb[21].mxu0  ;;  %v1244_v35 = vadd.f32 %v1906_v31, %v1243_v32 }
 0x401   : > { %v1246_v34 = vpop.f32.mrb[22].mxu0 }
 0x402   : > { %v1247_v36 = vadd.f32 %v1906_v31, %v1246_v34  ;;  %v2058_v37 = vpop.f32.mrb[23].mxu0 }
 0x403   : > { %v2132_v37 = vld [vmem:[%s2566_s12] sm:$0xff]  }
 0x404   : > { %v1325_v38 = vpack.c.bf16 %v1247_v36, %v1244_v35 }
 0x406   : > { %2066 = vmatpush3.bf16.msra.mxu0 %v1325_v38 }
 0x407   : > { %2077 = vmatprep.subr.bf16.mxu0 %v2181_v15 }
 0x480   : > { %v983_v39 = vpop.xlane.xlu0 %982 }
 0x481   : > { %v987_v40 = vsub.f32 %v975_v16, %v983_v39  ;;  %v2133_v39 = vld [vmem:[%s2566_s12 + $0x8] sm:$0xff]  }
 0x482   : > { %v986_v41 = vpop.xlane.xlu1 %985 }
 0x483   : > { %v989_v43 = vmul.f32 1.442695, %v987_v40  ;;  %v988_v44 = vsub.f32 %v978_v19, %v986_v41 }
 0x485   : > { %2145 = vpow2.f32 %v989_v43  ;;  %v991_v45 = vmul.f32 1.442695, %v988_v44 }
 0x487   : > { %2147 = vpow2.f32 %v991_v45 }
 0x48f   : > { %v2146_v46 = vpop.eup %2145 }
 0x490   : > { %v993_v47 = vsel %vm689_vm2, %v2146_v46, 0.0 }
 0x491   : > { %v2148_v48 = vpop.eup %2147  ;;  %994 = vadd.xlane.f32.xlu0 %v993_v47 }
 0x492   : > { %v996_v49 = vsel %vm689_vm2, %v2148_v48, 0.0 }
 0x493   : > { %997 = vadd.xlane.f32.xlu1 %v996_v49 }
 0x51e   : > { %v995_v50 = vpop.xlane.xlu0 %994 }
 0x51f   : > { %2149 = vrcp.f32 %v995_v50 }
 0x520   : > { %v998_v51 = vpop.xlane.xlu1 %997 }
 0x521   : > { %2151 = vrcp.f32 %v998_v51 }
 0x529   : > { %v2150_v52 = vpop.eup %2149 }
 0x52a   : > { %v1001_v54 = vmul.f32 %v2150_v52, %v2146_v46 }
 0x52b   : > { %v2152_v53 = vpop.eup %2151 }
 0x52c   : > { %v1002_v55 = vmul.f32 %v2152_v53, %v2148_v48  ;;  %v1920_v53 = vld [vmem:[%s2567_s13] ss:$0 sm:$0xff] }
 0x52e   : > { %v1003_v57 = vpack.c.bf16 %v1002_v55, %v1001_v54 }
 0x530   : > { %2032 = vmatmul.mubr.msk.bf16.vlgmr.msra.gmra.mrb[4].mxu1 %vm689_vm2, %v1003_v57 }
 0x531   : > { %2044 = vmatpush3.bf16.msra.mxu1 %v2130_v56  ;;  %2047 = vmatprep.mubr.msk.bf16.mxu1 %vm2182_vm1, %v2181_v15 }
 0x532   : > { %2045 = vmatprep.subr.bf16.mxu1 %v2181_v15 }
 0x535   : > { %2046 = vmatpush3.bf16.msra.mxu1 %v2131_v58 }
 0x536   : > { %2059 = vmatprep.subr.bf16.mxu1 %v2181_v15 }
 0x538   : > { %2048 = vmatmul.mubr.msk.bf16.vlgmr.msra.gmra.mrb[8].mxu1 %vm637_vm0, %v2354_v42 }
 0x539   : > { %2061 = vmatprep.mubr.msk.bf16.mxu1 %vm2182_vm1, %v2181_v15 }
 0x603   : > { %v1042_v59 = vpop.f32.mrb[4].mxu1 }
 0x604   : > { %v2033_v60 = vpop.f32.mrb[5].mxu1 }
 0x605   : > { %v1045_v61 = vpop.f32.mrb[6].mxu1  ;;  %v2134_v60 = vld [vmem:[%s2584_s27] sm:$0xff]  }
 0x606   : > { %v1049_v62 = vpack.c.bf16 %v1045_v61, %v1042_v59  ;;  %v2034_v63 = vpop.f32.mrb[7].mxu1 }
 0x60b   : > { %v1177_v3 = vpop.f32.mrb[8].mxu1 }
 0x60c   : > { %v2049_v4 = vpop.f32.mrb[9].mxu1  ;;  %v1178_v6 = vadd.f32 %v1897_v0, %v1177_v3 }
 0x60d   : > { %v1180_v5 = vpop.f32.mrb[10].mxu1 }
 0x60e   : > { %v1181_v7 = vadd.f32 %v1897_v0, %v1180_v5  ;;  %v2050_v8 = vpop.f32.mrb[11].mxu1 }
 0x610   : > { %v1251_v9 = vpack.c.bf16 %v1181_v7, %v1178_v6 }
 0x612   : > { %v1259_v42 = vsel %vm689_vm2, %v1251_v9, 0 }
 0x613   : > { %2060 = vmatpush3.bf16.xpose.msra.mxu1 %v1259_v42 }
 0x614   : > { %2071 = vmatprep.subr.bf16.mxu1 %v2181_v15 }
 0x61a   : > { %2062 = vmatmul.mubr.msk.bf16.vlgmr.msra.gmra.mrb[12].mxu1 %vm689_vm2, %v1250_v30 }
 0x61b   : > { %2073 = vmatprep.mubr.msk.bf16.mxu1 %vm2182_vm1, %v2181_v15  ;;  %2072 = vmatpush3.bf16.msra.mxu1 %v2133_v39 }
 0x61c   : > { %2083 = vmatprep.subr.bf16.mxu1 %v2181_v15 }
 0x6ed   : > { %v1295_v11 = vpop.f32.mrb[12].mxu1 }
 0x6ee   : > { %v1296_v13 = vadd.f32 %v1910_v10, %v1295_v11  ;;  %v2063_v14 = vpop.f32.mrb[13].mxu1 }
 0x6ef   : > { %v1298_v16 = vpop.f32.mrb[14].mxu1  ;;  %v2135_v14 = vld [vmem:[%s2570_s16] sm:$0xff]  }
 0x6f0   : > { %v1299_v17 = vadd.f32 %v1911_v12, %v1298_v16  ;;  %v2064_v18 = vpop.f32.mrb[15].mxu1  ;;  %v1302_v19 = vsel %vm689_vm2, %v1296_v13, -inf  ;;  %v2136_v16 = vld [vmem:[%s2570_s16 + $0x8] sm:$0xff]  }
 0x6f1   : > { %1303 = vmax.xlane.f32.xlu0 %v1302_v19 }
 0x6f2   : > { %v1305_v20 = vsel %vm689_vm2, %v1299_v17, -inf }
 0x6f3   : > { %1306 = vmax.xlane.f32.xlu1 %v1305_v20 }
 0x77e   : > { %v1304_v21 = vpop.xlane.xlu0 %1303 }
 0x77f   : > { %v1308_v22 = vsub.f32 %v1296_v13, %v1304_v21 }
 0x780   : > { %v1307_v23 = vpop.xlane.xlu1 %1306 }
 0x781   : > { %v1310_v24 = vmul.f32 1.442695, %v1308_v22  ;;  %v1309_v25 = vsub.f32 %v1299_v17, %v1307_v23 }
 0x783   : > { %2153 = vpow2.f32 %v1310_v24  ;;  %v1312_v26 = vmul.f32 1.442695, %v1309_v25  ;;  %v1923_v24 = vld [vmem:[%s2568_s14] ss:$0 sm:$0xff] }
 0x785   : > { %2155 = vpow2.f32 %v1312_v26 }
 0x78d   : > { %v2154_v27 = vpop.eup %2153 }
 0x78e   : > { %v1314_v28 = vsel %vm689_vm2, %v2154_v27, 0.0 }
 0x78f   : > { %v2156_v29 = vpop.eup %2155  ;;  %1315 = vadd.xlane.f32.xlu0 %v1314_v28 }
 0x790   : > { %v1317_v30 = vsel %vm689_vm2, %v2156_v29, 0.0 }
 0x791   : > { %1318 = vadd.xlane.f32.xlu1 %v1317_v30 }
 0x81c   : > { %v1316_v31 = vpop.xlane.xlu0 %1315 }
 0x81d   : > { %2157 = vrcp.f32 %v1316_v31 }
 0x81e   : > { %v1319_v32 = vpop.xlane.xlu1 %1318 }
 0x81f   : > { %2159 = vrcp.f32 %v1319_v32 }
 0x827   : > { %v2158_v33 = vpop.eup %2157 }
 0x828   : > { %v1322_v35 = vmul.f32 %v2158_v33, %v2154_v27 }
 0x829   : > { %v2160_v34 = vpop.eup %2159 }
 0x82a   : > { %v1323_v36 = vmul.f32 %v2160_v34, %v2156_v29  ;;  %v1924_v29 = vld [vmem:[%s2569_s15] ss:$0 sm:$0xff] }
 0x82b   : > { %v2137_v34 = vld [vmem:[%s2572_s18] sm:$0xff]  }
 0x82c   : > { %v1324_v38 = vpack.c.bf16 %v1323_v36, %v1322_v35  ;;  %v2138_v35 = vld [vmem:[%s2572_s18 + $0x8] sm:$0xff]   ;;  %v2139_v36 = vld [vmem:[%s2572_s18 + $0x10] sm:$0xff]  }
 0x82e   : > { %2068 = vmatmul.mubr.msk.bf16.vlgmr.msra.gmra.mrb[24].mxu0 %vm689_vm2, %v1324_v38  ;;  %v1925_v38 = vld [vmem:[%s2571_s17] ss:$0 sm:$0xff] }
 0x82f   : > { %2078 = vmatpush3.bf16.msra.mxu0 %v2132_v37  ;;  %2079 = vmatprep.mubr.msk.bf16.mxu0 %vm2182_vm1, %v2181_v15  ;;  %v2140_v37 = vld [vmem:[%s2572_s18 + $0x18] sm:$0xff]  }
 0x830   : > { %2089 = vmatprep.subr.bf16.mxu0 %v2181_v15 }
 0x836   : > { %2080 = vmatmul.mubr.msk.bf16.vlgmr.msra.gmra.mrb[28].mxu0 %vm689_vm2, %v1049_v62 }
 0x837   : > { %2093 = vmatprep.mubr.msk.bf16.mxu0 %vm2182_vm1, %v2181_v15  ;;  %2090 = vmatpush3.bf16.msra.mxu0 %v2135_v14 }
 0x838   : > { %2091 = vmatprep.subr.bf16.mxu0 %v2181_v15 }
 0x83b   : > { %2092 = vmatpush3.bf16.msra.mxu0 %v2136_v16 }
 0x901   : > { %v1363_v40 = vpop.f32.mrb[24].mxu0 }
 0x902   : > { %v2069_v41 = vpop.f32.mrb[25].mxu0 }
 0x903   : > { %v1366_v43 = vpop.f32.mrb[26].mxu0 }
 0x904   : > { %v1370_v44 = vpack.c.bf16 %v1366_v43, %v1363_v40  ;;  %v2070_v45 = vpop.f32.mrb[27].mxu0 }
 0x906   : > { %2074 = vmatmul.mubr.msk.bf16.vlgmr.msra.gmra.mrb[16].mxu1 %vm689_vm2, %v1370_v44 }
 0x907   : > { %2085 = vmatprep.mubr.msk.bf16.mxu1 %vm2182_vm1, %v2181_v15 }
 0x909   : > { %v1467_v46 = vpop.f32.mrb[28].mxu0 }
 0x90a   : > { %v2081_v47 = vpop.f32.mrb[29].mxu0 }
 0x90b   : > { %v1470_v48 = vpop.f32.mrb[30].mxu0 }
 0x90c   : > { %v2082_v49 = vpop.f32.mrb[31].mxu0 }
 0x9d9   : > { %v1417_v50 = vpop.f32.mrb[16].mxu1 }
 0x9da   : > { %v1468_v51 = vadd.f32 %v1467_v46, %v1417_v50  ;;  %v2075_v52 = vpop.f32.mrb[17].mxu1 }
 0x9db   : > { %v1420_v54 = vpop.f32.mrb[18].mxu1 }
 0x9dc   : > { %v1471_v55 = vadd.f32 %v1470_v48, %v1420_v54  ;;  %v2076_v56 = vpop.f32.mrb[19].mxu1  ;;  %v1481_v57 = vadd.f32 %v1920_v53, %v1468_v51 }
 0x9de   : > { %v1482_v58 = vadd.f32 %v1920_v53, %v1471_v55 }
 0x9e0   : > { %v1485_v59 = vpack.c.bf16 %v1482_v58, %v1481_v57 }
 0x9e2   : > { %2084 = vmatpush3.bf16.msra.mxu1 %v1485_v59 }
 0x9e3   : > { %2097 = vmatprep.subr.bf16.mxu1 %v2181_v15 }
 0x9e5   : > { %2086 = vmatmul.mubr.msk.bf16.vlgmr.msra.gmra.mrb[20].mxu1 %vm689_vm2, %v2134_v60 }
 0x9e6   : > { %2105 = vmatprep.mubr.msk.bf16.mxu1 %vm2182_vm1, %v2181_v15  ;;  %2098 = vmatpush3.bf16.msra.mxu1 %v2137_v34  ;;  %v1933_v34 = vld [vmem:[%s2573_s19] ss:$0 sm:$0xff] }
 0x9e7   : > { %2099 = vmatprep.subr.bf16.mxu1 %v2181_v15 }
 0x9ea   : > { %2100 = vmatpush3.bf16.msra.mxu1 %v2138_v35 }
 0x9eb   : > { %2101 = vmatprep.subr.bf16.mxu1 %v2181_v15 }
 0x9ee   : > { %2102 = vmatpush3.bf16.msra.mxu1 %v2139_v36 }
 0x9ef   : > { %2103 = vmatprep.subr.bf16.mxu1 %v2181_v15 }
 0x9f2   : > { %2104 = vmatpush3.bf16.msra.mxu1 %v2140_v37 }
 0xab8   : > { %v1528_v61 = vpop.f32.mrb[20].mxu1 }
 0xab9   : > { %v2496_v62 = vadd.f32 %v2304_v1, %v1528_v61  ;;  %v2087_v63 = vpop.f32.mrb[21].mxu1 }
 0xaba   : > { %v1531_v0 = vpop.f32.mrb[22].mxu1 }
 0xabb   : > { %v2499_v3 = vadd.f32 %v2306_v2, %v1531_v0  ;;  %v1539_v4 = vsel %vm637_vm0, %v2496_v62, 0.0  ;;  %v2088_v5 = vpop.f32.mrb[23].mxu1 }
 0xabc   : > { %1540 = vadd.xlane.f32.xlu0 %v1539_v4 }
 0xabd   : > { %v1542_v6 = vsel %vm637_vm0, %v2499_v3, 0.0 }
 0xabe   : > { %1543 = vadd.xlane.f32.xlu1 %v1542_v6 }
 0xb49   : > { %v1541_v7 = vpop.xlane.xlu0 %1540 }
 0xb4a   : > { %v1545_v8 = vmul.f32 0.03125, %v1541_v7 }
 0xb4b   : > { %v1544_v9 = vpop.xlane.xlu1 %1543 }
 0xb4c   : > { %v1547_v1 = vsub.f32 %v2496_v62, %v1545_v8  ;;  %v1546_v42 = vmul.f32 0.03125, %v1544_v9 }
 0xb4e   : > { %v1548_v10 = vsub.f32 %v2499_v3, %v1546_v42  ;;  %v1549_v11 = vmul.f32 %v1547_v1, %v1547_v1 }
 0xb50   : > { %v1551_v2 = vsel %vm637_vm0, %v1549_v11, 0.0  ;;  %v1550_v12 = vmul.f32 %v1548_v10, %v1548_v10 }
 0xb51   : > { %1552 = vadd.xlane.f32.xlu0 %v1551_v2 }
 0xb52   : > { %v1554_v13 = vsel %vm637_vm0, %v1550_v12, 0.0 }
 0xb53   : > { %1555 = vadd.xlane.f32.xlu1 %v1554_v13 }
 0xbde   : > { %v1553_v17 = vpop.xlane.xlu0 %1552 }
 0xbdf   : > { %v1557_v18 = vmul.f32 0.03125, %v1553_v17 }
 0xbe0   : > { %v1556_v19 = vpop.xlane.xlu1 %1555 }
 0xbe1   : > { %v1559_v20 = vadd.f32 1e-06, %v1557_v18  ;;  %v1558_v21 = vmul.f32 0.03125, %v1556_v19 }
 0xbe3   : > { %2161 = vrsqrt.f32 %v1559_v20  ;;  %v1560_v22 = vadd.f32 1e-06, %v1558_v21 }
 0xbe5   : > { %2163 = vrsqrt.f32 %v1560_v22 }
 0xbed   : > { %v2162_v23 = vpop.eup %2161 }
 0xbee   : > { %v1563_v25 = vmul.f32 %v2162_v23, %v1547_v1 }
 0xbef   : > { %v2164_v26 = vpop.eup %2163 }
 0xbf0   : > { %v1571_v27 = vmul.f32 %v1923_v24, %v1563_v25  ;;  %v1564_v28 = vmul.f32 %v2164_v26, %v1548_v10 }
 0xbf2   : > { %v1572_v30 = vmul.f32 %v1923_v24, %v1564_v28  ;;  %v1579_v31 = vadd.f32 %v1924_v29, %v1571_v27 }
 0xbf4   : > { %v1580_v32 = vadd.f32 %v1924_v29, %v1572_v30 }
 0xbf6   : > { %v1581_v33 = vpack.c.bf16 %v1580_v32, %v1579_v31 }
 0xbf8   : > { %2094 = vmatmul.mubr.msk.bf16.vlgmr.msra.gmra.mrb[32].mxu0 %vm637_vm0, %v1581_v33 }
 0xccb   : > { %v1642_v39 = vpop.f32.mrb[32].mxu0 }
 0xccc   : > { %v1643_v40 = vadd.f32 %v1925_v38, %v1642_v39  ;;  %v2095_v41 = vpop.f32.mrb[33].mxu0 }
 0xccd   : > { %v1645_v43 = vpop.f32.mrb[34].mxu0 }
 0xcce   : > { %v1649_v44 = vmul.f32 0.70710677, %v1643_v40  ;;  %v1646_v45 = vadd.f32 %v1925_v38, %v1645_v43  ;;  %v2096_v46 = vpop.f32.mrb[35].mxu0  ;;  %v1697_v28 = vmul.f32 0.5, %v1643_v40 }
 0xcd0   : > { %v1651_v47 = vand.u32 2147483647, %v1649_v44  ;;  %v1650_v48 = vmul.f32 0.70710677, %v1646_v45  ;;  %vm1691_vm3 = vcmp.lt.f32.partialorder %v1649_v44, 0.0  ;;  %v1698_v29 = vmul.f32 0.5, %v1646_v45 }
 0xcd2   : > { %v1653_v49 = vmul.f32 0.3275911, %v1651_v47  ;;  %v1652_v15 = vand.u32 2147483647, %v1650_v48  ;;  %v1679_v53 = vsub.f32 0.0, %v1651_v47  ;;  %vm1692_vm4 = vcmp.lt.f32.partialorder %v1650_v48, 0.0 }
 0xcd4   : > { %v1655_v50 = vadd.f32 1.0, %v1653_v49  ;;  %v1654_v51 = vmul.f32 0.3275911, %v1652_v15  ;;  %v1680_v54 = vsub.f32 0.0, %v1652_v15  ;;  %v1681_v56 = vmul.f32 %v1679_v53, %v1651_v47 }
 0xcd6   : > { %2165 = vrcp.f32 %v1655_v50  ;;  %v1656_v52 = vadd.f32 1.0, %v1654_v51  ;;  %v1682_v60 = vmul.f32 %v1680_v54, %v1652_v15  ;;  %v1683_v61 = vmul.f32 1.442695, %v1681_v56 }
 0xcd8   : > { %2167 = vrcp.f32 %v1656_v52  ;;  %v1685_v6 = vmul.f32 1.442695, %v1682_v60 }
 0xcd9   : > { %2169 = vpow2.f32 %v1683_v61 }
 0xcda   : > { %2171 = vpow2.f32 %v1685_v6 }
 0xce0   : > { %v2166_v55 = vpop.eup %2165 }
 0xce1   : > { %v1661_v57 = vmul.f32 1.0614054, %v2166_v55 }
 0xce2   : > { %v2168_v58 = vpop.eup %2167 }
 0xce3   : > { %v1929_v59 = vadd.f32 -1.4531521, %v1661_v57  ;;  %v1662_v63 = vmul.f32 1.0614054, %v2168_v58  ;;  %v2170_v14 = vpop.eup %2169 }
 0xce4   : > { %v2172_v19 = vpop.eup %2171 }
 0xce5   : > { %v1665_v0 = vmul.f32 %v2166_v55, %v1929_v59  ;;  %v1930_v4 = vadd.f32 -1.4531521, %v1662_v63 }
 0xce7   : > { %v1667_v5 = vadd.f32 1.4214138, %v1665_v0  ;;  %v1666_v7 = vmul.f32 %v2168_v58, %v1930_v4 }
 0xce9   : > { %v1669_v8 = vmul.f32 %v2166_v55, %v1667_v5  ;;  %v1668_v9 = vadd.f32 1.4214138, %v1666_v7 }
 0xceb   : > { %v1931_v1 = vadd.f32 -0.28449672, %v1669_v8  ;;  %v1670_v42 = vmul.f32 %v2168_v58, %v1668_v9 }
 0xced   : > { %v1673_v10 = vmul.f32 %v2166_v55, %v1931_v1  ;;  %v1932_v11 = vadd.f32 -0.28449672, %v1670_v42 }
 0xcef   : > { %v1675_v2 = vadd.f32 0.2548296, %v1673_v10  ;;  %v1674_v12 = vmul.f32 %v2168_v58, %v1932_v11 }
 0xcf1   : > { %v1677_v13 = vmul.f32 %v2166_v55, %v1675_v2  ;;  %v1676_v16 = vadd.f32 0.2548296, %v1674_v12 }
 0xcf3   : > { %v1687_v17 = vmul.f32 %v2170_v14, %v1677_v13  ;;  %v1678_v18 = vmul.f32 %v2168_v58, %v1676_v16 }
 0xcf5   : > { %v1689_v20 = vsub.f32 1.0, %v1687_v17  ;;  %v1688_v21 = vmul.f32 %v2172_v19, %v1678_v18 }
 0xcf7   : > { %v1693_v22 = vsub.f32 0.0, %v1689_v20  ;;  %v1690_v23 = vsub.f32 1.0, %v1688_v21 }
 0xcf9   : > { %v1695_v24 = vsel %vm1691_vm3, %v1693_v22, %v1689_v20  ;;  %v1694_v25 = vsub.f32 0.0, %v1690_v23 }
 0xcfa   : > { %v1699_v26 = vadd.f32 1.0, %v1695_v24 }
 0xcfb   : > { %v1696_v27 = vsel %vm1692_vm4, %v1694_v25, %v1690_v23 }
 0xcfc   : > { %v1700_v30 = vadd.f32 1.0, %v1696_v27  ;;  %v1701_v31 = vmul.f32 %v1699_v26, %v1697_v28 }
 0xcfe   : > { %v1702_v32 = vmul.f32 %v1700_v30, %v1698_v29 }
 0xd00   : > { %v1703_v33 = vpack.c.bf16 %v1702_v32, %v1701_v31 }
 0xd02   : > { %2106 = vmatmul.mubr.msk.bf16.vlgmr.msra.gmra.mrb[24].mxu1 %vm1743_vm5, %v1703_v33 }
 0xdd5   : > { %v1781_v35 = vpop.f32.mrb[24].mxu1 }
 0xdd6   : > { %v1782_v36 = vadd.f32 %v1933_v34, %v1781_v35  ;;  %v2107_v37 = vpop.f32.mrb[25].mxu1 }
 0xdd7   : > { %v1784_v38 = vpop.f32.mrb[26].mxu1 }
 0xdd8   : > { %v1788_v39 = vadd.f32 %v1782_v36, %v2496_v62  ;;  %v1785_v41 = vadd.f32 %v1933_v34, %v1784_v38  ;;  %v2108_v40 = vpop.f32.mrb[27].mxu1 }
 0xdda   : > { %v1945_v43 = vpack.c.bf16 %v1788_v39, %v1788_v39  ;;  %v1789_v44 = vadd.f32 %v1785_v41, %v2499_v3 }
 0xddc   : > { %1799 = vst.msk [vmem:[%s629_s26] sm:$0xf] %vm1798_vm6, %v1945_v43  ;;  %v1946_v45 = vpack.c.bf16 %v1789_v44, %v1789_v44 }
 0xdde   : > { %1800 = vst.msk [vmem:[%s629_s26 + $0x4] sm:$0xf] %vm1798_vm6, %v1946_v45 }
 0xddf PF: > { %s30_s1 = sadd.s32 1, %s2179_s1  }
 0xde0   : > { %p27_p4 = scmp.ge.s32.totalorder %s30_s1, 4  }
 0xde2   :  { %29 = sbr.rel (!%p27_p4) target bundleno = 6 (0x6), region = 138 }

// kernel: _lambda_.13
= control target key start
LH: loop header
LB: loop body
LE: loop exit
PB: predicated region body
PF: predicated region fallthrough
CT: control target
= control target key end

     0   :  { %vm21_vm0 = vcmask 519168   ;;  %s185_s0 = inlined_call_operand.vmem [shape: bf16[2,4,64], index: 0, kind: input, shape index: {}]   ;;  %s186_s1 = inlined_call_operand.vmem [shape: f32[1,64], index: 1, kind: input, shape index: {}]   ;;  %s187_s2 = inlined_call_operand.vmem [shape: f32[1,64], index: 2, kind: input, shape index: {}]   ;;  %s188_s3 = inlined_call_operand.hbm [shape: f32[2,64], index: 3, kind: output, shape index: {}]  }
   0x1   :  { %v15_v0 = vld [vmem:[%s185_s0] sm:$0x3]  ;;  %v16_v1 = vld [vmem:[%s185_s0 + $0x2] sm:$0x3] }
   0x2   :  { %v17_v2 = vunpack.c.l.bf16 %v15_v0  ;;  %v18_v3 = vunpack.c.l.bf16 %v16_v1 }
   0x3   :  { %8 = vsyncpa [#allocation3], 0  ;;  %v103_v23 = vld [vmem:[%s186_s1] ss:$0 sm:$0xff]  ;;  %s134_s1 = smov [#allocation2]   ;;  %vm84_vm1 = vcmask 1041409  }
   0x4   :  { %v22_v4 = vsel %vm21_vm0, %v17_v2, 0.0  ;;  %v25_v5 = vsel %vm21_vm0, %v18_v3, 0.0  ;;  %v104_v25 = vld [vmem:[%s187_s2] ss:$0 sm:$0xff]  ;;  %s95_s2 = sshll.u32 %s134_s1, 4  ;;  %vm87_vm2 = vcmask 517120   ;;  %s96_s2 = int_to_ptr.vmem [resolvable:$true] %s95_s2 }
   0x5   :  { %23 = vadd.xlane.f32.xlu0 %v22_v4  ;;  %s110_s19 = scalar_lea.vmem %s96_s2, 32  ;;  %p115_p1 = scmp.lt.s32.totalorder %s96_s2, %s96_s2 }
   0x6   :  { %p111_p0 = scmp.ne.s32.totalorder %s96_s2, %s110_s19  ;;  %p116_p2 = scmp.lt.s32.totalorder %s110_s19, %s110_s19 }
   0x8   :  { %p117_p3 = por %p116_p2, %p115_p1 }
   0x9   :  { %26 = vadd.xlane.f32.xlu0 %v25_v5 }
   0xa   :  { %p118_p4 = pnand %p117_p3, %p111_p0 }
  0x92   :  { %v24_v6 = vpop.xlane.xlu0 %23 }
  0x93   :  { %v29_v7 = vmul.f32 0.015625, %v24_v6 }
  0x95   :  { %v31_v8 = vsub.f32 %v17_v2, %v29_v7 }
  0x96   :  { %v27_v9 = vpop.xlane.xlu0 %26 }
  0x97   :  { %v30_v10 = vmul.f32 0.015625, %v27_v9  ;;  %v33_v11 = vmul.f32 %v31_v8, %v31_v8 }
  0x99   :  { %v32_v12 = vsub.f32 %v18_v3, %v30_v10  ;;  %v35_v13 = vsel %vm21_vm0, %v33_v11, 0.0 }
  0x9a   :  { %36 = vadd.xlane.f32.xlu1 %v35_v13 }
  0x9b   :  { %v34_v14 = vmul.f32 %v32_v12, %v32_v12 }
  0x9d   :  { %v38_v15 = vsel %vm21_vm0, %v34_v14, 0.0 }
  0x9e   :  { %39 = vadd.xlane.f32.xlu1 %v38_v15 }
 0x127   :  { %v37_v16 = vpop.xlane.xlu1 %36 }
 0x128   :  { %v41_v17 = vmul.f32 0.015625, %v37_v16 }
 0x12a   :  { %v43_v18 = vadd.f32 1e-06, %v41_v17 }
 0x12b   :  { %v40_v19 = vpop.xlane.xlu1 %39 }
 0x12c   :  { %106 = vrsqrt.f32 %v43_v18  ;;  %v42_v20 = vmul.f32 0.015625, %v40_v19 }
 0x12e   :  { %v44_v21 = vadd.f32 1e-06, %v42_v20 }
 0x130   :  { %108 = vrsqrt.f32 %v44_v21 }
 0x136   :  { %v107_v22 = vpop.eup %106 }
 0x137   :  { %v47_v24 = vmul.f32 %v107_v22, %v31_v8 }
 0x139   :  { %v55_v26 = vmul.f32 %v103_v23, %v47_v24 }
 0x13a   :  { %v109_v27 = vpop.eup %108 }
 0x13b   :  { %v48_v28 = vmul.f32 %v109_v27, %v32_v12  ;;  %v63_v29 = vadd.f32 %v104_v25, %v55_v26 }
 0x13d   :  { %v56_v30 = vmul.f32 %v103_v23, %v48_v28  ;;  %v65_v31 = vsel %vm21_vm0, %v63_v29, 0.0 }
 0x13e   :  { %v66_v32 = vrot.slane %v65_v31, 4 }
 0x13f   :  { %v64_v33 = vadd.f32 %v104_v25, %v56_v30 }
 0x140   :  { %v67_v34 = vadd.f32 %v66_v32, %v65_v31 }
 0x141   :  { %v72_v35 = vsel %vm21_vm0, %v64_v33, 0.0 }
 0x142   :  { %v68_v36 = vrot.slane %v67_v34, 2  ;;  %v73_v37 = vrot.slane %v72_v35, 4 }
 0x144   :  { %v69_v38 = vadd.f32 %v68_v36, %v67_v34  ;;  %v74_v39 = vadd.f32 %v73_v37, %v72_v35 }
 0x146   :  { %v70_v40 = vrot.slane %v69_v38, 1  ;;  %v75_v41 = vrot.slane %v74_v39, 2 }
 0x148   :  { %v76_v42 = vadd.f32 %v75_v41, %v74_v39  ;;  %v71_v43 = vadd.f32 %v70_v40, %v69_v38 }
 0x14a   :  { %v77_v44 = vrot.slane %v76_v42, 1  ;;  %v80_v46 = vmul.f32 0.25, %v71_v43 }
 0x14c   :  { %v78_v45 = vadd.f32 %v77_v44, %v76_v42 }
 0x14e   :  { %v81_v47 = vmul.f32 0.25, %v78_v45 }
 0x150   :  { %v85_v48 = vsel %vm84_vm1, %v81_v47, %v80_v46 }
 0x151   :  { %88 = vst.msk [vmem:[#allocation2] sm:$0x3] %vm87_vm2, %v85_v48 }
 0x152   :  { %121 = shalt.err (!%p118_p4)
}
 0x153   :  { %s122_s22 = scalar_lea.hbm %s188_s3, 32 }
 0x154   :  { %p123_p5 = scmp.ne.s32.totalorder %s188_s3, %s122_s22  ;;  %p126_p6 = scmp.lt.u32.totalorder %s122_s22, %s188_s3 }
 0x156   :  { %p128_p7 = pnand %p126_p6, %p123_p5 }
 0x158   :  { %131 = shalt.err (!%p128_p7)
}
 0x159   :  { %98 = dma.vmem_to_hbm [thread:$0]  %s96_s2, 32, %s188_s3, [#allocation3]  }
 0x15a   :  { %132 = dma.done.wait [#allocation3], 32  }
 0x15b   :  { %133 = vsyncadd [#allocation3], 4294967264 }
 0x15c   :  { %102 = vsyncpa [#allocation3], 1 }

// kernel: _lambda_.11
= control target key start
LH: loop header
LB: loop body
LE: loop exit
PB: predicated region body
PF: predicated region fallthrough
CT: control target
= control target key end

     0   :  { %s3848_s0 = inlined_call_operand.vmem [shape: bf16[2,4,64], index: 0, kind: input, shape index: {}]   ;;  %s3849_s1 = inlined_call_operand.vmem [shape: f32[1,64], index: 1, kind: input, shape index: {}, may-alias: {1,14}]   ;;  %s3850_s2 = inlined_call_operand.vmem [shape: f32[1,64], index: 2, kind: input, shape index: {}, may-alias: {2,13,15,19}]   ;;  %s3851_s3 = inlined_call_operand.vmem [shape: bf16[4,4], index: 3, kind: input, shape index: {}, may-alias: {3,4}]   ;;  %s3852_s4 = inlined_call_operand.vmem [shape: bf16[4,4], index: 4, kind: input, shape index: {}, may-alias: {3,4}]   ;;  %s3853_s5 = inlined_call_operand.vmem [shape: bf16[4,64,16], index: 5, kind: input, shape index: {}]   ;;  %s3854_s6 = inlined_call_operand.vmem [shape: bf16[4,64,16], index: 6, kind: input, shape index: {}]   ;;  %s3855_s7 = inlined_call_operand.vmem [shape: bf16[4,64,16], index: 7, kind: input, shape index: {}]   ;;  %s3856_s8 = inlined_call_operand.vmem [shape: f32[4,1,16], index: 8, kind: input, shape index: {}, may-alias: {8,9,10}]   ;;  %s3857_s9 = inlined_call_operand.vmem [shape: f32[4,1,16], index: 9, kind: input, shape index: {}, may-alias: {8,9,10}]   ;;  %s3858_s10 = inlined_call_operand.vmem [shape: f32[4,1,16], index: 10, kind: input, shape index: {}, may-alias: {8,9,10}]   ;;  %s3859_s11 = inlined_call_operand.vmem [shape: f32[4,4,4], index: 11, kind: input, shape index: {}]   ;;  %s3860_s12 = inlined_call_operand.vmem [shape: bf16[4,16,64], index: 12, kind: input, shape index: {}]   ;;  %s3861_s13 = inlined_call_operand.vmem [shape: f32[1,64], index: 13, kind: input, shape index: {}, may-alias: {2,13,15,19}]   ;;  %s3862_s14 = inlined_call_operand.vmem [shape: f32[1,64], index: 14, kind: input, shape index: {}, may-alias: {1,14}]   ;;  %s3863_s15 = inlined_call_operand.vmem [shape: f32[1,64], index: 15, kind: input, shape index: {}, may-alias: {2,13,15,19}]   ;;  %s3864_s16 = inlined_call_operand.vmem [shape: bf16[64,128], index: 16, kind: input, shape index: {}]   ;;  %s3865_s17 = inlined_call_operand.vmem [shape: f32[1,128], index: 17, kind: input, shape index: {}]   ;;  %s3866_s18 = inlined_call_operand.vmem [shape: bf16[128,64], index: 18, kind: input, shape index: {}]   ;;  %s3867_s19 = inlined_call_operand.vmem [shape: f32[1,64], index: 19, kind: input, shape index: {}, may-alias: {2,13,15,19}]   ;;  %s3868_s20 = inlined_call_operand.vmem [shape: bf16[2,4,64], index: 20, kind: output, shape index: {}]  }
   0x1   :  { %3869 = sst [smem:[#allocation2_spill]] %s3848_s0 }
   0x2   :  { %3870 = sst [smem:[#allocation3_spill]] %s3849_s1  ;;  %s3367_s1 = smov 0  }
   0x3   :  { %3871 = sst [smem:[#allocation4_spill]] %s3850_s2 }
   0x4 LB: > { %s2599_s22 = sadd.s32 4294967295, %s3258_s1   ;;  %p2603_p0 = scmp.ge.s32.totalorder %s3258_s1, 1  ;;  %s3258_s1 = sphi %s3367_s1, %s30_s1  }
   0x5   : > { %p561_p1 = scmp.lt.s32.totalorder %s3258_s1, 3 }
   0x7   : > { %p562_p2 = pnand %p2603_p0, %p561_p1 }
   0x8   : > { %p617_p3 = scmp.lt.s32.totalorder (!%p562_p2), %s2599_s22, 1  ;;  %vm630_vm0 = vcmask (!%p562_p2), 519168   ;;  %s3872_s25 = sld [smem:[#allocation2_spill]] (!%p562_p2)  ;;  %v3164_v8 = vld [vmem:[%s3853_s5] sm:$0xff] (!%p562_p2)   ;;  %v3260_v9 = vmov (!%p562_p2), 0.0   ;;  %v3166_v11 = vld [vmem:[%s3853_s5 + $0x8] sm:$0xff] (!%p562_p2)  }
   0x9   : > { %565 = sbr.rel (%p562_p2) target bundleno = 5051 (0x13bb), region = 100  ;;  %2906 = vmatprep.subr.bf16.mxu0 (!%p562_p2), %v3260_v9  ;;  %2918 = vmatprep.subr.bf16.mxu1 (!%p562_p2), %v3260_v9  ;;  %v3165_v10 = vld [vmem:[%s3854_s6] sm:$0xff] (!%p562_p2)   ;;  %v3167_v12 = vld [vmem:[%s3854_s6 + $0x8] sm:$0xff] (!%p562_p2)   ;;  %v3168_v13 = vld [vmem:[%s3853_s5 + $0x10] sm:$0xff] (!%p562_p2)   ;;  %vm3261_vm1 = vmmov (!%p562_p2), 0   ;;  %s3873_s0 = sld [smem:[#allocation3_spill]] (!%p562_p2) }
   0xa   : > { %2907 = vmatpush3.bf16.msra.mxu0 (!%p562_p2), %v3164_v8  ;;  %2919 = vmatpush3.bf16.msra.mxu1 (!%p562_p2), %v3165_v10  ;;  %v3169_v14 = vld [vmem:[%s3854_s6 + $0x10] sm:$0xff] (!%p562_p2)   ;;  %v3170_v15 = vld [vmem:[%s3853_s5 + $0x18] sm:$0xff] (!%p562_p2)   ;;  %s3874_s2 = sld [smem:[#allocation4_spill]] (!%p562_p2)  ;;  %vm699_vm2 = vcmask (!%p562_p2), 523264   ;;  %v3172_v26 = vld [vmem:[%s3855_s7] sm:$0xff] (!%p562_p2)   ;;  %vm904_vm3 = vcmask (!%p562_p2), 130048  }
   0xb   : > { %2908 = vmatprep.subr.bf16.mxu0 (!%p562_p2), %v3260_v9  ;;  %2920 = vmatprep.subr.bf16.mxu1 (!%p562_p2), %v3260_v9  ;;  %v3171_v16 = vld [vmem:[%s3854_s6 + $0x18] sm:$0xff] (!%p562_p2)   ;;  %v3173_v28 = vld [vmem:[%s3855_s7 + $0x8] sm:$0xff] (!%p562_p2)   ;;  %v3174_v29 = vld [vmem:[%s3855_s7 + $0x10] sm:$0xff] (!%p562_p2)   ;;  %vm969_vm4 = vcmask (!%p562_p2), 1041408   ;;  %vm951_vm5 = vcmask (!%p562_p2), 27648   ;;  %vm965_vm6 = vcmask (!%p562_p2), 31744  }
   0xc   : > { %2914 = vmatprep.mubr.msk.bf16.mxu0 (!%p562_p2), %vm3261_vm1, %v3260_v9  ;;  %2926 = vmatprep.mubr.msk.bf16.mxu1 (!%p562_p2), %vm3261_vm1, %v3260_v9  ;;  %v3175_v30 = vld [vmem:[%s3855_s7 + $0x18] sm:$0xff] (!%p562_p2)   ;;  %v2614_v31 = vld [vmem:[%s3857_s9] ss:$0 sm:$0xff] (!%p562_p2)  ;;  %v3177_v48 = vld [vmem:[%s3853_s5 + $0x28] sm:$0xff] (!%p562_p2)   ;;  %vm2544_vm8 = vcmask (!%p562_p2), 517120  }
   0xd   : > { %v2608_v42 = vld [vmem:[%s3856_s8] ss:$0 sm:$0xff] (!%p562_p2)  ;;  %v3178_v53 = vld [vmem:[%s3853_s5 + $0x30] sm:$0xff] (!%p562_p2)   ;;  %v3179_v57 = vld [vmem:[%s3853_s5 + $0x38] sm:$0xff] (!%p562_p2)  }
   0xe   : > { %2909 = vmatpush3.bf16.msra.mxu0 (!%p562_p2), %v3166_v11  ;;  %2921 = vmatpush3.bf16.msra.mxu1 (!%p562_p2), %v3167_v12  ;;  %v3176_v45 = vld [vmem:[%s3853_s5 + $0x20] sm:$0xff] (!%p562_p2)   ;;  %v3181_v59 = vld [vmem:[%s3855_s7 + $0x28] sm:$0xff] (!%p562_p2)   ;;  %v3182_v60 = vld [vmem:[%s3855_s7 + $0x30] sm:$0xff] (!%p562_p2)  }
   0xf   : > { %2910 = vmatprep.subr.bf16.mxu0 (!%p562_p2), %v3260_v9  ;;  %2922 = vmatprep.subr.bf16.mxu1 (!%p562_p2), %v3260_v9  ;;  %v2606_v21 = vld [vmem:[%s3873_s0] ss:$0 sm:$0xff] (!%p562_p2)  ;;  %v3183_v61 = vld [vmem:[%s3855_s7 + $0x38] sm:$0xff] (!%p562_p2)  }
  0x10   : > { %s3876_s22 = smov (!%p617_p3, %s2599_s22), 1  ;;  %v2607_v23 = vld [vmem:[%s3874_s2] ss:$0 sm:$0xff] }
  0x11   : > { %s2604_s23 = sshll.u32 %s3876_s22, 1  ;;  %v2620_v47 = vld [vmem:[%s3858_s10] ss:$0 sm:$0xff] }
  0x12   : > { %s620_s26 = scalar_lea.vmem %s3872_s25, %s2604_s23  ;;  %2911 = vmatpush3.bf16.msra.mxu0 %v3168_v13  ;;  %2923 = vmatpush3.bf16.msra.mxu1 %v3169_v14  ;;  %v3180_v58 = vld [vmem:[%s3855_s7 + $0x20] sm:$0xff]   ;;  %s624_s25 = scalar_lea.vmem %s3868_s20, %s2604_s23 }
  0x13   : > { %v626_v0 = vld [vmem:[%s620_s26] sm:$0x3]  ;;  %2912 = vmatprep.subr.bf16.mxu0 %v3260_v9  ;;  %2924 = vmatprep.subr.bf16.mxu1 %v3260_v9 }
  0x14   : > { %v3383_v1 = vunpack.c.l.bf16 %v626_v0  ;;  %v903_v62 = vld [vmem:[%s3859_s11] sm:$0xf] }
  0x16   : > { %v631_v2 = vsel %vm630_vm0, %v3383_v1, 0.0  ;;  %2913 = vmatpush3.bf16.msra.mxu0 %v3170_v15  ;;  %2925 = vmatpush3.bf16.msra.mxu1 %v3171_v16 }
  0x17   : > { %632 = vadd.xlane.f32.xlu0 %v631_v2  ;;  %2930 = vmatprep.subr.bf16.mxu0 %v3260_v9 }
  0x18   : > { %2948 = vmatprep.subr.bf16.mxu1 %v3260_v9 }
  0xa4   : > { %v633_v3 = vpop.xlane.xlu0 %632 }
  0xa5   : > { %v635_v4 = vmul.f32 0.015625, %v633_v3 }
  0xa7   : > { %v636_v5 = vsub.f32 %v3383_v1, %v635_v4 }
  0xa9   : > { %v637_v6 = vmul.f32 %v636_v5, %v636_v5 }
  0xab   : > { %v638_v7 = vsel %vm630_vm0, %v637_v6, 0.0 }
  0xac   : > { %639 = vadd.xlane.f32.xlu0 %v638_v7 }
 0x139   : > { %v640_v17 = vpop.xlane.xlu0 %639 }
 0x13a   : > { %v641_v18 = vmul.f32 0.015625, %v640_v17 }
 0x13c   : > { %v642_v19 = vadd.f32 1e-06, %v641_v18 }
 0x13e   : > { %3228 = vrsqrt.f32 %v642_v19 }
 0x148   : > { %v3229_v20 = vpop.eup %3228 }
 0x149   : > { %v644_v22 = vmul.f32 %v3229_v20, %v636_v5 }
 0x14b   : > { %v651_v24 = vmul.f32 %v2606_v21, %v644_v22 }
 0x14d   : > { %v658_v25 = vadd.f32 %v2607_v23, %v651_v24  ;;  %v3184_v23 = vld [vmem:[%s3854_s6 + $0x20] sm:$0xff]  }
 0x14f   : > { %v3436_v27 = vpack.c.bf16 %v658_v25, %v658_v25  ;;  %v3185_v25 = vld [vmem:[%s3854_s6 + $0x28] sm:$0xff]  }
 0x151   : > { %2915 = vmatmul.mubr.msk.bf16.vlgmr.msra.gmra.mrb[0].mxu0 %vm699_vm2, %v3436_v27  ;;  %2927 = vmatmul.mubr.msk.bf16.vlgmr.msra.gmra.mrb[0].mxu1 %vm699_vm2, %v3436_v27 }
 0x152   : > { %2931 = vmatpush3.bf16.msra.mxu0 %v3172_v26  ;;  %2938 = vmatprep.mubr.msk.bf16.mxu0 %vm3261_vm1, %v3260_v9  ;;  %v3186_v26 = vld [vmem:[%s3854_s6 + $0x30] sm:$0xff]  }
 0x153   : > { %2932 = vmatprep.subr.bf16.mxu0 %v3260_v9  ;;  %2950 = vmatprep.mubr.msk.bf16.mxu1 %vm3261_vm1, %v3260_v9 }
 0x156   : > { %2933 = vmatpush3.bf16.msra.mxu0 %v3173_v28  ;;  %v3187_v28 = vld [vmem:[%s3854_s6 + $0x38] sm:$0xff]  }
 0x157   : > { %2934 = vmatprep.subr.bf16.mxu0 %v3260_v9 }
 0x15a   : > { %2935 = vmatpush3.bf16.msra.mxu0 %v3174_v29 }
 0x15b   : > { %2936 = vmatprep.subr.bf16.mxu0 %v3260_v9 }
 0x15e   : > { %2937 = vmatpush3.bf16.msra.mxu0 %v3175_v30 }
 0x15f   : > { %2942 = vmatprep.subr.bf16.mxu0 %v3260_v9 }
 0x161   : > { %2939 = vmatmul.mubr.msk.bf16.vlgmr.msra.gmra.mrb[4].mxu0 %vm699_vm2, %v3436_v27 }
 0x162   : > { %2944 = vmatprep.mubr.msk.bf16.mxu0 %vm3261_vm1, %v3260_v9 }
 0x224   : > { %v737_v32 = vpop.f32.mrb[0].mxu0  ;;  %v816_v33 = vpop.f32.mrb[0].mxu1 }
 0x225   : > { %v817_v34 = vadd.f32 %v2614_v31, %v816_v33  ;;  %v2916_v35 = vpop.f32.mrb[1].mxu0  ;;  %v2928_v36 = vpop.f32.mrb[1].mxu1  ;;  %v738_v44 = vadd.f32 %v2608_v42, %v737_v32  ;;  %v2652_v33 = vld [vmem:[%s3857_s9 + $0x1] ss:$0 sm:$0xff] }
 0x226   : > { %v740_v37 = vpop.f32.mrb[2].mxu0  ;;  %v819_v38 = vpop.f32.mrb[2].mxu1 }
 0x227   : > { %v902_v39 = vpack.c.bf16 %v817_v34, %v817_v34  ;;  %v2917_v40 = vpop.f32.mrb[3].mxu0  ;;  %v2929_v41 = vpop.f32.mrb[3].mxu1  ;;  %v901_v46 = vpack.c.bf16 %v738_v44, %v738_v44  ;;  %v2667_v37 = vld [vmem:[%s3858_s10 + $0x1] ss:$0 sm:$0xff] }
 0x228   : > { %v2637_v41 = vld [vmem:[%s3856_s8 + $0x1] ss:$0 sm:$0xff] }
 0x229   : > { %v909_v43 = vsel %vm904_vm3, %v902_v39, 0 }
 0x22a   : > { %2943 = vmatpush3.bf16.xpose.msra.mxu0 %v909_v43 }
 0x22b   : > { %2954 = vmatprep.subr.bf16.mxu0 %v3260_v9 }
 0x231   : > { %2945 = vmatmul.mubr.msk.bf16.vlgmr.msra.gmra.mrb[8].mxu0 %vm904_vm3, %v901_v46 }
 0x232   : > { %2955 = vmatpush3.bf16.msra.mxu0 %v3176_v45  ;;  %2962 = vmatprep.mubr.msk.bf16.mxu0 %vm3261_vm1, %v3260_v9 }
 0x233   : > { %2956 = vmatprep.subr.bf16.mxu0 %v3260_v9 }
 0x234   : > { %v895_v49 = vpop.f32.mrb[4].mxu0 }
 0x235   : > { %v896_v50 = vadd.f32 %v2620_v47, %v895_v49  ;;  %v2940_v51 = vpop.f32.mrb[5].mxu0 }
 0x236   : > { %v898_v52 = vpop.f32.mrb[6].mxu0  ;;  %2957 = vmatpush3.bf16.msra.mxu0 %v3177_v48  ;;  %v2673_v48 = vld [vmem:[%s3859_s11 + $0x4] sm:$0xf] }
 0x237   : > { %v964_v54 = vpack.c.bf16 %v896_v50, %v896_v50  ;;  %v2941_v55 = vpop.f32.mrb[7].mxu0  ;;  %2958 = vmatprep.subr.bf16.mxu0 %v3260_v9 }
 0x239   : > { %v971_v56 = vsel %vm969_vm4, %v964_v54, 0 }
 0x23a   : > { %2949 = vmatpush3.bf16.msra.mxu1 %v971_v56  ;;  %2959 = vmatpush3.bf16.msra.mxu0 %v3178_v53 }
 0x23b   : > { %2960 = vmatprep.subr.bf16.mxu0 %v3260_v9  ;;  %2966 = vmatprep.subr.bf16.mxu1 %v3260_v9 }
 0x23e   : > { %2961 = vmatpush3.bf16.msra.mxu0 %v3179_v57 }
 0x23f   : > { %2978 = vmatprep.subr.bf16.mxu0 %v3260_v9 }
 0x241   : > { %2963 = vmatmul.mubr.msk.bf16.vlgmr.msra.gmra.mrb[12].mxu0 %vm699_vm2, %v3436_v27 }
 0x242   : > { %2979 = vmatpush3.bf16.msra.mxu0 %v3180_v58  ;;  %2986 = vmatprep.mubr.msk.bf16.mxu0 %vm3261_vm1, %v3260_v9 }
 0x243   : > { %2980 = vmatprep.subr.bf16.mxu0 %v3260_v9 }
 0x246   : > { %2981 = vmatpush3.bf16.msra.mxu0 %v3181_v59 }
 0x247   : > { %2982 = vmatprep.subr.bf16.mxu0 %v3260_v9 }
 0x24a   : > { %2983 = vmatpush3.bf16.msra.mxu0 %v3182_v60  ;;  %v3193_v60 = vld [vmem:[%s3860_s12 + $0x8] sm:$0xff]  }
 0x24b   : > { %2984 = vmatprep.subr.bf16.mxu0 %v3260_v9 }
 0x24e   : > { %2985 = vmatpush3.bf16.msra.mxu0 %v3183_v61 }
 0x24f   : > { %3002 = vmatprep.subr.bf16.mxu0 %v3260_v9 }
 0x251   : > { %2987 = vmatmul.mubr.msk.bf16.vlgmr.msra.gmra.mrb[16].mxu0 %vm699_vm2, %v3436_v27 }
 0x252   : > { %3004 = vmatprep.mubr.msk.bf16.mxu0 %vm3261_vm1, %v3260_v9  ;;  %3003 = vmatpush3.bf16.msra.mxu0 %v3193_v60 }
 0x253   : > { %3014 = vmatprep.subr.bf16.mxu0 %v3260_v9 }
 0x304   : > { %v945_v63 = vpop.f32.mrb[8].mxu0 }
 0x305   : > { %v946_v0 = vadd.f32 %v945_v63, %v903_v62  ;;  %v2946_v2 = vpop.f32.mrb[9].mxu0 }
 0x306   : > { %v948_v3 = vpop.f32.mrb[10].mxu0 }
 0x307   : > { %v2947_v4 = vpop.f32.mrb[11].mxu0  ;;  %v952_v5 = vsel %vm951_vm5, %v946_v0, -inf  ;;  %v3189_v3 = vld [vmem:[%s3854_s6 + $0x40] sm:$0xff]  }
 0x308   : > { %953 = vmax.xlane.f32.xlu1 %v952_v5  ;;  %v3190_v5 = vld [vmem:[%s3854_s6 + $0x48] sm:$0xff]  }
 0x314   : > { %v1091_v6 = vpop.f32.mrb[12].mxu0 }
 0x315   : > { %v2964_v7 = vpop.f32.mrb[13].mxu0  ;;  %v1092_v44 = vadd.f32 %v2637_v41, %v1091_v6  ;;  %v3191_v6 = vld [vmem:[%s3854_s6 + $0x50] sm:$0xff]  }
 0x316   : > { %v1094_v8 = vpop.f32.mrb[14].mxu0  ;;  %v3192_v7 = vld [vmem:[%s3854_s6 + $0x58] sm:$0xff]  }
 0x317   : > { %v2965_v10 = vpop.f32.mrb[15].mxu0  ;;  %v1259_v46 = vpack.c.bf16 %v1092_v44, %v1092_v44 }
 0x318   : > { %v3194_v10 = vld [vmem:[%s3853_s5 + $0x40] sm:$0xff]  }
 0x324   : > { %v1253_v11 = vpop.f32.mrb[16].mxu0 }
 0x325   : > { %v2988_v12 = vpop.f32.mrb[17].mxu0  ;;  %v1254_v42 = vadd.f32 %v2667_v37, %v1253_v11 }
 0x326   : > { %v1256_v13 = vpop.f32.mrb[18].mxu0 }
 0x327   : > { %v2989_v14 = vpop.f32.mrb[19].mxu0  ;;  %v1321_v45 = vpack.c.bf16 %v1254_v42, %v1254_v42 }
 0x329   : > { %v1326_v47 = vsel %vm969_vm4, %v1321_v45, 0 }
 0x395   : > { %v954_v15 = vpop.xlane.xlu1 %953 }
 0x396   : > { %v955_v16 = vsub.f32 %v946_v0, %v954_v15  ;;  %v3188_v0 = vld [vmem:[%s3860_s12] sm:$0xff]   ;;  %v3195_v15 = vld [vmem:[%s3853_s5 + $0x48] sm:$0xff]  }
 0x398   : > { %v956_v17 = vmul.f32 1.442695, %v955_v16 }
 0x39a   : > { %3230 = vpow2.f32 %v956_v17  ;;  %v3196_v17 = vld [vmem:[%s3853_s5 + $0x50] sm:$0xff]  }
 0x3a4   : > { %v3231_v18 = vpop.eup %3230 }
 0x3a5   : > { %v958_v19 = vsel %vm951_vm5, %v3231_v18, 0.0 }
 0x3a6   : > { %959 = vadd.xlane.f32.xlu1 %v958_v19 }
 0x433   : > { %v960_v20 = vpop.xlane.xlu1 %959 }
 0x434   : > { %3232 = vrcp.f32 %v960_v20 }
 0x43e   : > { %v3233_v21 = vpop.eup %3232 }
 0x43f   : > { %v962_v22 = vmul.f32 %v3233_v21, %v3231_v18  ;;  %v3197_v21 = vld [vmem:[%s3853_s5 + $0x58] sm:$0xff]  }
 0x441   : > { %v963_v24 = vpack.c.bf16 %v962_v22, %v962_v22  ;;  %v3198_v22 = vld [vmem:[%s3855_s7 + $0x40] sm:$0xff]  }
 0x443   : > { %2951 = vmatmul.mubr.msk.bf16.vlgmr.msra.gmra.mrb[4].mxu1 %vm965_vm6, %v963_v24  ;;  %v2706_v24 = vld [vmem:[%s3857_s9 + $0x2] ss:$0 sm:$0xff] }
 0x444   : > { %2967 = vmatpush3.bf16.msra.mxu1 %v3184_v23  ;;  %2974 = vmatprep.mubr.msk.bf16.mxu1 %vm3261_vm1, %v3260_v9  ;;  %v3199_v23 = vld [vmem:[%s3855_s7 + $0x48] sm:$0xff]  }
 0x445   : > { %2968 = vmatprep.subr.bf16.mxu1 %v3260_v9 }
 0x448   : > { %2969 = vmatpush3.bf16.msra.mxu1 %v3185_v25 }
 0x449   : > { %2970 = vmatprep.subr.bf16.mxu1 %v3260_v9 }
 0x44c   : > { %2971 = vmatpush3.bf16.msra.mxu1 %v3186_v26  ;;  %v3200_v26 = vld [vmem:[%s3855_s7 + $0x50] sm:$0xff]  }
 0x44d   : > { %2972 = vmatprep.subr.bf16.mxu1 %v3260_v9 }
 0x450   : > { %2973 = vmatpush3.bf16.msra.mxu1 %v3187_v28 }
 0x451   : > { %2990 = vmatprep.subr.bf16.mxu1 %v3260_v9 }
 0x453   : > { %2975 = vmatmul.mubr.msk.bf16.vlgmr.msra.gmra.mrb[8].mxu1 %vm699_vm2, %v3436_v27 }
 0x454   : > { %2992 = vmatprep.mubr.msk.bf16.mxu1 %vm3261_vm1, %v3260_v9 }
 0x516   : > { %v1007_v29 = vpop.f32.mrb[4].mxu1 }
 0x517   : > { %v2952_v30 = vpop.f32.mrb[5].mxu1  ;;  %v1013_v4 = vpack.c.bf16 %v1007_v29, %v1007_v29 }
 0x518   : > { %v1010_v31 = vpop.f32.mrb[6].mxu1 }
 0x519   : > { %v2953_v32 = vpop.f32.mrb[7].mxu1 }
 0x526   : > { %v1172_v34 = vpop.f32.mrb[8].mxu1 }
 0x527   : > { %v1173_v35 = vadd.f32 %v2652_v33, %v1172_v34  ;;  %v2976_v36 = vpop.f32.mrb[9].mxu1  ;;  %v3201_v33 = vld [vmem:[%s3855_s7 + $0x58] sm:$0xff]  }
 0x528   : > { %v1175_v38 = vpop.f32.mrb[10].mxu1 }
 0x529   : > { %v1260_v39 = vpack.c.bf16 %v1173_v35, %v1173_v35  ;;  %v2977_v40 = vpop.f32.mrb[11].mxu1 }
 0x52a   : > { %v2691_v40 = vld [vmem:[%s3856_s8 + $0x2] ss:$0 sm:$0xff] }
 0x52b   : > { %v1267_v43 = vsel %vm904_vm3, %v1260_v39, 0 }
 0x52c   : > { %2991 = vmatpush3.bf16.xpose.msra.mxu1 %v1267_v43 }
 0x52d   : > { %2996 = vmatprep.subr.bf16.mxu1 %v3260_v9 }
 0x533   : > { %2993 = vmatmul.mubr.msk.bf16.vlgmr.msra.gmra.mrb[12].mxu1 %vm904_vm3, %v1259_v46 }
 0x534   : > { %2997 = vmatpush3.bf16.msra.mxu1 %v1326_v47  ;;  %2998 = vmatprep.mubr.msk.bf16.mxu1 %vm3261_vm1, %v3260_v9  ;;  %v2721_v47 = vld [vmem:[%s3858_s10 + $0x2] ss:$0 sm:$0xff] }
 0x535   : > { %3008 = vmatprep.subr.bf16.mxu1 %v3260_v9 }
 0x606   : > { %v1303_v49 = vpop.f32.mrb[12].mxu1 }
 0x607   : > { %v1304_v50 = vadd.f32 %v2673_v48, %v1303_v49  ;;  %v2994_v51 = vpop.f32.mrb[13].mxu1 }
 0x608   : > { %v1306_v52 = vpop.f32.mrb[14].mxu1 }
 0x609   : > { %v2995_v53 = vpop.f32.mrb[15].mxu1  ;;  %v1309_v54 = vsel %vm951_vm5, %v1304_v50, -inf }
 0x60a   : > { %1310 = vmax.xlane.f32.xlu0 %v1309_v54 }
 0x697   : > { %v1311_v55 = vpop.xlane.xlu0 %1310 }
 0x698   : > { %v1312_v56 = vsub.f32 %v1304_v50, %v1311_v55  ;;  %v2727_v55 = vld [vmem:[%s3859_s11 + $0x8] sm:$0xf] }
 0x69a   : > { %v1313_v57 = vmul.f32 1.442695, %v1312_v56 }
 0x69c   : > { %3234 = vpow2.f32 %v1313_v57 }
 0x6a6   : > { %v3235_v58 = vpop.eup %3234 }
 0x6a7   : > { %v1315_v59 = vsel %vm951_vm5, %v3235_v58, 0.0 }
 0x6a8   : > { %1316 = vadd.xlane.f32.xlu1 %v1315_v59 }
 0x735   : > { %v1317_v61 = vpop.xlane.xlu1 %1316 }
 0x736   : > { %3236 = vrcp.f32 %v1317_v61 }
 0x740   : > { %v3237_v62 = vpop.eup %3236 }
 0x741   : > { %v1319_v63 = vmul.f32 %v3237_v62, %v3235_v58 }
 0x743   : > { %v1320_v2 = vpack.c.bf16 %v1319_v63, %v1319_v63 }
 0x745   : > { %2999 = vmatmul.mubr.msk.bf16.vlgmr.msra.gmra.mrb[16].mxu1 %vm965_vm6, %v1320_v2 }
 0x746   : > { %3009 = vmatpush3.bf16.msra.mxu1 %v3188_v0  ;;  %3010 = vmatprep.mubr.msk.bf16.mxu1 %vm3261_vm1, %v3260_v9 }
 0x747   : > { %3026 = vmatprep.subr.bf16.mxu1 %v3260_v9 }
 0x74d   : > { %3011 = vmatmul.mubr.msk.bf16.vlgmr.msra.gmra.mrb[20].mxu1 %vm904_vm3, %v1013_v4  ;;  %v3210_v4 = vld [vmem:[%s3860_s12 + $0x10] sm:$0xff]  }
 0x74e   : > { %3027 = vmatpush3.bf16.msra.mxu1 %v3189_v3  ;;  %3034 = vmatprep.mubr.msk.bf16.mxu1 %vm3261_vm1, %v3260_v9 }
 0x74f   : > { %3028 = vmatprep.subr.bf16.mxu1 %v3260_v9 }
 0x752   : > { %3029 = vmatpush3.bf16.msra.mxu1 %v3190_v5 }
 0x753   : > { %3030 = vmatprep.subr.bf16.mxu1 %v3260_v9 }
 0x756   : > { %3031 = vmatpush3.bf16.msra.mxu1 %v3191_v6 }
 0x757   : > { %3032 = vmatprep.subr.bf16.mxu1 %v3260_v9 }
 0x75a   : > { %3033 = vmatpush3.bf16.msra.mxu1 %v3192_v7 }
 0x75b   : > { %3050 = vmatprep.subr.bf16.mxu1 %v3260_v9 }
 0x75d   : > { %3035 = vmatmul.mubr.msk.bf16.vlgmr.msra.gmra.mrb[24].mxu1 %vm699_vm2, %v3436_v27 }
 0x75e   : > { %3052 = vmatprep.mubr.msk.bf16.mxu1 %vm3261_vm1, %v3260_v9 }
 0x818   : > { %v1362_v8 = vpop.f32.mrb[16].mxu1 }
 0x819   : > { %v1368_v11 = vpack.c.bf16 %v1362_v8, %v1362_v8  ;;  %v3000_v12 = vpop.f32.mrb[17].mxu1  ;;  %v3202_v8 = vld [vmem:[%s3853_s5 + $0x60] sm:$0xff]  }
 0x81a   : > { %v1365_v13 = vpop.f32.mrb[18].mxu1  ;;  %v3204_v12 = vld [vmem:[%s3853_s5 + $0x70] sm:$0xff]  }
 0x81b   : > { %v3001_v14 = vpop.f32.mrb[19].mxu1  ;;  %3005 = vmatmul.mubr.msk.bf16.vlgmr.msra.gmra.mrb[20].mxu0 %vm904_vm3, %v1368_v11  ;;  %v3203_v11 = vld [vmem:[%s3853_s5 + $0x68] sm:$0xff]   ;;  %v3205_v13 = vld [vmem:[%s3853_s5 + $0x78] sm:$0xff]  }
 0x81c   : > { %3015 = vmatpush3.bf16.msra.mxu0 %v3194_v10  ;;  %3022 = vmatprep.mubr.msk.bf16.mxu0 %vm3261_vm1, %v3260_v9  ;;  %v3206_v14 = vld [vmem:[%s3855_s7 + $0x60] sm:$0xff]  }
 0x81d   : > { %3016 = vmatprep.subr.bf16.mxu0 %v3260_v9 }
 0x820   : > { %3017 = vmatpush3.bf16.msra.mxu0 %v3195_v15  ;;  %v1464_v16 = vpop.f32.mrb[20].mxu1  ;;  %v3207_v15 = vld [vmem:[%s3855_s7 + $0x68] sm:$0xff]  }
 0x821   : > { %v3012_v18 = vpop.f32.mrb[21].mxu1  ;;  %3018 = vmatprep.subr.bf16.mxu0 %v3260_v9 }
 0x822   : > { %v1467_v19 = vpop.f32.mrb[22].mxu1 }
 0x823   : > { %v3013_v20 = vpop.f32.mrb[23].mxu1  ;;  %v3211_v19 = vld [vmem:[%s3854_s6 + $0x60] sm:$0xff]  }
 0x824   : > { %3019 = vmatpush3.bf16.msra.mxu0 %v3196_v17  ;;  %v3209_v17 = vld [vmem:[%s3855_s7 + $0x78] sm:$0xff]  }
 0x825   : > { %3020 = vmatprep.subr.bf16.mxu0 %v3260_v9 }
 0x828   : > { %3021 = vmatpush3.bf16.msra.mxu0 %v3197_v21 }
 0x829   : > { %3038 = vmatprep.subr.bf16.mxu0 %v3260_v9 }
 0x82b   : > { %3023 = vmatmul.mubr.msk.bf16.vlgmr.msra.gmra.mrb[24].mxu0 %vm699_vm2, %v3436_v27 }
 0x82c   : > { %3039 = vmatpush3.bf16.msra.mxu0 %v3198_v22  ;;  %3046 = vmatprep.mubr.msk.bf16.mxu0 %vm3261_vm1, %v3260_v9 }
 0x82d   : > { %3040 = vmatprep.subr.bf16.mxu0 %v3260_v9 }
 0x830   : > { %v1626_v25 = vpop.f32.mrb[24].mxu1  ;;  %3041 = vmatpush3.bf16.msra.mxu0 %v3199_v23 }
 0x831   : > { %v1627_v28 = vadd.f32 %v2706_v24, %v1626_v25  ;;  %v3036_v29 = vpop.f32.mrb[25].mxu1  ;;  %3042 = vmatprep.subr.bf16.mxu0 %v3260_v9  ;;  %v3212_v24 = vld [vmem:[%s3854_s6 + $0x68] sm:$0xff]   ;;  %v3213_v25 = vld [vmem:[%s3854_s6 + $0x70] sm:$0xff]  }
 0x832   : > { %v1629_v30 = vpop.f32.mrb[26].mxu1 }
 0x833   : > { %v1714_v31 = vpack.c.bf16 %v1627_v28, %v1627_v28  ;;  %v3037_v32 = vpop.f32.mrb[27].mxu1 }
 0x834   : > { %3043 = vmatpush3.bf16.msra.mxu0 %v3200_v26  ;;  %v3214_v26 = vld [vmem:[%s3854_s6 + $0x78] sm:$0xff]  }
 0x835   : > { %v1721_v34 = vsel %vm904_vm3, %v1714_v31, 0  ;;  %3044 = vmatprep.subr.bf16.mxu0 %v3260_v9 }
 0x836   : > { %3051 = vmatpush3.bf16.xpose.msra.mxu1 %v1721_v34 }
 0x837   : > { %3056 = vmatprep.subr.bf16.mxu1 %v3260_v9 }
 0x838   : > { %3045 = vmatpush3.bf16.msra.mxu0 %v3201_v33 }
 0x839   : > { %3062 = vmatprep.subr.bf16.mxu0 %v3260_v9 }
 0x83b   : > { %3047 = vmatmul.mubr.msk.bf16.vlgmr.msra.gmra.mrb[28].mxu0 %vm699_vm2, %v3436_v27 }
 0x83c   : > { %3064 = vmatprep.mubr.msk.bf16.mxu0 %vm3261_vm1, %v3260_v9  ;;  %3063 = vmatpush3.bf16.msra.mxu0 %v3210_v4  ;;  %v3215_v4 = vld [vmem:[%s3860_s12 + $0x18] sm:$0xff]  }
 0x83d   : > { %3080 = vmatprep.subr.bf16.mxu0 %v3260_v9 }
 0x8ee   : > { %v1415_v35 = vpop.f32.mrb[20].mxu0 }
 0x8ef   : > { %v3650_v36 = vadd.f32 %v1464_v16, %v1415_v35  ;;  %v3006_v37 = vpop.f32.mrb[21].mxu0  ;;  %v3208_v16 = vld [vmem:[%s3855_s7 + $0x70] sm:$0xff]  }
 0x8f0   : > { %v1418_v38 = vpop.f32.mrb[22].mxu0 }
 0x8f1   : > { %v3007_v39 = vpop.f32.mrb[23].mxu0 }
 0x8fe   : > { %v1545_v41 = vpop.f32.mrb[24].mxu0 }
 0x8ff   : > { %v1546_v42 = vadd.f32 %v2691_v40, %v1545_v41  ;;  %v3024_v43 = vpop.f32.mrb[25].mxu0 }
 0x900   : > { %v1548_v44 = vpop.f32.mrb[26].mxu0 }
 0x901   : > { %v1713_v45 = vpack.c.bf16 %v1546_v42, %v1546_v42  ;;  %v3025_v46 = vpop.f32.mrb[27].mxu0  ;;  %v2758_v42 = vld [vmem:[%s3857_s9 + $0x3] ss:$0 sm:$0xff] }
 0x903   : > { %3053 = vmatmul.mubr.msk.bf16.vlgmr.msra.gmra.mrb[28].mxu1 %vm904_vm3, %v1713_v45  ;;  %v2773_v45 = vld [vmem:[%s3858_s10 + $0x3] ss:$0 sm:$0xff] }
 0x904   : > { %3058 = vmatprep.mubr.msk.bf16.mxu1 %vm3261_vm1, %v3260_v9 }
 0x90e   : > { %v1707_v48 = vpop.f32.mrb[28].mxu0 }
 0x90f   : > { %v1708_v49 = vadd.f32 %v2721_v47, %v1707_v48  ;;  %v3048_v50 = vpop.f32.mrb[29].mxu0 }
 0x910   : > { %v1710_v51 = vpop.f32.mrb[30].mxu0 }
 0x911   : > { %v1775_v52 = vpack.c.bf16 %v1708_v49, %v1708_v49  ;;  %v3049_v53 = vpop.f32.mrb[31].mxu0 }
 0x913   : > { %v1780_v54 = vsel %vm969_vm4, %v1775_v52, 0 }
 0x914   : > { %3057 = vmatpush3.bf16.msra.mxu1 %v1780_v54 }
 0x915   : > { %3068 = vmatprep.subr.bf16.mxu1 %v3260_v9 }
 0x9d6   : > { %v1757_v56 = vpop.f32.mrb[28].mxu1 }
 0x9d7   : > { %v1758_v57 = vadd.f32 %v2727_v55, %v1757_v56  ;;  %v3054_v58 = vpop.f32.mrb[29].mxu1  ;;  %v2779_v55 = vld [vmem:[%s3859_s11 + $0xc] sm:$0xf] }
 0x9d8   : > { %v1760_v59 = vpop.f32.mrb[30].mxu1 }
 0x9d9   : > { %v3055_v60 = vpop.f32.mrb[31].mxu1  ;;  %v1763_v61 = vsel %vm951_vm5, %v1758_v57, -inf }
 0x9da   : > { %1764 = vmax.xlane.f32.xlu0 %v1763_v61 }
 0xa67   : > { %v1765_v62 = vpop.xlane.xlu0 %1764 }
 0xa68   : > { %v1766_v63 = vsub.f32 %v1758_v57, %v1765_v62 }
 0xa6a   : > { %v1767_v0 = vmul.f32 1.442695, %v1766_v63 }
 0xa6c   : > { %3238 = vpow2.f32 %v1767_v0 }
 0xa76   : > { %v3239_v2 = vpop.eup %3238 }
 0xa77   : > { %v1769_v3 = vsel %vm951_vm5, %v3239_v2, 0.0 }
 0xa78   : > { %1770 = vadd.xlane.f32.xlu1 %v1769_v3 }
 0xb05   : > { %v1771_v5 = vpop.xlane.xlu1 %1770 }
 0xb06   : > { %3240 = vrcp.f32 %v1771_v5 }
 0xb10   : > { %v3241_v6 = vpop.eup %3240 }
 0xb11   : > { %v1773_v7 = vmul.f32 %v3241_v6, %v3239_v2 }
 0xb13   : > { %v1774_v10 = vpack.c.bf16 %v1773_v7, %v1773_v7 }
 0xb15   : > { %3059 = vmatmul.mubr.msk.bf16.vlgmr.msra.gmra.mrb[32].mxu1 %vm965_vm6, %v1774_v10 }
 0xb16   : > { %3069 = vmatpush3.bf16.msra.mxu1 %v3202_v8  ;;  %3076 = vmatprep.mubr.msk.bf16.mxu1 %vm3261_vm1, %v3260_v9 }
 0xb17   : > { %3070 = vmatprep.subr.bf16.mxu1 %v3260_v9 }
 0xb1a   : > { %3071 = vmatpush3.bf16.msra.mxu1 %v3203_v11 }
 0xb1b   : > { %3072 = vmatprep.subr.bf16.mxu1 %v3260_v9 }
 0xb1e   : > { %3073 = vmatpush3.bf16.msra.mxu1 %v3204_v12 }
 0xb1f   : > { %3074 = vmatprep.subr.bf16.mxu1 %v3260_v9 }
 0xb22   : > { %3075 = vmatpush3.bf16.msra.mxu1 %v3205_v13 }
 0xb23   : > { %3092 = vmatprep.subr.bf16.mxu1 %v3260_v9 }
 0xb25   : > { %3077 = vmatmul.mubr.msk.bf16.vlgmr.msra.gmra.mrb[36].mxu1 %vm699_vm2, %v3436_v27 }
 0xb26   : > { %3093 = vmatpush3.bf16.msra.mxu1 %v3206_v14  ;;  %3100 = vmatprep.mubr.msk.bf16.mxu1 %vm3261_vm1, %v3260_v9 }
 0xb27   : > { %3094 = vmatprep.subr.bf16.mxu1 %v3260_v9 }
 0xb2a   : > { %3095 = vmatpush3.bf16.msra.mxu1 %v3207_v15 }
 0xb2b   : > { %3096 = vmatprep.subr.bf16.mxu1 %v3260_v9 }
 0xb2e   : > { %3097 = vmatpush3.bf16.msra.mxu1 %v3208_v16  ;;  %v2786_v16 = vld [vmem:[%s3861_s13] ss:$0 sm:$0xff] }
 0xb2f   : > { %3098 = vmatprep.subr.bf16.mxu1 %v3260_v9 }
 0xb32   : > { %3099 = vmatpush3.bf16.msra.mxu1 %v3209_v17 }
 0xb33   : > { %3116 = vmatprep.subr.bf16.mxu1 %v3260_v9 }
 0xb35   : > { %3101 = vmatmul.mubr.msk.bf16.vlgmr.msra.gmra.mrb[40].mxu1 %vm699_vm2, %v3436_v27 }
 0xb36   : > { %3118 = vmatprep.mubr.msk.bf16.mxu1 %vm3261_vm1, %v3260_v9  ;;  %3117 = vmatpush3.bf16.msra.mxu1 %v3215_v4 }
 0xb37   : > { %3134 = vmatprep.subr.bf16.mxu1 %v3260_v9 }
 0xbe8   : > { %v1816_v18 = vpop.f32.mrb[32].mxu1 }
 0xbe9   : > { %v1822_v20 = vpack.c.bf16 %v1816_v18, %v1816_v18  ;;  %v3060_v21 = vpop.f32.mrb[33].mxu1 }
 0xbea   : > { %v1819_v22 = vpop.f32.mrb[34].mxu1 }
 0xbeb   : > { %v3061_v23 = vpop.f32.mrb[35].mxu1  ;;  %3065 = vmatmul.mubr.msk.bf16.vlgmr.msra.gmra.mrb[32].mxu0 %vm904_vm3, %v1822_v20 }
 0xbec   : > { %3081 = vmatpush3.bf16.msra.mxu0 %v3211_v19  ;;  %3088 = vmatprep.mubr.msk.bf16.mxu0 %vm3261_vm1, %v3260_v9 }
 0xbed   : > { %3082 = vmatprep.subr.bf16.mxu0 %v3260_v9 }
 0xbf0   : > { %3083 = vmatpush3.bf16.msra.mxu0 %v3212_v24 }
 0xbf1   : > { %3084 = vmatprep.subr.bf16.mxu0 %v3260_v9 }
 0xbf4   : > { %3085 = vmatpush3.bf16.msra.mxu0 %v3213_v25 }
 0xbf5   : > { %3086 = vmatprep.subr.bf16.mxu0 %v3260_v9 }
 0xbf8   : > { %v1951_v28 = vpop.f32.mrb[36].mxu1  ;;  %3087 = vmatpush3.bf16.msra.mxu0 %v3214_v26 }
 0xbf9   : > { %v3078_v29 = vpop.f32.mrb[37].mxu1  ;;  %3104 = vmatprep.subr.bf16.mxu0 %v3260_v9 }
 0xbfa   : > { %v1954_v30 = vpop.f32.mrb[38].mxu1 }
 0xbfb   : > { %v3079_v31 = vpop.f32.mrb[39].mxu1  ;;  %3089 = vmatmul.mubr.msk.bf16.vlgmr.msra.gmra.mrb[36].mxu0 %vm699_vm2, %v3436_v27  ;;  %v3216_v30 = vld [vmem:[%s3864_s16] sm:$0xff]  }
 0xbfc   : > { %3106 = vmatprep.mubr.msk.bf16.mxu0 %vm3261_vm1, %v3260_v9  ;;  %v3218_v31 = vld [vmem:[%s3864_s16 + $0x10] sm:$0xff]  }
 0xc08   : > { %v2113_v32 = vpop.f32.mrb[40].mxu1 }
 0xc09   : > { %v3102_v33 = vpop.f32.mrb[41].mxu1  ;;  %v2114_v49 = vadd.f32 %v2773_v45, %v2113_v32  ;;  %v3219_v32 = vld [vmem:[%s3864_s16 + $0x18] sm:$0xff]   ;;  %v3222_v45 = vld [vmem:[%s3866_s18 + $0x10] sm:$0xff]  }
 0xc0a   : > { %v2116_v34 = vpop.f32.mrb[42].mxu1 }
 0xc0b   : > { %v3103_v35 = vpop.f32.mrb[43].mxu1  ;;  %v2181_v52 = vpack.c.bf16 %v2114_v49, %v2114_v49  ;;  %v3227_v49 = vld [vmem:[%s3866_s18 + $0x38] sm:$0xff]  }
 0xc0d   : > { %v2186_v54 = vsel %vm969_vm4, %v2181_v52, 0 }
 0xcbe   : > { %v1869_v37 = vpop.f32.mrb[32].mxu0 }
 0xcbf   : > { %v1875_v38 = vadd.f32 %v1869_v37, %v3650_v36  ;;  %v3066_v39 = vpop.f32.mrb[33].mxu0  ;;  %v2743_v36 = vld [vmem:[%s3856_s8 + $0x3] ss:$0 sm:$0xff] }
 0xcc0   : > { %v1872_v40 = vpop.f32.mrb[34].mxu0  ;;  %v1952_v51 = vadd.f32 %v2743_v36, %v1951_v28  ;;  %v3226_v36 = vld [vmem:[%s3866_s18 + $0x30] sm:$0xff]  }
 0xcc1   : > { %v3067_v41 = vpop.f32.mrb[35].mxu0  ;;  %v2788_v40 = vld [vmem:[%s3863_s15] ss:$0 sm:$0xff] }
 0xcc2   : > { %v2119_v53 = vpack.c.bf16 %v1952_v51, %v1952_v51 }
 0xcce   : > { %v2032_v43 = vpop.f32.mrb[36].mxu0 }
 0xccf   : > { %v2033_v44 = vadd.f32 %v2758_v42, %v2032_v43  ;;  %v3090_v27 = vpop.f32.mrb[37].mxu0 }
 0xcd0   : > { %v2035_v46 = vpop.f32.mrb[38].mxu0  ;;  %v3221_v27 = vld [vmem:[%s3866_s18 + $0x8] sm:$0xff]  }
 0xcd1   : > { %v2120_v47 = vpack.c.bf16 %v2033_v44, %v2033_v44  ;;  %v3091_v48 = vpop.f32.mrb[39].mxu0  ;;  %v3220_v44 = vld [vmem:[%s3866_s18] sm:$0xff]   ;;  %v3223_v46 = vld [vmem:[%s3866_s18 + $0x18] sm:$0xff]  }
 0xcd2   : > { %v3225_v48 = vld [vmem:[%s3866_s18 + $0x28] sm:$0xff]  }
 0xcd3   : > { %v2127_v50 = vsel %vm904_vm3, %v2120_v47, 0  ;;  %v3224_v47 = vld [vmem:[%s3866_s18 + $0x20] sm:$0xff]  }
 0xcd4   : > { %3105 = vmatpush3.bf16.xpose.msra.mxu0 %v2127_v50  ;;  %v2789_v50 = vld [vmem:[%s3865_s17] ss:$0 sm:$0xff] }
 0xcd5   : > { %3110 = vmatprep.subr.bf16.mxu0 %v3260_v9 }
 0xcdb   : > { %3107 = vmatmul.mubr.msk.bf16.vlgmr.msra.gmra.mrb[40].mxu0 %vm904_vm3, %v2119_v53 }
 0xcdc   : > { %3111 = vmatpush3.bf16.msra.mxu0 %v2186_v54  ;;  %3112 = vmatprep.mubr.msk.bf16.mxu0 %vm3261_vm1, %v3260_v9 }
 0xcdd   : > { %3122 = vmatprep.subr.bf16.mxu0 %v3260_v9 }
 0xdae   : > { %v2163_v56 = vpop.f32.mrb[40].mxu0 }
 0xdaf   : > { %v2164_v57 = vadd.f32 %v2779_v55, %v2163_v56  ;;  %v3108_v58 = vpop.f32.mrb[41].mxu0 }
 0xdb0   : > { %v2166_v59 = vpop.f32.mrb[42].mxu0 }
 0xdb1   : > { %v3109_v60 = vpop.f32.mrb[43].mxu0  ;;  %v2169_v61 = vsel %vm951_vm5, %v2164_v57, -inf }
 0xdb2   : > { %2170 = vmax.xlane.f32.xlu0 %v2169_v61 }
 0xe3f   : > { %v2171_v62 = vpop.xlane.xlu0 %2170 }
 0xe40   : > { %v2172_v63 = vsub.f32 %v2164_v57, %v2171_v62 }
 0xe42   : > { %v2173_v0 = vmul.f32 1.442695, %v2172_v63 }
 0xe44   : > { %3242 = vpow2.f32 %v2173_v0 }
 0xe4e   : > { %v3243_v2 = vpop.eup %3242 }
 0xe4f   : > { %v2175_v3 = vsel %vm951_vm5, %v3243_v2, 0.0 }
 0xe50   : > { %2176 = vadd.xlane.f32.xlu1 %v2175_v3 }
 0xedd   : > { %v2177_v5 = vpop.xlane.xlu1 %2176 }
 0xede   : > { %3244 = vrcp.f32 %v2177_v5 }
 0xee8   : > { %v3245_v6 = vpop.eup %3244 }
 0xee9   : > { %v2179_v7 = vmul.f32 %v3245_v6, %v3243_v2 }
 0xeeb   : > { %v2180_v8 = vpack.c.bf16 %v2179_v7, %v2179_v7 }
 0xeed   : > { %3113 = vmatmul.mubr.msk.bf16.vlgmr.msra.gmra.mrb[44].mxu0 %vm965_vm6, %v2180_v8 }
 0xeee   : > { %3130 = vmatprep.mubr.msk.bf16.mxu0 %vm3261_vm1, %v3260_v9  ;;  %3123 = vmatpush3.bf16.msra.mxu0 %v3216_v30 }
 0xeef   : > { %3124 = vmatprep.subr.bf16.mxu0 %v3260_v9 }
 0xfc0   : > { %v2222_v10 = vpop.f32.mrb[44].mxu0 }
 0xfc1   : > { %v2228_v11 = vpack.c.bf16 %v2222_v10, %v2222_v10  ;;  %v3114_v12 = vpop.f32.mrb[45].mxu0 }
 0xfc2   : > { %v2225_v13 = vpop.f32.mrb[46].mxu0 }
 0xfc3   : > { %v3115_v14 = vpop.f32.mrb[47].mxu0  ;;  %3119 = vmatmul.mubr.msk.bf16.vlgmr.msra.gmra.mrb[44].mxu1 %vm904_vm3, %v2228_v11 }
 0xfc4   : > { %3150 = vmatprep.mubr.msk.bf16.mxu1 %vm3261_vm1, %v3260_v9  ;;  %3135 = vmatpush3.bf16.msra.mxu1 %v3220_v44 }
 0xfc5   : > { %3136 = vmatprep.subr.bf16.mxu1 %v3260_v9 }
 0xfc8   : > { %3137 = vmatpush3.bf16.msra.mxu1 %v3221_v27 }
 0xfc9   : > { %3138 = vmatprep.subr.bf16.mxu1 %v3260_v9 }
 0xfcc   : > { %3139 = vmatpush3.bf16.msra.mxu1 %v3222_v45 }
 0xfcd   : > { %3140 = vmatprep.subr.bf16.mxu1 %v3260_v9 }
 0xfd0   : > { %3141 = vmatpush3.bf16.msra.mxu1 %v3223_v46 }
 0xfd1   : > { %3142 = vmatprep.subr.bf16.mxu1 %v3260_v9 }
 0xfd4   : > { %3143 = vmatpush3.bf16.msra.mxu1 %v3224_v47 }
 0xfd5   : > { %3144 = vmatprep.subr.bf16.mxu1 %v3260_v9 }
 0xfd8   : > { %3145 = vmatpush3.bf16.msra.mxu1 %v3225_v48 }
 0xfd9   : > { %3146 = vmatprep.subr.bf16.mxu1 %v3260_v9 }
 0xfdc   : > { %3147 = vmatpush3.bf16.msra.mxu1 %v3226_v36 }
 0xfdd   : > { %3148 = vmatprep.subr.bf16.mxu1 %v3260_v9 }
 0xfe0   : > { %3149 = vmatpush3.bf16.msra.mxu1 %v3227_v49 }
0x1096   : > { %v2275_v15 = vpop.f32.mrb[44].mxu1 }
0x1097   : > { %v2281_v17 = vadd.f32 %v2275_v15, %v1875_v38  ;;  %v3120_v18 = vpop.f32.mrb[45].mxu1  ;;  %v2787_v38 = vld [vmem:[%s3862_s14] ss:$0 sm:$0xff] }
0x1098   : > { %v2278_v19 = vpop.f32.mrb[46].mxu1 }
0x1099   : > { %v2289_v20 = vadd.f32 %v2786_v16, %v2281_v17  ;;  %v3121_v21 = vpop.f32.mrb[47].mxu1  ;;  %v2797_v19 = vld [vmem:[%s3867_s19] ss:$0 sm:$0xff] }
0x109b   : > { %v3774_v22 = vadd.f32 %v2289_v20, %v3383_v1  ;;  %v3217_v1 = vld [vmem:[%s3864_s16 + $0x8] sm:$0xff]  }
0x109c   : > { %3125 = vmatpush3.bf16.msra.mxu0 %v3217_v1 }
0x109d   : > { %v2293_v23 = vsel %vm630_vm0, %v3774_v22, 0.0  ;;  %3126 = vmatprep.subr.bf16.mxu0 %v3260_v9 }
0x109e   : > { %2294 = vadd.xlane.f32.xlu0 %v2293_v23 }
0x10a0   : > { %3127 = vmatpush3.bf16.msra.mxu0 %v3218_v31 }
0x10a1   : > { %3128 = vmatprep.subr.bf16.mxu0 %v3260_v9 }
0x10a4   : > { %3129 = vmatpush3.bf16.msra.mxu0 %v3219_v32 }
0x112b   : > { %v2295_v24 = vpop.xlane.xlu0 %2294 }
0x112c   : > { %v2296_v25 = vmul.f32 0.015625, %v2295_v24 }
0x112e   : > { %v2297_v26 = vsub.f32 %v3774_v22, %v2296_v25 }
0x1130   : > { %v2298_v28 = vmul.f32 %v2297_v26, %v2297_v26 }
0x1132   : > { %v2299_v29 = vsel %vm630_vm0, %v2298_v28, 0.0 }
0x1133   : > { %2300 = vadd.xlane.f32.xlu1 %v2299_v29 }
0x11c0   : > { %v2301_v33 = vpop.xlane.xlu1 %2300 }
0x11c1   : > { %v2302_v34 = vmul.f32 0.015625, %v2301_v33 }
0x11c3   : > { %v2303_v35 = vadd.f32 1e-06, %v2302_v34 }
0x11c5   : > { %3246 = vrsqrt.f32 %v2303_v35 }
0x11cf   : > { %v3247_v37 = vpop.eup %3246 }
0x11d0   : > { %v2305_v39 = vmul.f32 %v3247_v37, %v2297_v26 }
0x11d2   : > { %v2312_v41 = vmul.f32 %v2787_v38, %v2305_v39 }
0x11d4   : > { %v2319_v42 = vadd.f32 %v2788_v40, %v2312_v41 }
0x11d6   : > { %v2320_v43 = vpack.c.bf16 %v2319_v42, %v2319_v42 }
0x11d8   : > { %3131 = vmatmul.mubr.msk.bf16.vlgmr.msra.gmra.mrb[48].mxu0 %vm699_vm2, %v2320_v43 }
0x12ab   : > { %v2397_v51 = vpop.f32.mrb[48].mxu0 }
0x12ac   : > { %v2398_v52 = vadd.f32 %v2789_v50, %v2397_v51  ;;  %v3132_v53 = vpop.f32.mrb[49].mxu0 }
0x12ad   : > { %v2400_v54 = vpop.f32.mrb[50].mxu0 }
0x12ae   : > { %v2403_v55 = vmul.f32 0.70710677, %v2398_v52  ;;  %v3133_v56 = vpop.f32.mrb[51].mxu0  ;;  %v2427_v15 = vmul.f32 0.5, %v2398_v52 }
0x12b0   : > { %v2404_v57 = vand.u32 2147483647, %v2403_v55  ;;  %vm2424_vm7 = vcmp.lt.f32.partialorder %v2403_v55, 0.0 }
0x12b2   : > { %v2405_v58 = vmul.f32 0.3275911, %v2404_v57  ;;  %v2418_v9 = vsub.f32 0.0, %v2404_v57 }
0x12b4   : > { %v2406_v59 = vadd.f32 1.0, %v2405_v58  ;;  %v2419_v61 = vmul.f32 %v2418_v9, %v2404_v57 }
0x12b6   : > { %3248 = vrcp.f32 %v2406_v59  ;;  %v2420_v0 = vmul.f32 1.442695, %v2419_v61 }
0x12b8   : > { %3250 = vpow2.f32 %v2420_v0 }
0x12c0   : > { %v3249_v60 = vpop.eup %3248 }
0x12c1   : > { %v2409_v62 = vmul.f32 1.0614054, %v3249_v60 }
0x12c2   : > { %v3251_v10 = vpop.eup %3250 }
0x12c3   : > { %v2795_v63 = vadd.f32 -1.4531521, %v2409_v62 }
0x12c5   : > { %v2411_v2 = vmul.f32 %v3249_v60, %v2795_v63 }
0x12c7   : > { %v2412_v3 = vadd.f32 1.4214138, %v2411_v2 }
0x12c9   : > { %v2413_v4 = vmul.f32 %v3249_v60, %v2412_v3 }
0x12cb   : > { %v2796_v5 = vadd.f32 -0.28449672, %v2413_v4 }
0x12cd   : > { %v2415_v6 = vmul.f32 %v3249_v60, %v2796_v5 }
0x12cf   : > { %v2416_v7 = vadd.f32 0.2548296, %v2415_v6 }
0x12d1   : > { %v2417_v8 = vmul.f32 %v3249_v60, %v2416_v7 }
0x12d3   : > { %v2422_v11 = vmul.f32 %v3251_v10, %v2417_v8 }
0x12d5   : > { %v2423_v12 = vsub.f32 1.0, %v2422_v11 }
0x12d7   : > { %v2425_v13 = vsub.f32 0.0, %v2423_v12 }
0x12d9   : > { %v2426_v14 = vsel %vm2424_vm7, %v2425_v13, %v2423_v12 }
0x12da   : > { %v2428_v16 = vadd.f32 1.0, %v2426_v14 }
0x12dc   : > { %v2429_v17 = vmul.f32 %v2428_v16, %v2427_v15 }
0x12de   : > { %v2430_v18 = vpack.c.bf16 %v2429_v17, %v2429_v17 }
0x12e0   : > { %3151 = vmatmul.mubr.bf16.vlgmr.msra.gmra.mrb[48].mxu1 %v2430_v18 }
0x13b3   : > { %v2536_v20 = vpop.f32.mrb[48].mxu1 }
0x13b4   : > { %v2537_v21 = vadd.f32 %v2797_v19, %v2536_v20  ;;  %v3152_v23 = vpop.f32.mrb[49].mxu1 }
0x13b5   : > { %v2539_v24 = vpop.f32.mrb[50].mxu1 }
0x13b6   : > { %v2542_v25 = vadd.f32 %v2537_v21, %v3774_v22  ;;  %v3153_v26 = vpop.f32.mrb[51].mxu1 }
0x13b8   : > { %v2543_v28 = vpack.c.bf16 %v2542_v25, %v2542_v25 }
0x13ba   : > { %2545 = vst.msk [vmem:[%s624_s25] sm:$0x3] %vm2544_vm8, %v2543_v28 }
0x13bb PF: > { %s30_s1 = sadd.s32 1, %s3258_s1  }
0x13bc   : > { %p27_p4 = scmp.ge.s32.totalorder %s30_s1, 4  }
0x13be   :  { %29 = sbr.rel (!%p27_p4) target bundleno = 4 (0x4), region = 154 }

</bundles_post_ra>
